<compile_context>
chip_gen: v5e
topology: v5e:2x2
jax: 0.10.0
libtpu: 0.0.40
codegen_flags: <defaults>
</compile_context>

<pallas_src>
import functools

import jax
import jax.numpy as jnp
import numpy as np
from jax import lax
from jax.experimental import pallas as pl
from jax.experimental.pallas import tpu as pltpu

LANES = 128


# ----------------------------- Pallas kernels -----------------------------

def _conv_pool_kernel(x_ref, w_ref, b_ref, o_ref, acc_ref, vmax_ref, *,
                      nb, H, W, rows_out, g_v, g_h):
    """Fused conv (single im2col matmul) + bias + ReLU + 2x2/stride-2 max-pool.

    x_ref   : (nb*H*W, K)       bf16 im2col rows, per-image order (h%2, h//2, w)
    w_ref   : (K, 128)          bf16 weights (out-channels zero-padded to 128)
    b_ref   : (1, 128)          f32 bias
    o_ref   : (nb*rows_out,128) f32 pooled maps; per image (H/2)*(W/2) rows (+0 fill)
    acc_ref : (nb*H*W, 128)     f32 conv output scratch
    vmax_ref: (nb*H*W//2, 128)  f32 vertically pooled scratch
    """
    HW = H * W
    half = HW // 2
    Hh, Wh = H // 2, W // 2
    npool = Hh * Wh

    # One fat MXU matmul over the whole image block (single bf16 pass).
    acc_ref[...] = jnp.dot(x_ref[...], w_ref[...],
                           preferred_element_type=jnp.float32)

    # Vertical (h) max: even-h rows are the first `half` rows of each image,
    # odd-h rows the second half -> contiguous slab maxes, no strided reads.
    for i in range(nb):
        for c0 in range(0, half, g_v):
            cs = min(g_v, half - c0)
            vmax_ref[pl.ds(i * half + c0, cs), :] = jnp.maximum(
                acc_ref[pl.ds(i * HW + c0, cs), :],
                acc_ref[pl.ds(i * HW + half + c0, cs), :])

    # Horizontal (w) max + bias + ReLU: two stride-2 slab reads per hh-group.
    # relu(max(.) + b) == max(relu(. + b)), so bias/ReLU touch only pooled rows.
    bias = b_ref[...]
    fill = rows_out - npool
    zfill = jnp.zeros((fill, LANES), jnp.float32) if fill else None
    for i in range(nb):
        for hh0 in range(0, Hh, g_h):
            hs = min(g_h, Hh - hh0)
            n_out = hs * Wh
            base = i * half + hh0 * W
            even = vmax_ref[pl.ds(base, n_out, stride=2), :]
            odd = vmax_ref[pl.ds(base + 1, n_out, stride=2), :]
            o_ref[pl.ds(i * rows_out + hh0 * Wh, n_out), :] = jnp.maximum(
                jnp.maximum(even, odd) + bias, 0.0)
        if fill:
            o_ref[pl.ds(i * rows_out + npool, fill), :] = zfill


def conv_pool_layer(x2d, w_mat, b_row, *, H, W, rows_out, nb):
    """x2d: (N*H*W, K) bf16 im2col rows -> (N*rows_out, 128) f32 pooled maps."""
    K = x2d.shape[1]
    HW = H * W
    n = x2d.shape[0] // HW
    g_v = 64                           # rows per contiguous vmax chunk
    g_h = max(1, 64 // (W // 2))       # pooled-h rows per strided hmax chunk
    kernel = functools.partial(_conv_pool_kernel, nb=nb, H=H, W=W,
                               rows_out=rows_out, g_v=g_v, g_h=g_h)
    return pl.pallas_call(
        kernel,
        out_shape=jax.ShapeDtypeStruct((n * rows_out, LANES), jnp.float32),
        grid_spec=pltpu.PrefetchScalarGridSpec(
            num_scalar_prefetch=0,
            grid=(n // nb,),
            in_specs=[
                pl.BlockSpec((nb * HW, K), lambda i: (i, 0)),
                pl.BlockSpec((K, LANES), lambda i: (0, 0)),
                pl.BlockSpec((1, LANES), lambda i: (0, 0)),
            ],
            out_specs=pl.BlockSpec((nb * rows_out, LANES), lambda i: (i, 0)),
            scratch_shapes=[pltpu.VMEM((nb * HW, LANES), jnp.float32),
                            pltpu.VMEM((nb * HW // 2, LANES), jnp.float32)],
        ),
        compiler_params=pltpu.CompilerParams(
            dimension_semantics=("parallel",),
            vmem_limit_bytes=32 * 1024 * 1024,
        ),
    )(x2d, w_mat, b_row)


def _fc_kernel(x_ref, w1_ref, b1_ref, w2_ref, b2_ref, w3_ref, b3_ref, o_ref):
    """fc1+ReLU -> fc2+ReLU -> fc3; lane/K-dense bf16 matmuls, f32 accumulation."""
    h = jnp.dot(x_ref[...], w1_ref[...], preferred_element_type=jnp.float32)
    h = jnp.maximum(h + b1_ref[...], 0.0)
    h = jnp.dot(h.astype(jnp.bfloat16), w2_ref[...],
                preferred_element_type=jnp.float32)
    h = jnp.maximum(h + b2_ref[...], 0.0)
    o_ref[...] = (jnp.dot(h.astype(jnp.bfloat16), w3_ref[...],
                          preferred_element_type=jnp.float32) + b3_ref[...])


def fc_stack(xf, w1, b1, w2, b2, w3, b3, *, nb):
    n, kin = xf.shape
    return pl.pallas_call(
        _fc_kernel,
        out_shape=jax.ShapeDtypeStruct((n, LANES), jnp.float32),
        grid_spec=pltpu.PrefetchScalarGridSpec(
            num_scalar_prefetch=0,
            grid=(n // nb,),
            in_specs=[
                pl.BlockSpec((nb, kin), lambda i: (i, 0)),
                pl.BlockSpec((kin, LANES), lambda i: (0, 0)),
                pl.BlockSpec((1, LANES), lambda i: (0, 0)),
                pl.BlockSpec((LANES, LANES), lambda i: (0, 0)),
                pl.BlockSpec((1, LANES), lambda i: (0, 0)),
                pl.BlockSpec((LANES, LANES), lambda i: (0, 0)),
                pl.BlockSpec((1, LANES), lambda i: (0, 0)),
            ],
            out_specs=pl.BlockSpec((nb, LANES), lambda i: (i, 0)),
        ),
        compiler_params=pltpu.CompilerParams(
            dimension_semantics=("parallel",),
            vmem_limit_bytes=32 * 1024 * 1024,
        ),
    )(xf, w1, b1, w2, b2, w3, b3)


# ----------------------- one-time parameter repack -----------------------

def prepare_params(p):
    """Repack PyTorch-layout params into kernel layouts (bf16 matmul weights).

    Output-channel dims are zero-padded to 128 lanes.  conv weights use the same
    tap order as the wrapper im2col; fc1 absorbs the PyTorch (C,H,W) flatten
    permutation and the (s,c)->512 packing, so no runtime permutes are needed.
    """
    f32, bf16 = jnp.float32, jnp.bfloat16

    # conv1: (6,1,5,5) -> rows k = ki*5+kj (pad 25->32), cols = out chan (pad->128)
    w1 = p["w1"].reshape(6, 25).T                                     # (25, 6)
    w1m = jnp.zeros((32, LANES), f32).at[:25, :6].set(w1).astype(bf16)
    b1r = jnp.zeros((1, LANES), f32).at[0, :6].set(p["b1"])

    # conv2: (16,6,5,5) -> rows (ki*5+kj)*6 + c (pad 150->256)
    w2 = jnp.transpose(p["w2"], (2, 3, 1, 0)).reshape(150, 16)        # (150, 16)
    w2m = jnp.zeros((256, LANES), f32).at[:150, :16].set(w2).astype(bf16)
    b2r = jnp.zeros((1, LANES), f32).at[0, :16].set(p["b2"])

    # fc1: (120,400); PyTorch flatten index c*25+s -> kernel row s*16+c (pad->512)
    wf1 = jnp.transpose(p["w_fc1"].reshape(120, 16, 25), (2, 1, 0)).reshape(400, 120)
    w1fc = jnp.zeros((512, LANES), f32).at[:400, :120].set(wf1).astype(bf16)
    b1fc = jnp.zeros((1, LANES), f32).at[0, :120].set(p["b_fc1"])

    w2fc = jnp.zeros((LANES, LANES), f32).at[:120, :84].set(p["w_fc2"].T).astype(bf16)
    b2fc = jnp.zeros((1, LANES), f32).at[0, :84].set(p["b_fc2"])
    w3fc = jnp.zeros((LANES, LANES), f32).at[:84, :62].set(p["w_fc3"].T).astype(bf16)
    b3fc = jnp.zeros((1, LANES), f32).at[0, :62].set(p["b_fc3"])

    return {"w1m": w1m, "b1r": b1r, "w2m": w2m, "b2r": b2r,
            "w1fc": w1fc, "b1fc": b1fc, "w2fc": w2fc, "b2fc": b2fc,
            "w3fc": w3fc, "b3fc": b3fc}


# ----------------------------- forward pass -----------------------------

def _pick_nb(n, candidates):
    """Largest candidate block that divides n while keeping grid length >= 2
    (feeds both v7x TensorCores); falls back to the full batch (grid=1)."""
    cap = max(n // 2, candidates[-1])
    for c in candidates:
        if c <= cap and n % c == 0:
            return c
    return n


@jax.jit
def lenet5_forward(x_nchw, kp):
    n = x_nchw.shape[0]
    x = x_nchw.reshape(n, 28, 28).astype(jnp.float32)

    # conv1 im2col: 25 taps (pad=2), K padded 25->32; rows ordered (img, h%2, h//2, w)
    xp = jnp.pad(x, ((0, 0), (2, 2), (2, 2)))                              # (n,32,32)
    p1 = jnp.stack([xp[:, ki:ki + 28, kj:kj + 28]
                    for ki in range(5) for kj in range(5)], axis=-1)       # (n,28,28,25)
    p1 = p1.reshape(n, 14, 2, 28, 25).transpose(0, 2, 1, 3, 4)             # (n,2,14,28,25)
    x1 = jnp.pad(p1.reshape(n * 784, 25), ((0, 0), (0, 7))).astype(jnp.bfloat16)

    nbc = _pick_nb(n, (16, 8, 4, 2))     # conv image block (VMEM-safe on v7x 64 MiB)
    # conv1 + ReLU + pool -> (n*196, 128): per image 14x14 pooled rows, lanes 0..5
    y1 = conv_pool_layer(x1, kp["w1m"], kp["b1r"], H=28, W=28, rows_out=196, nb=nbc)

    # conv2 im2col: 5x5x6 = 150 taps, K padded to 256; same (h%2, h//2, w) row order
    y1m = y1.reshape(n, 14, 14, LANES)[:, :, :, :6]                        # (n,14,14,6)
    p2 = jnp.stack([y1m[:, ki:ki + 10, kj:kj + 10, :]
                    for ki in range(5) for kj in range(5)], axis=3)        # (n,10,10,25,6)
    p2 = p2.reshape(n, 5, 2, 10, 150).transpose(0, 2, 1, 3, 4)             # (n,2,5,10,150)
    x2 = jnp.pad(p2.reshape(n * 100, 150), ((0, 0), (0, 106))).astype(jnp.bfloat16)

    # conv2 + ReLU + pool -> (n*32, 128): per image 25 pooled rows (+7 zero), lanes 0..15
    y2 = conv_pool_layer(x2, kp["w2m"], kp["b2r"], H=10, W=10, rows_out=32, nb=nbc)

    # fc input: pack the 25x16 valid features into lane-dense 512-wide rows
    xf = y2.reshape(n, 32, LANES)[:, :25, :16].reshape(n, 400)
    xf = jnp.pad(xf, ((0, 0), (0, 112))).astype(jnp.bfloat16)              # (n,512)
    nbf = _pick_nb(n, (128, 64, 32, 16, 8))
    out = fc_stack(xf, kp["w1fc"], kp["b1fc"], kp["w2fc"], kp["b2fc"],
                   kp["w3fc"], kp["b3fc"], nb=nbf)
    return out[:, :62]


# ----------------------- parameters & reference -----------------------

def init_params(key):
    ks = jax.random.split(key, 10)
    rnd = lambda k, shape, s: jax.random.normal(k, shape, jnp.float32) * s
    return {
        "w1": rnd(ks[0], (6, 1, 5, 5), 0.10),   "b1": rnd(ks[1], (6,), 0.10),
        "w2": rnd(ks[2], (16, 6, 5, 5), 0.05),  "b2": rnd(ks[3], (16,), 0.05),
        "w_fc1": rnd(ks[4], (120, 400), 0.05),  "b_fc1": rnd(ks[5], (120,), 0.05),
        "w_fc2": rnd(ks[6], (84, 120), 0.05),   "b_fc2": rnd(ks[7], (84,), 0.05),
        "w_fc3": rnd(ks[8], (62, 84), 0.05),    "b_fc3": rnd(ks[9], (62,), 0.05),
    }


def ref_forward(x, p):
    """Pure-JAX f32 (HIGHEST precision) reference matching the PyTorch module."""
    hi = lax.Precision.HIGHEST

    def conv(x, w, b, pad):
        y = lax.conv_general_dilated(
            x, w, (1, 1), ((pad, pad), (pad, pad)),
            dimension_numbers=("NCHW", "OIHW", "NCHW"), precision=hi)
        return jnp.maximum(y + b[None, :, None, None], 0.0)

    def pool(x):
        N, C, H, W = x.shape
        return jnp.max(x.reshape(N, C, H // 2, 2, W // 2, 2), axis=(3, 5))

    y = pool(conv(x, p["w1"], p["b1"], 2))
    y = pool(conv(y, p["w2"], p["b2"], 0))
    y = y.reshape(y.shape[0], -1)
    y = jnp.maximum(jnp.dot(y, p["w_fc1"].T, precision=hi) + p["b_fc1"], 0.0)
    y = jnp.maximum(jnp.dot(y, p["w_fc2"].T, precision=hi) + p["b_fc2"], 0.0)
    return jnp.dot(y, p["w_fc3"].T, precision=hi) + p["b_fc3"]


# --------------------------------- main ---------------------------------

if __name__ == "__main__":
    key = jax.random.PRNGKey(0)
    # LeNet5's 16*5*5 flatten implies a 1x28x28 input (MNIST-style).
    x = jax.random.normal(key, (2, 1, 28, 28), jnp.float32)
    params = init_params(jax.random.PRNGKey(42))
    kparams = prepare_params(params)        # one-time repack into kernel layouts

    out = jax.block_until_ready(lenet5_forward(x, kparams))
    assert out.shape == (2, 62), out.shape

    ref = jax.block_until_ready(ref_forward(x, params))
    # bf16 MXU operands vs f32-HIGHEST reference -> bf16-level tolerance.
    np.testing.assert_allclose(np.asarray(out), np.asarray(ref),
                               rtol=3e-2, atol=3e-2)
    print("KERNEL_OK")
</pallas_src>

<mosaic_0001>
module attributes {stable_mosaic.version = 11 : i64} {
  func.func @_conv_pool_kernel(%arg0: i32, %arg1: memref<1568x32xbf16, #tpu.memory_space<vmem>>, %arg2: memref<32x128xbf16, #tpu.memory_space<vmem>>, %arg3: memref<1x128xf32, #tpu.memory_space<vmem>>, %arg4: memref<392x128xf32, #tpu.memory_space<vmem>>, %arg5: memref<1568x128xf32, #tpu.memory_space<vmem>>, %arg6: memref<784x128xf32, #tpu.memory_space<vmem>>) attributes {dimension_semantics = [#tpu.dimension_semantics<parallel>], iteration_bounds = array<i64: 1>, scalar_prefetch = 0 : i64, scratch_operands = 2 : i64, tpu.core_type = #tpu.core_type<tc>, window_params = [{transform_indices = @transform_0, window_bounds = array<i64: 1568, 32>}, {pipeline_mode = #tpu.pipeline_mode<synchronous>, transform_indices = @transform_1, window_bounds = array<i64: 32, 128>}, {pipeline_mode = #tpu.pipeline_mode<synchronous>, transform_indices = @transform_2, window_bounds = array<i64: 1, 128>}, {transform_indices = @transform_3, window_bounds = array<i64: 392, 128>}]} {
    %c0 = arith.constant 0 : index
    %c0_0 = arith.constant 0 : index
    %0 = vector.load %arg1[%c0, %c0_0] : memref<1568x32xbf16, #tpu.memory_space<vmem>>, vector<1568x32xbf16>
    %c0_1 = arith.constant 0 : index
    %c0_2 = arith.constant 0 : index
    %1 = vector.load %arg2[%c0_1, %c0_2] : memref<32x128xbf16, #tpu.memory_space<vmem>>, vector<32x128xbf16>
    %cst = arith.constant dense<0.000000e+00> : vector<1568x128xf32>
    %2 = tpu.matmul %0, %1, %cst {dimension_numbers = #tpu.dot_dimension_numbers<[1], [0], [0], [1], [0, 0, 1, 1], [], []>} : vector<1568x32xbf16>, vector<32x128xbf16>, vector<1568x128xf32> -> vector<1568x128xf32>
    %c0_3 = arith.constant 0 : index
    %c0_4 = arith.constant 0 : index
    %3 = vector.load %arg5[%c0_3, %c0_4] : memref<1568x128xf32, #tpu.memory_space<vmem>>, vector<1568x128xf32>
    tpu.vector_store %arg5[%c0_3, %c0_4], %2 {strides = array<i32>} : memref<1568x128xf32, #tpu.memory_space<vmem>>, vector<1568x128xf32>,
    %c0_5 = arith.constant 0 : index
    %c0_6 = arith.constant 0 : index
    %4 = vector.load %arg5[%c0_5, %c0_6] : memref<1568x128xf32, #tpu.memory_space<vmem>>, vector<64x128xf32>
    %c392 = arith.constant 392 : index
    %c0_7 = arith.constant 0 : index
    %5 = vector.load %arg5[%c392, %c0_7] : memref<1568x128xf32, #tpu.memory_space<vmem>>, vector<64x128xf32>
    %6 = arith.maximumf %4, %5 : vector<64x128xf32>
    %c0_8 = arith.constant 0 : index
    %c0_9 = arith.constant 0 : index
    %7 = vector.load %arg6[%c0_8, %c0_9] : memref<784x128xf32, #tpu.memory_space<vmem>>, vector<64x128xf32>
    tpu.vector_store %arg6[%c0_8, %c0_9], %6 {strides = array<i32>} : memref<784x128xf32, #tpu.memory_space<vmem>>, vector<64x128xf32>,
    %c64 = arith.constant 64 : index
    %c0_10 = arith.constant 0 : index
    %8 = vector.load %arg5[%c64, %c0_10] : memref<1568x128xf32, #tpu.memory_space<vmem>>, vector<64x128xf32>
    %c456 = arith.constant 456 : index
    %c0_11 = arith.constant 0 : index
    %9 = vector.load %arg5[%c456, %c0_11] : memref<1568x128xf32, #tpu.memory_space<vmem>>, vector<64x128xf32>
    %10 = arith.maximumf %8, %9 : vector<64x128xf32>
    %c64_12 = arith.constant 64 : index
    %c0_13 = arith.constant 0 : index
    %11 = vector.load %arg6[%c64_12, %c0_13] : memref<784x128xf32, #tpu.memory_space<vmem>>, vector<64x128xf32>
    tpu.vector_store %arg6[%c64_12, %c0_13], %10 {strides = array<i32>} : memref<784x128xf32, #tpu.memory_space<vmem>>, vector<64x128xf32>,
    %c128 = arith.constant 128 : index
    %c0_14 = arith.constant 0 : index
    %12 = vector.load %arg5[%c128, %c0_14] : memref<1568x128xf32, #tpu.memory_space<vmem>>, vector<64x128xf32>
    %c520 = arith.constant 520 : index
    %c0_15 = arith.constant 0 : index
    %13 = vector.load %arg5[%c520, %c0_15] : memref<1568x128xf32, #tpu.memory_space<vmem>>, vector<64x128xf32>
    %14 = arith.maximumf %12, %13 : vector<64x128xf32>
    %c128_16 = arith.constant 128 : index
    %c0_17 = arith.constant 0 : index
    %15 = vector.load %arg6[%c128_16, %c0_17] : memref<784x128xf32, #tpu.memory_space<vmem>>, vector<64x128xf32>
    tpu.vector_store %arg6[%c128_16, %c0_17], %14 {strides = array<i32>} : memref<784x128xf32, #tpu.memory_space<vmem>>, vector<64x128xf32>,
    %c192 = arith.constant 192 : index
    %c0_18 = arith.constant 0 : index
    %16 = vector.load %arg5[%c192, %c0_18] : memref<1568x128xf32, #tpu.memory_space<vmem>>, vector<64x128xf32>
    %c584 = arith.constant 584 : index
    %c0_19 = arith.constant 0 : index
    %17 = vector.load %arg5[%c584, %c0_19] : memref<1568x128xf32, #tpu.memory_space<vmem>>, vector<64x128xf32>
    %18 = arith.maximumf %16, %17 : vector<64x128xf32>
    %c192_20 = arith.constant 192 : index
    %c0_21 = arith.constant 0 : index
    %19 = vector.load %arg6[%c192_20, %c0_21] : memref<784x128xf32, #tpu.memory_space<vmem>>, vector<64x128xf32>
    tpu.vector_store %arg6[%c192_20, %c0_21], %18 {strides = array<i32>} : memref<784x128xf32, #tpu.memory_space<vmem>>, vector<64x128xf32>,
    %c256 = arith.constant 256 : index
    %c0_22 = arith.constant 0 : index
    %20 = vector.load %arg5[%c256, %c0_22] : memref<1568x128xf32, #tpu.memory_space<vmem>>, vector<64x128xf32>
    %c648 = arith.constant 648 : index
    %c0_23 = arith.constant 0 : index
    %21 = vector.load %arg5[%c648, %c0_23] : memref<1568x128xf32, #tpu.memory_space<vmem>>, vector<64x128xf32>
    %22 = arith.maximumf %20, %21 : vector<64x128xf32>
    %c256_24 = arith.constant 256 : index
    %c0_25 = arith.constant 0 : index
    %23 = vector.load %arg6[%c256_24, %c0_25] : memref<784x128xf32, #tpu.memory_space<vmem>>, vector<64x128xf32>
    tpu.vector_store %arg6[%c256_24, %c0_25], %22 {strides = array<i32>} : memref<784x128xf32, #tpu.memory_space<vmem>>, vector<64x128xf32>,
    %c320 = arith.constant 320 : index
    %c0_26 = arith.constant 0 : index
    %24 = vector.load %arg5[%c320, %c0_26] : memref<1568x128xf32, #tpu.memory_space<vmem>>, vector<64x128xf32>
    %c712 = arith.constant 712 : index
    %c0_27 = arith.constant 0 : index
    %25 = vector.load %arg5[%c712, %c0_27] : memref<1568x128xf32, #tpu.memory_space<vmem>>, vector<64x128xf32>
    %26 = arith.maximumf %24, %25 : vector<64x128xf32>
    %c320_28 = arith.constant 320 : index
    %c0_29 = arith.constant 0 : index
    %27 = vector.load %arg6[%c320_28, %c0_29] : memref<784x128xf32, #tpu.memory_space<vmem>>, vector<64x128xf32>
    tpu.vector_store %arg6[%c320_28, %c0_29], %26 {strides = array<i32>} : memref<784x128xf32, #tpu.memory_space<vmem>>, vector<64x128xf32>,
    %c384 = arith.constant 384 : index
    %c0_30 = arith.constant 0 : index
    %28 = vector.load %arg5[%c384, %c0_30] : memref<1568x128xf32, #tpu.memory_space<vmem>>, vector<8x128xf32>
    %c776 = arith.constant 776 : index
    %c0_31 = arith.constant 0 : index
    %29 = vector.load %arg5[%c776, %c0_31] : memref<1568x128xf32, #tpu.memory_space<vmem>>, vector<8x128xf32>
    %30 = arith.maximumf %28, %29 : vector<8x128xf32>
    %c384_32 = arith.constant 384 : index
    %c0_33 = arith.constant 0 : index
    %31 = vector.load %arg6[%c384_32, %c0_33] : memref<784x128xf32, #tpu.memory_space<vmem>>, vector<8x128xf32>
    tpu.vector_store %arg6[%c384_32, %c0_33], %30 {strides = array<i32>} : memref<784x128xf32, #tpu.memory_space<vmem>>, vector<8x128xf32>,
    %c784 = arith.constant 784 : index
    %c0_34 = arith.constant 0 : index
    %32 = vector.load %arg5[%c784, %c0_34] : memref<1568x128xf32, #tpu.memory_space<vmem>>, vector<64x128xf32>
    %c1176 = arith.constant 1176 : index
    %c0_35 = arith.constant 0 : index
    %33 = vector.load %arg5[%c1176, %c0_35] : memref<1568x128xf32, #tpu.memory_space<vmem>>, vector<64x128xf32>
    %34 = arith.maximumf %32, %33 : vector<64x128xf32>
    %c392_36 = arith.constant 392 : index
    %c0_37 = arith.constant 0 : index
    %35 = vector.load %arg6[%c392_36, %c0_37] : memref<784x128xf32, #tpu.memory_space<vmem>>, vector<64x128xf32>
    tpu.vector_store %arg6[%c392_36, %c0_37], %34 {strides = array<i32>} : memref<784x128xf32, #tpu.memory_space<vmem>>, vector<64x128xf32>,
    %c848 = arith.constant 848 : index
    %c0_38 = arith.constant 0 : index
    %36 = vector.load %arg5[%c848, %c0_38] : memref<1568x128xf32, #tpu.memory_space<vmem>>, vector<64x128xf32>
    %c1240 = arith.constant 1240 : index
    %c0_39 = arith.constant 0 : index
    %37 = vector.load %arg5[%c1240, %c0_39] : memref<1568x128xf32, #tpu.memory_space<vmem>>, vector<64x128xf32>
    %38 = arith.maximumf %36, %37 : vector<64x128xf32>
    %c456_40 = arith.constant 456 : index
    %c0_41 = arith.constant 0 : index
    %39 = vector.load %arg6[%c456_40, %c0_41] : memref<784x128xf32, #tpu.memory_space<vmem>>, vector<64x128xf32>
    tpu.vector_store %arg6[%c456_40, %c0_41], %38 {strides = array<i32>} : memref<784x128xf32, #tpu.memory_space<vmem>>, vector<64x128xf32>,
    %c912 = arith.constant 912 : index
    %c0_42 = arith.constant 0 : index
    %40 = vector.load %arg5[%c912, %c0_42] : memref<1568x128xf32, #tpu.memory_space<vmem>>, vector<64x128xf32>
    %c1304 = arith.constant 1304 : index
    %c0_43 = arith.constant 0 : index
    %41 = vector.load %arg5[%c1304, %c0_43] : memref<1568x128xf32, #tpu.memory_space<vmem>>, vector<64x128xf32>
    %42 = arith.maximumf %40, %41 : vector<64x128xf32>
    %c520_44 = arith.constant 520 : index
    %c0_45 = arith.constant 0 : index
    %43 = vector.load %arg6[%c520_44, %c0_45] : memref<784x128xf32, #tpu.memory_space<vmem>>, vector<64x128xf32>
    tpu.vector_store %arg6[%c520_44, %c0_45], %42 {strides = array<i32>} : memref<784x128xf32, #tpu.memory_space<vmem>>, vector<64x128xf32>,
    %c976 = arith.constant 976 : index
    %c0_46 = arith.constant 0 : index
    %44 = vector.load %arg5[%c976, %c0_46] : memref<1568x128xf32, #tpu.memory_space<vmem>>, vector<64x128xf32>
    %c1368 = arith.constant 1368 : index
    %c0_47 = arith.constant 0 : index
    %45 = vector.load %arg5[%c1368, %c0_47] : memref<1568x128xf32, #tpu.memory_space<vmem>>, vector<64x128xf32>
    %46 = arith.maximumf %44, %45 : vector<64x128xf32>
    %c584_48 = arith.constant 584 : index
    %c0_49 = arith.constant 0 : index
    %47 = vector.load %arg6[%c584_48, %c0_49] : memref<784x128xf32, #tpu.memory_space<vmem>>, vector<64x128xf32>
    tpu.vector_store %arg6[%c584_48, %c0_49], %46 {strides = array<i32>} : memref<784x128xf32, #tpu.memory_space<vmem>>, vector<64x128xf32>,
    %c1040 = arith.constant 1040 : index
    %c0_50 = arith.constant 0 : index
    %48 = vector.load %arg5[%c1040, %c0_50] : memref<1568x128xf32, #tpu.memory_space<vmem>>, vector<64x128xf32>
    %c1432 = arith.constant 1432 : index
    %c0_51 = arith.constant 0 : index
    %49 = vector.load %arg5[%c1432, %c0_51] : memref<1568x128xf32, #tpu.memory_space<vmem>>, vector<64x128xf32>
    %50 = arith.maximumf %48, %49 : vector<64x128xf32>
    %c648_52 = arith.constant 648 : index
    %c0_53 = arith.constant 0 : index
    %51 = vector.load %arg6[%c648_52, %c0_53] : memref<784x128xf32, #tpu.memory_space<vmem>>, vector<64x128xf32>
    tpu.vector_store %arg6[%c648_52, %c0_53], %50 {strides = array<i32>} : memref<784x128xf32, #tpu.memory_space<vmem>>, vector<64x128xf32>,
    %c1104 = arith.constant 1104 : index
    %c0_54 = arith.constant 0 : index
    %52 = vector.load %arg5[%c1104, %c0_54] : memref<1568x128xf32, #tpu.memory_space<vmem>>, vector<64x128xf32>
    %c1496 = arith.constant 1496 : index
    %c0_55 = arith.constant 0 : index
    %53 = vector.load %arg5[%c1496, %c0_55] : memref<1568x128xf32, #tpu.memory_space<vmem>>, vector<64x128xf32>
    %54 = arith.maximumf %52, %53 : vector<64x128xf32>
    %c712_56 = arith.constant 712 : index
    %c0_57 = arith.constant 0 : index
    %55 = vector.load %arg6[%c712_56, %c0_57] : memref<784x128xf32, #tpu.memory_space<vmem>>, vector<64x128xf32>
    tpu.vector_store %arg6[%c712_56, %c0_57], %54 {strides = array<i32>} : memref<784x128xf32, #tpu.memory_space<vmem>>, vector<64x128xf32>,
    %c1168 = arith.constant 1168 : index
    %c0_58 = arith.constant 0 : index
    %56 = vector.load %arg5[%c1168, %c0_58] : memref<1568x128xf32, #tpu.memory_space<vmem>>, vector<8x128xf32>
    %c1560 = arith.constant 1560 : index
    %c0_59 = arith.constant 0 : index
    %57 = vector.load %arg5[%c1560, %c0_59] : memref<1568x128xf32, #tpu.memory_space<vmem>>, vector<8x128xf32>
    %58 = arith.maximumf %56, %57 : vector<8x128xf32>
    %c776_60 = arith.constant 776 : index
    %c0_61 = arith.constant 0 : index
    %59 = vector.load %arg6[%c776_60, %c0_61] : memref<784x128xf32, #tpu.memory_space<vmem>>, vector<8x128xf32>
    tpu.vector_store %arg6[%c776_60, %c0_61], %58 {strides = array<i32>} : memref<784x128xf32, #tpu.memory_space<vmem>>, vector<8x128xf32>,
    %c0_62 = arith.constant 0 : index
    %c0_63 = arith.constant 0 : index
    %60 = vector.load %arg3[%c0_62, %c0_63] : memref<1x128xf32, #tpu.memory_space<vmem>>, vector<1x128xf32>
    %c0_64 = arith.constant 0 : index
    %c0_65 = arith.constant 0 : index
    %61 = tpu.strided_load %arg6[%c0_64, %c0_65] {strides = array<i32: 2, 1>} : memref<784x128xf32, #tpu.memory_space<vmem>>, vector<56x128xf32>
    %c1 = arith.constant 1 : index
    %c0_66 = arith.constant 0 : index
    %62 = tpu.strided_load %arg6[%c1, %c0_66] {strides = array<i32: 2, 1>} : memref<784x128xf32, #tpu.memory_space<vmem>>, vector<56x128xf32>
    %63 = arith.maximumf %61, %62 : vector<56x128xf32>
    %64 = vector.broadcast %60 : vector<1x128xf32> to vector<56x128xf32>
    %65 = arith.addf %63, %64 : vector<56x128xf32>
    %cst_67 = arith.constant 0.000000e+00 : f32
    %66 = vector.broadcast %cst_67 : f32 to vector<56x128xf32>
    %67 = arith.maximumf %65, %66 : vector<56x128xf32>
    %c0_68 = arith.constant 0 : index
    %c0_69 = arith.constant 0 : index
    %68 = vector.load %arg4[%c0_68, %c0_69] : memref<392x128xf32, #tpu.memory_space<vmem>>, vector<56x128xf32>
    tpu.vector_store %arg4[%c0_68, %c0_69], %67 {strides = array<i32>} : memref<392x128xf32, #tpu.memory_space<vmem>>, vector<56x128xf32>,
    %c112 = arith.constant 112 : index
    %c0_70 = arith.constant 0 : index
    %69 = tpu.strided_load %arg6[%c112, %c0_70] {strides = array<i32: 2, 1>} : memref<784x128xf32, #tpu.memory_space<vmem>>, vector<56x128xf32>
    %c113 = arith.constant 113 : index
    %c0_71 = arith.constant 0 : index
    %70 = tpu.strided_load %arg6[%c113, %c0_71] {strides = array<i32: 2, 1>} : memref<784x128xf32, #tpu.memory_space<vmem>>, vector<56x128xf32>
    %71 = arith.maximumf %69, %70 : vector<56x128xf32>
    %72 = vector.broadcast %60 : vector<1x128xf32> to vector<56x128xf32>
    %73 = arith.addf %71, %72 : vector<56x128xf32>
    %cst_72 = arith.constant 0.000000e+00 : f32
    %74 = vector.broadcast %cst_72 : f32 to vector<56x128xf32>
    %75 = arith.maximumf %73, %74 : vector<56x128xf32>
    %c56 = arith.constant 56 : index
    %c0_73 = arith.constant 0 : index
    %76 = vector.load %arg4[%c56, %c0_73] : memref<392x128xf32, #tpu.memory_space<vmem>>, vector<56x128xf32>
    tpu.vector_store %arg4[%c56, %c0_73], %75 {strides = array<i32>} : memref<392x128xf32, #tpu.memory_space<vmem>>, vector<56x128xf32>,
    %c224 = arith.constant 224 : index
    %c0_74 = arith.constant 0 : index
    %77 = tpu.strided_load %arg6[%c224, %c0_74] {strides = array<i32: 2, 1>} : memref<784x128xf32, #tpu.memory_space<vmem>>, vector<56x128xf32>
    %c225 = arith.constant 225 : index
    %c0_75 = arith.constant 0 : index
    %78 = tpu.strided_load %arg6[%c225, %c0_75] {strides = array<i32: 2, 1>} : memref<784x128xf32, #tpu.memory_space<vmem>>, vector<56x128xf32>
    %79 = arith.maximumf %77, %78 : vector<56x128xf32>
    %80 = vector.broadcast %60 : vector<1x128xf32> to vector<56x128xf32>
    %81 = arith.addf %79, %80 : vector<56x128xf32>
    %cst_76 = arith.constant 0.000000e+00 : f32
    %82 = vector.broadcast %cst_76 : f32 to vector<56x128xf32>
    %83 = arith.maximumf %81, %82 : vector<56x128xf32>
    %c112_77 = arith.constant 112 : index
    %c0_78 = arith.constant 0 : index
    %84 = vector.load %arg4[%c112_77, %c0_78] : memref<392x128xf32, #tpu.memory_space<vmem>>, vector<56x128xf32>
    tpu.vector_store %arg4[%c112_77, %c0_78], %83 {strides = array<i32>} : memref<392x128xf32, #tpu.memory_space<vmem>>, vector<56x128xf32>,
    %c336 = arith.constant 336 : index
    %c0_79 = arith.constant 0 : index
    %85 = tpu.strided_load %arg6[%c336, %c0_79] {strides = array<i32: 2, 1>} : memref<784x128xf32, #tpu.memory_space<vmem>>, vector<28x128xf32>
    %c337 = arith.constant 337 : index
    %c0_80 = arith.constant 0 : index
    %86 = tpu.strided_load %arg6[%c337, %c0_80] {strides = array<i32: 2, 1>} : memref<784x128xf32, #tpu.memory_space<vmem>>, vector<28x128xf32>
    %87 = arith.maximumf %85, %86 : vector<28x128xf32>
    %88 = vector.broadcast %60 : vector<1x128xf32> to vector<28x128xf32>
    %89 = arith.addf %87, %88 : vector<28x128xf32>
    %cst_81 = arith.constant 0.000000e+00 : f32
    %90 = vector.broadcast %cst_81 : f32 to vector<28x128xf32>
    %91 = arith.maximumf %89, %90 : vector<28x128xf32>
    %c168 = arith.constant 168 : index
    %c0_82 = arith.constant 0 : index
    %92 = vector.load %arg4[%c168, %c0_82] : memref<392x128xf32, #tpu.memory_space<vmem>>, vector<28x128xf32>
    tpu.vector_store %arg4[%c168, %c0_82], %91 {strides = array<i32>} : memref<392x128xf32, #tpu.memory_space<vmem>>, vector<28x128xf32>,
    %c392_83 = arith.constant 392 : index
    %c0_84 = arith.constant 0 : index
    %93 = tpu.strided_load %arg6[%c392_83, %c0_84] {strides = array<i32: 2, 1>} : memref<784x128xf32, #tpu.memory_space<vmem>>, vector<56x128xf32>
    %c393 = arith.constant 393 : index
    %c0_85 = arith.constant 0 : index
    %94 = tpu.strided_load %arg6[%c393, %c0_85] {strides = array<i32: 2, 1>} : memref<784x128xf32, #tpu.memory_space<vmem>>, vector<56x128xf32>
    %95 = arith.maximumf %93, %94 : vector<56x128xf32>
    %96 = vector.broadcast %60 : vector<1x128xf32> to vector<56x128xf32>
    %97 = arith.addf %95, %96 : vector<56x128xf32>
    %cst_86 = arith.constant 0.000000e+00 : f32
    %98 = vector.broadcast %cst_86 : f32 to vector<56x128xf32>
    %99 = arith.maximumf %97, %98 : vector<56x128xf32>
    %c196 = arith.constant 196 : index
    %c0_87 = arith.constant 0 : index
    %100 = vector.load %arg4[%c196, %c0_87] : memref<392x128xf32, #tpu.memory_space<vmem>>, vector<56x128xf32>
    tpu.vector_store %arg4[%c196, %c0_87], %99 {strides = array<i32>} : memref<392x128xf32, #tpu.memory_space<vmem>>, vector<56x128xf32>,
    %c504 = arith.constant 504 : index
    %c0_88 = arith.constant 0 : index
    %101 = tpu.strided_load %arg6[%c504, %c0_88] {strides = array<i32: 2, 1>} : memref<784x128xf32, #tpu.memory_space<vmem>>, vector<56x128xf32>
    %c505 = arith.constant 505 : index
    %c0_89 = arith.constant 0 : index
    %102 = tpu.strided_load %arg6[%c505, %c0_89] {strides = array<i32: 2, 1>} : memref<784x128xf32, #tpu.memory_space<vmem>>, vector<56x128xf32>
    %103 = arith.maximumf %101, %102 : vector<56x128xf32>
    %104 = vector.broadcast %60 : vector<1x128xf32> to vector<56x128xf32>
    %105 = arith.addf %103, %104 : vector<56x128xf32>
    %cst_90 = arith.constant 0.000000e+00 : f32
    %106 = vector.broadcast %cst_90 : f32 to vector<56x128xf32>
    %107 = arith.maximumf %105, %106 : vector<56x128xf32>
    %c252 = arith.constant 252 : index
    %c0_91 = arith.constant 0 : index
    %108 = vector.load %arg4[%c252, %c0_91] : memref<392x128xf32, #tpu.memory_space<vmem>>, vector<56x128xf32>
    tpu.vector_store %arg4[%c252, %c0_91], %107 {strides = array<i32>} : memref<392x128xf32, #tpu.memory_space<vmem>>, vector<56x128xf32>,
    %c616 = arith.constant 616 : index
    %c0_92 = arith.constant 0 : index
    %109 = tpu.strided_load %arg6[%c616, %c0_92] {strides = array<i32: 2, 1>} : memref<784x128xf32, #tpu.memory_space<vmem>>, vector<56x128xf32>
    %c617 = arith.constant 617 : index
    %c0_93 = arith.constant 0 : index
    %110 = tpu.strided_load %arg6[%c617, %c0_93] {strides = array<i32: 2, 1>} : memref<784x128xf32, #tpu.memory_space<vmem>>, vector<56x128xf32>
    %111 = arith.maximumf %109, %110 : vector<56x128xf32>
    %112 = vector.broadcast %60 : vector<1x128xf32> to vector<56x128xf32>
    %113 = arith.addf %111, %112 : vector<56x128xf32>
    %cst_94 = arith.constant 0.000000e+00 : f32
    %114 = vector.broadcast %cst_94 : f32 to vector<56x128xf32>
    %115 = arith.maximumf %113, %114 : vector<56x128xf32>
    %c308 = arith.constant 308 : index
    %c0_95 = arith.constant 0 : index
    %116 = vector.load %arg4[%c308, %c0_95] : memref<392x128xf32, #tpu.memory_space<vmem>>, vector<56x128xf32>
    tpu.vector_store %arg4[%c308, %c0_95], %115 {strides = array<i32>} : memref<392x128xf32, #tpu.memory_space<vmem>>, vector<56x128xf32>,
    %c728 = arith.constant 728 : index
    %c0_96 = arith.constant 0 : index
    %117 = tpu.strided_load %arg6[%c728, %c0_96] {strides = array<i32: 2, 1>} : memref<784x128xf32, #tpu.memory_space<vmem>>, vector<28x128xf32>
    %c729 = arith.constant 729 : index
    %c0_97 = arith.constant 0 : index
    %118 = tpu.strided_load %arg6[%c729, %c0_97] {strides = array<i32: 2, 1>} : memref<784x128xf32, #tpu.memory_space<vmem>>, vector<28x128xf32>
    %119 = arith.maximumf %117, %118 : vector<28x128xf32>
    %120 = vector.broadcast %60 : vector<1x128xf32> to vector<28x128xf32>
    %121 = arith.addf %119, %120 : vector<28x128xf32>
    %cst_98 = arith.constant 0.000000e+00 : f32
    %122 = vector.broadcast %cst_98 : f32 to vector<28x128xf32>
    %123 = arith.maximumf %121, %122 : vector<28x128xf32>
    %c364 = arith.constant 364 : index
    %c0_99 = arith.constant 0 : index
    %124 = vector.load %arg4[%c364, %c0_99] : memref<392x128xf32, #tpu.memory_space<vmem>>, vector<28x128xf32>
    tpu.vector_store %arg4[%c364, %c0_99], %123 {strides = array<i32>} : memref<392x128xf32, #tpu.memory_space<vmem>>, vector<28x128xf32>,
    return
  }
  func.func @transform_0(%arg0: i32) -> (i32, i32) {
    %c0_i32 = arith.constant 0 : i32
    %c0_i32_0 = arith.constant 0 : i32
    return %arg0, %c0_i32 : i32, i32
  }
  func.func @transform_1(%arg0: i32) -> (i32, i32) {
    %c0_i32 = arith.constant 0 : i32
    %c0_i32_0 = arith.constant 0 : i32
    %c0_i32_1 = arith.constant 0 : i32
    return %c0_i32, %c0_i32_0 : i32, i32
  }
  func.func @transform_2(%arg0: i32) -> (i32, i32) {
    %c0_i32 = arith.constant 0 : i32
    %c0_i32_0 = arith.constant 0 : i32
    %c0_i32_1 = arith.constant 0 : i32
    return %c0_i32, %c0_i32_0 : i32, i32
  }
  func.func @transform_3(%arg0: i32) -> (i32, i32) {
    %c0_i32 = arith.constant 0 : i32
    %c0_i32_0 = arith.constant 0 : i32
    return %arg0, %c0_i32 : i32, i32
  }
}

module attributes {stable_mosaic.version = 11 : i64} {
  func.func @_conv_pool_kernel(%arg0: i32, %arg1: memref<200x256xbf16, #tpu.memory_space<vmem>>, %arg2: memref<256x128xbf16, #tpu.memory_space<vmem>>, %arg3: memref<1x128xf32, #tpu.memory_space<vmem>>, %arg4: memref<64x128xf32, #tpu.memory_space<vmem>>, %arg5: memref<200x128xf32, #tpu.memory_space<vmem>>, %arg6: memref<100x128xf32, #tpu.memory_space<vmem>>) attributes {dimension_semantics = [#tpu.dimension_semantics<parallel>], iteration_bounds = array<i64: 1>, scalar_prefetch = 0 : i64, scratch_operands = 2 : i64, tpu.core_type = #tpu.core_type<tc>, window_params = [{transform_indices = @transform_0, window_bounds = array<i64: 200, 256>}, {pipeline_mode = #tpu.pipeline_mode<synchronous>, transform_indices = @transform_1, window_bounds = array<i64: 256, 128>}, {pipeline_mode = #tpu.pipeline_mode<synchronous>, transform_indices = @transform_2, window_bounds = array<i64: 1, 128>}, {transform_indices = @transform_3, window_bounds = array<i64: 64, 128>}]} {
    %c0 = arith.constant 0 : index
    %c0_0 = arith.constant 0 : index
    %0 = vector.load %arg1[%c0, %c0_0] : memref<200x256xbf16, #tpu.memory_space<vmem>>, vector<200x256xbf16>
    %c0_1 = arith.constant 0 : index
    %c0_2 = arith.constant 0 : index
    %1 = vector.load %arg2[%c0_1, %c0_2] : memref<256x128xbf16, #tpu.memory_space<vmem>>, vector<256x128xbf16>
    %cst = arith.constant dense<0.000000e+00> : vector<200x128xf32>
    %2 = tpu.matmul %0, %1, %cst {dimension_numbers = #tpu.dot_dimension_numbers<[1], [0], [0], [1], [0, 0, 1, 1], [], []>} : vector<200x256xbf16>, vector<256x128xbf16>, vector<200x128xf32> -> vector<200x128xf32>
    %c0_3 = arith.constant 0 : index
    %c0_4 = arith.constant 0 : index
    %3 = vector.load %arg5[%c0_3, %c0_4] : memref<200x128xf32, #tpu.memory_space<vmem>>, vector<200x128xf32>
    tpu.vector_store %arg5[%c0_3, %c0_4], %2 {strides = array<i32>} : memref<200x128xf32, #tpu.memory_space<vmem>>, vector<200x128xf32>,
    %c0_5 = arith.constant 0 : index
    %c0_6 = arith.constant 0 : index
    %4 = vector.load %arg5[%c0_5, %c0_6] : memref<200x128xf32, #tpu.memory_space<vmem>>, vector<50x128xf32>
    %c50 = arith.constant 50 : index
    %c0_7 = arith.constant 0 : index
    %5 = vector.load %arg5[%c50, %c0_7] : memref<200x128xf32, #tpu.memory_space<vmem>>, vector<50x128xf32>
    %6 = arith.maximumf %4, %5 : vector<50x128xf32>
    %c0_8 = arith.constant 0 : index
    %c0_9 = arith.constant 0 : index
    %7 = vector.load %arg6[%c0_8, %c0_9] : memref<100x128xf32, #tpu.memory_space<vmem>>, vector<50x128xf32>
    tpu.vector_store %arg6[%c0_8, %c0_9], %6 {strides = array<i32>} : memref<100x128xf32, #tpu.memory_space<vmem>>, vector<50x128xf32>,
    %c100 = arith.constant 100 : index
    %c0_10 = arith.constant 0 : index
    %8 = vector.load %arg5[%c100, %c0_10] : memref<200x128xf32, #tpu.memory_space<vmem>>, vector<50x128xf32>
    %c150 = arith.constant 150 : index
    %c0_11 = arith.constant 0 : index
    %9 = vector.load %arg5[%c150, %c0_11] : memref<200x128xf32, #tpu.memory_space<vmem>>, vector<50x128xf32>
    %10 = arith.maximumf %8, %9 : vector<50x128xf32>
    %c50_12 = arith.constant 50 : index
    %c0_13 = arith.constant 0 : index
    %11 = vector.load %arg6[%c50_12, %c0_13] : memref<100x128xf32, #tpu.memory_space<vmem>>, vector<50x128xf32>
    tpu.vector_store %arg6[%c50_12, %c0_13], %10 {strides = array<i32>} : memref<100x128xf32, #tpu.memory_space<vmem>>, vector<50x128xf32>,
    %c0_14 = arith.constant 0 : index
    %c0_15 = arith.constant 0 : index
    %12 = vector.load %arg3[%c0_14, %c0_15] : memref<1x128xf32, #tpu.memory_space<vmem>>, vector<1x128xf32>
    %cst_16 = arith.constant 0.000000e+00 : f32
    %13 = vector.broadcast %cst_16 : f32 to vector<7x128xf32>
    %c0_17 = arith.constant 0 : index
    %c0_18 = arith.constant 0 : index
    %14 = tpu.strided_load %arg6[%c0_17, %c0_18] {strides = array<i32: 2, 1>} : memref<100x128xf32, #tpu.memory_space<vmem>>, vector<25x128xf32>
    %c1 = arith.constant 1 : index
    %c0_19 = arith.constant 0 : index
    %15 = tpu.strided_load %arg6[%c1, %c0_19] {strides = array<i32: 2, 1>} : memref<100x128xf32, #tpu.memory_space<vmem>>, vector<25x128xf32>
    %16 = arith.maximumf %14, %15 : vector<25x128xf32>
    %17 = vector.broadcast %12 : vector<1x128xf32> to vector<25x128xf32>
    %18 = arith.addf %16, %17 : vector<25x128xf32>
    %cst_20 = arith.constant 0.000000e+00 : f32
    %19 = vector.broadcast %cst_20 : f32 to vector<25x128xf32>
    %20 = arith.maximumf %18, %19 : vector<25x128xf32>
    %c0_21 = arith.constant 0 : index
    %c0_22 = arith.constant 0 : index
    %21 = vector.load %arg4[%c0_21, %c0_22] : memref<64x128xf32, #tpu.memory_space<vmem>>, vector<25x128xf32>
    tpu.vector_store %arg4[%c0_21, %c0_22], %20 {strides = array<i32>} : memref<64x128xf32, #tpu.memory_space<vmem>>, vector<25x128xf32>,
    %c25 = arith.constant 25 : index
    %c0_23 = arith.constant 0 : index
    %22 = vector.load %arg4[%c25, %c0_23] : memref<64x128xf32, #tpu.memory_space<vmem>>, vector<7x128xf32>
    tpu.vector_store %arg4[%c25, %c0_23], %13 {strides = array<i32>} : memref<64x128xf32, #tpu.memory_space<vmem>>, vector<7x128xf32>,
    %c50_24 = arith.constant 50 : index
    %c0_25 = arith.constant 0 : index
    %23 = tpu.strided_load %arg6[%c50_24, %c0_25] {strides = array<i32: 2, 1>} : memref<100x128xf32, #tpu.memory_space<vmem>>, vector<25x128xf32>
    %c51 = arith.constant 51 : index
    %c0_26 = arith.constant 0 : index
    %24 = tpu.strided_load %arg6[%c51, %c0_26] {strides = array<i32: 2, 1>} : memref<100x128xf32, #tpu.memory_space<vmem>>, vector<25x128xf32>
    %25 = arith.maximumf %23, %24 : vector<25x128xf32>
    %26 = vector.broadcast %12 : vector<1x128xf32> to vector<25x128xf32>
    %27 = arith.addf %25, %26 : vector<25x128xf32>
    %cst_27 = arith.constant 0.000000e+00 : f32
    %28 = vector.broadcast %cst_27 : f32 to vector<25x128xf32>
    %29 = arith.maximumf %27, %28 : vector<25x128xf32>
    %c32 = arith.constant 32 : index
    %c0_28 = arith.constant 0 : index
    %30 = vector.load %arg4[%c32, %c0_28] : memref<64x128xf32, #tpu.memory_space<vmem>>, vector<25x128xf32>
    tpu.vector_store %arg4[%c32, %c0_28], %29 {strides = array<i32>} : memref<64x128xf32, #tpu.memory_space<vmem>>, vector<25x128xf32>,
    %c57 = arith.constant 57 : index
    %c0_29 = arith.constant 0 : index
    %31 = vector.load %arg4[%c57, %c0_29] : memref<64x128xf32, #tpu.memory_space<vmem>>, vector<7x128xf32>
    tpu.vector_store %arg4[%c57, %c0_29], %13 {strides = array<i32>} : memref<64x128xf32, #tpu.memory_space<vmem>>, vector<7x128xf32>,
    return
  }
  func.func @transform_0(%arg0: i32) -> (i32, i32) {
    %c0_i32 = arith.constant 0 : i32
    %c0_i32_0 = arith.constant 0 : i32
    return %arg0, %c0_i32 : i32, i32
  }
  func.func @transform_1(%arg0: i32) -> (i32, i32) {
    %c0_i32 = arith.constant 0 : i32
    %c0_i32_0 = arith.constant 0 : i32
    %c0_i32_1 = arith.constant 0 : i32
    return %c0_i32, %c0_i32_0 : i32, i32
  }
  func.func @transform_2(%arg0: i32) -> (i32, i32) {
    %c0_i32 = arith.constant 0 : i32
    %c0_i32_0 = arith.constant 0 : i32
    %c0_i32_1 = arith.constant 0 : i32
    return %c0_i32, %c0_i32_0 : i32, i32
  }
  func.func @transform_3(%arg0: i32) -> (i32, i32) {
    %c0_i32 = arith.constant 0 : i32
    %c0_i32_0 = arith.constant 0 : i32
    return %arg0, %c0_i32 : i32, i32
  }
}

module attributes {stable_mosaic.version = 11 : i64} {
  func.func @_fc_kernel(%arg0: i32, %arg1: memref<2x512xbf16, #tpu.memory_space<vmem>>, %arg2: memref<512x128xbf16, #tpu.memory_space<vmem>>, %arg3: memref<1x128xf32, #tpu.memory_space<vmem>>, %arg4: memref<128x128xbf16, #tpu.memory_space<vmem>>, %arg5: memref<1x128xf32, #tpu.memory_space<vmem>>, %arg6: memref<128x128xbf16, #tpu.memory_space<vmem>>, %arg7: memref<1x128xf32, #tpu.memory_space<vmem>>, %arg8: memref<2x128xf32, #tpu.memory_space<vmem>>) attributes {dimension_semantics = [#tpu.dimension_semantics<parallel>], iteration_bounds = array<i64: 1>, scalar_prefetch = 0 : i64, scratch_operands = 0 : i64, tpu.core_type = #tpu.core_type<tc>, window_params = [{transform_indices = @transform_0, window_bounds = array<i64: 2, 512>}, {pipeline_mode = #tpu.pipeline_mode<synchronous>, transform_indices = @transform_1, window_bounds = array<i64: 512, 128>}, {pipeline_mode = #tpu.pipeline_mode<synchronous>, transform_indices = @transform_2, window_bounds = array<i64: 1, 128>}, {pipeline_mode = #tpu.pipeline_mode<synchronous>, transform_indices = @transform_3, window_bounds = array<i64: 128, 128>}, {pipeline_mode = #tpu.pipeline_mode<synchronous>, transform_indices = @transform_4, window_bounds = array<i64: 1, 128>}, {pipeline_mode = #tpu.pipeline_mode<synchronous>, transform_indices = @transform_5, window_bounds = array<i64: 128, 128>}, {pipeline_mode = #tpu.pipeline_mode<synchronous>, transform_indices = @transform_6, window_bounds = array<i64: 1, 128>}, {transform_indices = @transform_7, window_bounds = array<i64: 2, 128>}]} {
    %c0 = arith.constant 0 : index
    %c0_0 = arith.constant 0 : index
    %0 = vector.load %arg1[%c0, %c0_0] : memref<2x512xbf16, #tpu.memory_space<vmem>>, vector<2x512xbf16>
    %c0_1 = arith.constant 0 : index
    %c0_2 = arith.constant 0 : index
    %1 = vector.load %arg2[%c0_1, %c0_2] : memref<512x128xbf16, #tpu.memory_space<vmem>>, vector<512x128xbf16>
    %cst = arith.constant dense<0.000000e+00> : vector<2x128xf32>
    %2 = tpu.matmul %0, %1, %cst {dimension_numbers = #tpu.dot_dimension_numbers<[1], [0], [0], [1], [0, 0, 1, 1], [], []>} : vector<2x512xbf16>, vector<512x128xbf16>, vector<2x128xf32> -> vector<2x128xf32>
    %c0_3 = arith.constant 0 : index
    %c0_4 = arith.constant 0 : index
    %3 = vector.load %arg3[%c0_3, %c0_4] : memref<1x128xf32, #tpu.memory_space<vmem>>, vector<1x128xf32>
    %4 = vector.broadcast %3 : vector<1x128xf32> to vector<2x128xf32>
    %5 = arith.addf %2, %4 : vector<2x128xf32>
    %cst_5 = arith.constant 0.000000e+00 : f32
    %6 = vector.broadcast %cst_5 : f32 to vector<2x128xf32>
    %7 = arith.maximumf %5, %6 : vector<2x128xf32>
    %8 = arith.truncf %7 : vector<2x128xf32> to vector<2x128xbf16>
    %c0_6 = arith.constant 0 : index
    %c0_7 = arith.constant 0 : index
    %9 = vector.load %arg4[%c0_6, %c0_7] : memref<128x128xbf16, #tpu.memory_space<vmem>>, vector<128x128xbf16>
    %cst_8 = arith.constant dense<0.000000e+00> : vector<2x128xf32>
    %10 = tpu.matmul %8, %9, %cst_8 {dimension_numbers = #tpu.dot_dimension_numbers<[1], [0], [0], [1], [0, 0, 1, 1], [], []>} : vector<2x128xbf16>, vector<128x128xbf16>, vector<2x128xf32> -> vector<2x128xf32>
    %c0_9 = arith.constant 0 : index
    %c0_10 = arith.constant 0 : index
    %11 = vector.load %arg5[%c0_9, %c0_10] : memref<1x128xf32, #tpu.memory_space<vmem>>, vector<1x128xf32>
    %12 = vector.broadcast %11 : vector<1x128xf32> to vector<2x128xf32>
    %13 = arith.addf %10, %12 : vector<2x128xf32>
    %cst_11 = arith.constant 0.000000e+00 : f32
    %14 = vector.broadcast %cst_11 : f32 to vector<2x128xf32>
    %15 = arith.maximumf %13, %14 : vector<2x128xf32>
    %16 = arith.truncf %15 : vector<2x128xf32> to vector<2x128xbf16>
    %c0_12 = arith.constant 0 : index
    %c0_13 = arith.constant 0 : index
    %17 = vector.load %arg6[%c0_12, %c0_13] : memref<128x128xbf16, #tpu.memory_space<vmem>>, vector<128x128xbf16>
    %cst_14 = arith.constant dense<0.000000e+00> : vector<2x128xf32>
    %18 = tpu.matmul %16, %17, %cst_14 {dimension_numbers = #tpu.dot_dimension_numbers<[1], [0], [0], [1], [0, 0, 1, 1], [], []>} : vector<2x128xbf16>, vector<128x128xbf16>, vector<2x128xf32> -> vector<2x128xf32>
    %c0_15 = arith.constant 0 : index
    %c0_16 = arith.constant 0 : index
    %19 = vector.load %arg7[%c0_15, %c0_16] : memref<1x128xf32, #tpu.memory_space<vmem>>, vector<1x128xf32>
    %20 = vector.broadcast %19 : vector<1x128xf32> to vector<2x128xf32>
    %21 = arith.addf %18, %20 : vector<2x128xf32>
    %c0_17 = arith.constant 0 : index
    %c0_18 = arith.constant 0 : index
    %22 = vector.load %arg8[%c0_17, %c0_18] : memref<2x128xf32, #tpu.memory_space<vmem>>, vector<2x128xf32>
    tpu.vector_store %arg8[%c0_17, %c0_18], %21 {strides = array<i32>} : memref<2x128xf32, #tpu.memory_space<vmem>>, vector<2x128xf32>,
    return
  }
  func.func @transform_0(%arg0: i32) -> (i32, i32) {
    %c0_i32 = arith.constant 0 : i32
    %c0_i32_0 = arith.constant 0 : i32
    return %arg0, %c0_i32 : i32, i32
  }
  func.func @transform_1(%arg0: i32) -> (i32, i32) {
    %c0_i32 = arith.constant 0 : i32
    %c0_i32_0 = arith.constant 0 : i32
    %c0_i32_1 = arith.constant 0 : i32
    return %c0_i32, %c0_i32_0 : i32, i32
  }
  func.func @transform_2(%arg0: i32) -> (i32, i32) {
    %c0_i32 = arith.constant 0 : i32
    %c0_i32_0 = arith.constant 0 : i32
    %c0_i32_1 = arith.constant 0 : i32
    return %c0_i32, %c0_i32_0 : i32, i32
  }
  func.func @transform_3(%arg0: i32) -> (i32, i32) {
    %c0_i32 = arith.constant 0 : i32
    %c0_i32_0 = arith.constant 0 : i32
    %c0_i32_1 = arith.constant 0 : i32
    return %c0_i32, %c0_i32_0 : i32, i32
  }
  func.func @transform_4(%arg0: i32) -> (i32, i32) {
    %c0_i32 = arith.constant 0 : i32
    %c0_i32_0 = arith.constant 0 : i32
    %c0_i32_1 = arith.constant 0 : i32
    return %c0_i32, %c0_i32_0 : i32, i32
  }
  func.func @transform_5(%arg0: i32) -> (i32, i32) {
    %c0_i32 = arith.constant 0 : i32
    %c0_i32_0 = arith.constant 0 : i32
    %c0_i32_1 = arith.constant 0 : i32
    return %c0_i32, %c0_i32_0 : i32, i32
  }
  func.func @transform_6(%arg0: i32) -> (i32, i32) {
    %c0_i32 = arith.constant 0 : i32
    %c0_i32_0 = arith.constant 0 : i32
    %c0_i32_1 = arith.constant 0 : i32
    return %c0_i32, %c0_i32_0 : i32, i32
  }
  func.func @transform_7(%arg0: i32) -> (i32, i32) {
    %c0_i32 = arith.constant 0 : i32
    %c0_i32_0 = arith.constant 0 : i32
    return %arg0, %c0_i32 : i32, i32
  }
}

</mosaic_0001>

<bundles_post_ra>
// kernel: lenet5_forward.3
= control target key start
LH: loop header
LB: loop body
LE: loop exit
PB: predicated region body
PF: predicated region fallthrough
CT: control target
= control target key end

     0   :  { %vm717_vm0 = vcmask 261120   ;;  %s3746_s1 = inlined_call_operand.vmem [shape: bf16[32,128], index: 1, kind: input, shape index: {}]   ;;  %s3747_s0 = inlined_call_operand.vmem [shape: bf16[1568,32], index: 0, kind: input, shape index: {}]   ;;  %s3748_s2 = inlined_call_operand.vmem [shape: f32[1,128], index: 2, kind: input, shape index: {}]   ;;  %s3749_s3 = inlined_call_operand.vmem [shape: f32[392,128], index: 3, kind: output, shape index: {}]  }
   0x1   :  { %v3103_v0 = vld [vmem:[%s3746_s1 + $0x8] sm:$0xff]  ;;  %v3102_v1 = vld [vmem:[%s3746_s1] sm:$0xff]  ;;  %v3054_v4 = vld [vmem:[%s3747_s0 + $0x190] sm:$0xff] }
   0x2   :  { %1018 = vmatpush.bf16.msra.mxu0 %v3103_v0  ;;  %3104 = vmatpush.bf16.msra.mxu1 %v3103_v0  ;;  %v3004_v2 = vld [vmem:[%s3747_s0] sm:$0xff]  ;;  %v3029_v3 = vld [vmem:[%s3747_s0 + $0xc8] sm:$0xff]  ;;  %v3079_v5 = vld [vmem:[%s3747_s0 + $0x258] sm:$0xff] }
   0x3   :  { %3105 = vmatpush.bf16.msra.mxu2 %v3103_v0  ;;  %3106 = vmatpush.bf16.msra.mxu3 %v3103_v0  ;;  %v3005_v6 = vld [vmem:[%s3747_s0 + $0x8] sm:$0xff]  ;;  %v3030_v7 = vld [vmem:[%s3747_s0 + $0xd0] sm:$0xff]  ;;  %v3055_v8 = vld [vmem:[%s3747_s0 + $0x198] sm:$0xff] }
   0x4   :  { %v3080_v9 = vld [vmem:[%s3747_s0 + $0x260] sm:$0xff]  ;;  %v3006_v10 = vld [vmem:[%s3747_s0 + $0x10] sm:$0xff]  ;;  %v3031_v11 = vld [vmem:[%s3747_s0 + $0xd8] sm:$0xff] }
   0x5   :  { %v3056_v12 = vld [vmem:[%s3747_s0 + $0x1a0] sm:$0xff]  ;;  %v3081_v13 = vld [vmem:[%s3747_s0 + $0x268] sm:$0xff]  ;;  %v3007_v14 = vld [vmem:[%s3747_s0 + $0x18] sm:$0xff] }
   0x6   :  { %1019 = vmatpush.bf16.msra.mxu0 %v3102_v1  ;;  %3107 = vmatpush.bf16.msra.mxu1 %v3102_v1  ;;  %v3032_v15 = vld [vmem:[%s3747_s0 + $0xe0] sm:$0xff]  ;;  %v3057_v16 = vld [vmem:[%s3747_s0 + $0x1a8] sm:$0xff]  ;;  %v3082_v17 = vld [vmem:[%s3747_s0 + $0x270] sm:$0xff] }
   0x7   :  { %3108 = vmatpush.bf16.msra.mxu2 %v3102_v1  ;;  %3109 = vmatpush.bf16.msra.mxu3 %v3102_v1  ;;  %v3008_v18 = vld [vmem:[%s3747_s0 + $0x20] sm:$0xff]  ;;  %v3033_v19 = vld [vmem:[%s3747_s0 + $0xe8] sm:$0xff]  ;;  %v3058_v20 = vld [vmem:[%s3747_s0 + $0x1b0] sm:$0xff] }
   0x8   :  { %v3083_v21 = vld [vmem:[%s3747_s0 + $0x278] sm:$0xff]  ;;  %v3009_v22 = vld [vmem:[%s3747_s0 + $0x28] sm:$0xff]  ;;  %v3034_v23 = vld [vmem:[%s3747_s0 + $0xf0] sm:$0xff] }
   0x9   :  { %2906 = vmatmul.msk.bf16.vlgmr.msra.gmra.mxu0 %vm717_vm0, %v3004_v2  ;;  %2931 = vmatmul.msk.bf16.vlgmr.msra.gmra.mxu1 %vm717_vm0, %v3029_v3  ;;  %v3059_v24 = vld [vmem:[%s3747_s0 + $0x1b8] sm:$0xff]  ;;  %v3084_v25 = vld [vmem:[%s3747_s0 + $0x280] sm:$0xff]  ;;  %v3010_v26 = vld [vmem:[%s3747_s0 + $0x30] sm:$0xff] }
   0xa   :  { %2956 = vmatmul.msk.bf16.vlgmr.msra.gmra.mxu2 %vm717_vm0, %v3054_v4  ;;  %2981 = vmatmul.msk.bf16.vlgmr.msra.gmra.mxu3 %vm717_vm0, %v3079_v5  ;;  %v3035_v27 = vld [vmem:[%s3747_s0 + $0xf8] sm:$0xff]  ;;  %v3060_v28 = vld [vmem:[%s3747_s0 + $0x1c0] sm:$0xff]  ;;  %v3085_v29 = vld [vmem:[%s3747_s0 + $0x288] sm:$0xff] }
   0xb   :  { %v3011_v30 = vld [vmem:[%s3747_s0 + $0x38] sm:$0xff]  ;;  %v3036_v31 = vld [vmem:[%s3747_s0 + $0x100] sm:$0xff]  ;;  %v3061_v32 = vld [vmem:[%s3747_s0 + $0x1c8] sm:$0xff] }
   0xc   :  { %v3086_v33 = vld [vmem:[%s3747_s0 + $0x290] sm:$0xff]  ;;  %v3012_v34 = vld [vmem:[%s3747_s0 + $0x40] sm:$0xff]  ;;  %v3037_v35 = vld [vmem:[%s3747_s0 + $0x108] sm:$0xff] }
   0xd   :  { %v3062_v38 = vld [vmem:[%s3747_s0 + $0x1d0] sm:$0xff]  ;;  %v3087_v39 = vld [vmem:[%s3747_s0 + $0x298] sm:$0xff]  ;;  %v3013_v46 = vld [vmem:[%s3747_s0 + $0x48] sm:$0xff] }
   0xe   :  { %v3038_v47 = vld [vmem:[%s3747_s0 + $0x110] sm:$0xff]  ;;  %v3063_v52 = vld [vmem:[%s3747_s0 + $0x1d8] sm:$0xff]  ;;  %v3088_v53 = vld [vmem:[%s3747_s0 + $0x2a0] sm:$0xff] }
   0xf   :  { %v3014_v62 = vld [vmem:[%s3747_s0 + $0x50] sm:$0xff]  ;;  %v3039_v63 = vld [vmem:[%s3747_s0 + $0x118] sm:$0xff]  ;;  %v3064_v4 = vld [vmem:[%s3747_s0 + $0x1e0] sm:$0xff] }
  0x10   :  { %v3089_v5 = vld [vmem:[%s3747_s0 + $0x2a8] sm:$0xff] }
  0x19   :  { %2907 = vmatmul.msk.bf16.gmra.mxu0 %vm717_vm0, %v3005_v6  ;;  %2932 = vmatmul.msk.bf16.gmra.mxu1 %vm717_vm0, %v3030_v7  ;;  %v3317_v6 = vld [vmem:[%s3748_s2] ss:$0 sm:$0xff] }
  0x1a   :  { %2957 = vmatmul.msk.bf16.gmra.mxu2 %vm717_vm0, %v3055_v8  ;;  %2982 = vmatmul.msk.bf16.gmra.mxu3 %vm717_vm0, %v3080_v9 }
  0x29   :  { %2908 = vmatmul.msk.bf16.gmra.mxu0 %vm717_vm0, %v3006_v10  ;;  %2933 = vmatmul.msk.bf16.gmra.mxu1 %vm717_vm0, %v3031_v11 }
  0x2a   :  { %2958 = vmatmul.msk.bf16.gmra.mxu2 %vm717_vm0, %v3056_v12  ;;  %2983 = vmatmul.msk.bf16.gmra.mxu3 %vm717_vm0, %v3081_v13 }
  0x39   :  { %2909 = vmatmul.msk.bf16.gmra.mxu0 %vm717_vm0, %v3007_v14  ;;  %2934 = vmatmul.msk.bf16.gmra.mxu1 %vm717_vm0, %v3032_v15 }
  0x3a   :  { %2959 = vmatmul.msk.bf16.gmra.mxu2 %vm717_vm0, %v3057_v16  ;;  %2984 = vmatmul.msk.bf16.gmra.mxu3 %vm717_vm0, %v3082_v17 }
  0x49   :  { %2910 = vmatmul.msk.bf16.gmra.mxu0 %vm717_vm0, %v3008_v18  ;;  %2935 = vmatmul.msk.bf16.gmra.mxu1 %vm717_vm0, %v3033_v19 }
  0x4a   :  { %2960 = vmatmul.msk.bf16.gmra.mxu2 %vm717_vm0, %v3058_v20  ;;  %2985 = vmatmul.msk.bf16.gmra.mxu3 %vm717_vm0, %v3083_v21 }
  0x59   :  { %2911 = vmatmul.msk.bf16.gmra.mxu0 %vm717_vm0, %v3009_v22  ;;  %2936 = vmatmul.msk.bf16.gmra.mxu1 %vm717_vm0, %v3034_v23 }
  0x5a   :  { %2961 = vmatmul.msk.bf16.gmra.mxu2 %vm717_vm0, %v3059_v24  ;;  %2986 = vmatmul.msk.bf16.gmra.mxu3 %vm717_vm0, %v3084_v25  ;;  %v3015_v25 = vld [vmem:[%s3747_s0 + $0x58] sm:$0xff] }
  0x69   :  { %2912 = vmatmul.msk.bf16.gmra.mxu0 %vm717_vm0, %v3010_v26  ;;  %2937 = vmatmul.msk.bf16.gmra.mxu1 %vm717_vm0, %v3035_v27  ;;  %v3040_v26 = vld [vmem:[%s3747_s0 + $0x120] sm:$0xff] }
  0x6a   :  { %2962 = vmatmul.msk.bf16.gmra.mxu2 %vm717_vm0, %v3060_v28  ;;  %2987 = vmatmul.msk.bf16.gmra.mxu3 %vm717_vm0, %v3085_v29 }
  0x79   :  { %2913 = vmatmul.msk.bf16.gmra.mxu0 %vm717_vm0, %v3011_v30  ;;  %2938 = vmatmul.msk.bf16.gmra.mxu1 %vm717_vm0, %v3036_v31  ;;  %v3065_v31 = vld [vmem:[%s3747_s0 + $0x1e8] sm:$0xff] }
  0x7a   :  { %2963 = vmatmul.msk.bf16.gmra.mxu2 %vm717_vm0, %v3061_v32  ;;  %2988 = vmatmul.msk.bf16.gmra.mxu3 %vm717_vm0, %v3086_v33  ;;  %v3090_v32 = vld [vmem:[%s3747_s0 + $0x2b0] sm:$0xff] }
  0x86   :  { %v3272_v36 = vpop.f32.mrf.mxu0  ;;  %v1146_v37 = vpop.f32.mrf.mxu1 }
  0x89   :  { %2914 = vmatmul.msk.bf16.gmra.mxu0 %vm717_vm0, %v3012_v34  ;;  %2939 = vmatmul.msk.bf16.gmra.mxu1 %vm717_vm0, %v3037_v35 }
  0x8a   :  { %2964 = vmatmul.msk.bf16.gmra.mxu2 %vm717_vm0, %v3062_v38  ;;  %2989 = vmatmul.msk.bf16.gmra.mxu3 %vm717_vm0, %v3087_v39 }
  0x8d   :  { %v3284_v40 = vpop.f32.mrf.mxu2  ;;  %v1396_v41 = vpop.f32.mrf.mxu3 }
  0x8e   :  { %v1023_v42 = vpop.f32.mrf.mxu0  ;;  %v1148_v43 = vpop.f32.mrf.mxu1 }
  0x8f   :  { %v1724_v44 = vmax.f32 %v1023_v42, %v1146_v37 }
  0x91   :  { %1732 = vst [vmem:[#allocation3 + $0x8] sm:$0xff] %v1724_v44 }
  0x95   :  { %v1273_v45 = vpop.f32.mrf.mxu2  ;;  %v1398_v48 = vpop.f32.mrf.mxu3 }
  0x96   :  { %v1922_v49 = vmax.f32 %v1273_v45, %v1396_v41  ;;  %v1026_v50 = vpop.f32.mrf.mxu0  ;;  %v1151_v51 = vpop.f32.mrf.mxu1 }
  0x97   :  { %v1725_v54 = vmax.f32 %v1026_v50, %v1148_v43 }
  0x98   :  { %1930 = vst [vmem:[#allocation3 + $0x1a0] sm:$0xff] %v1922_v49 }
  0x99   :  { %1733 = vst [vmem:[#allocation3 + $0x10] sm:$0xff] %v1725_v54  ;;  %2915 = vmatmul.msk.bf16.gmra.mxu0 %vm717_vm0, %v3013_v46  ;;  %2940 = vmatmul.msk.bf16.gmra.mxu1 %vm717_vm0, %v3038_v47  ;;  %v3041_v54 = vld [vmem:[%s3747_s0 + $0x128] sm:$0xff] }
  0x9a   :  { %2965 = vmatmul.msk.bf16.gmra.mxu2 %vm717_vm0, %v3063_v52  ;;  %2990 = vmatmul.msk.bf16.gmra.mxu3 %vm717_vm0, %v3088_v53  ;;  %v3016_v53 = vld [vmem:[%s3747_s0 + $0x60] sm:$0xff] }
  0x9d   :  { %v1276_v55 = vpop.f32.mrf.mxu2  ;;  %v1401_v56 = vpop.f32.mrf.mxu3 }
  0x9e   :  { %v1923_v57 = vmax.f32 %v1276_v55, %v1398_v48  ;;  %v1028_v58 = vpop.f32.mrf.mxu0  ;;  %v1153_v59 = vpop.f32.mrf.mxu1 }
  0x9f   :  { %v1726_v60 = vmax.f32 %v1028_v58, %v1151_v51 }
  0xa0   :  { %1931 = vst [vmem:[#allocation3 + $0x1a8] sm:$0xff] %v1923_v57 }
  0xa1   :  { %1734 = vst [vmem:[#allocation3 + $0x18] sm:$0xff] %v1726_v60  ;;  %v3091_v60 = vld [vmem:[%s3747_s0 + $0x2b8] sm:$0xff] }
  0xa5   :  { %v1278_v61 = vpop.f32.mrf.mxu2  ;;  %v1403_v0 = vpop.f32.mrf.mxu3 }
  0xa6   :  { %v1924_v1 = vmax.f32 %v1278_v61, %v1401_v56  ;;  %v1031_v2 = vpop.f32.mrf.mxu0  ;;  %v1156_v3 = vpop.f32.mrf.mxu1 }
  0xa7   :  { %v1727_v7 = vmax.f32 %v1031_v2, %v1153_v59  ;;  %v3066_v59 = vld [vmem:[%s3747_s0 + $0x1f0] sm:$0xff] }
  0xa8   :  { %v2102_v8 = vld [vmem:[#allocation3 + $0x10] ss:$2 sm:$0xff]  ;;  %v2116_v9 = vld [vmem:[#allocation3 + $0x11] ss:$2 sm:$0xff]  ;;  %1932 = vst [vmem:[#allocation3 + $0x1b0] sm:$0xff] %v1924_v1 }
  0xa9   :  { %v2128_v10 = vmax.f32 %v2102_v8, %v2116_v9  ;;  %1735 = vst [vmem:[#allocation3 + $0x20] sm:$0xff] %v1727_v7  ;;  %2916 = vmatmul.msk.bf16.gmra.mxu0 %vm717_vm0, %v3014_v62  ;;  %2941 = vmatmul.msk.bf16.gmra.mxu1 %vm717_vm0, %v3039_v63 }
  0xaa   :  { %2966 = vmatmul.msk.bf16.gmra.mxu2 %vm717_vm0, %v3064_v4  ;;  %2991 = vmatmul.msk.bf16.gmra.mxu3 %vm717_vm0, %v3089_v5 }
  0xab   :  { %v2138_v11 = vadd.f32 %v3317_v6, %v2128_v10 }
  0xad   :  { %v2145_v12 = vmax.f32 %v2138_v11, 0.0  ;;  %v1281_v13 = vpop.f32.mrf.mxu2  ;;  %v1406_v14 = vpop.f32.mrf.mxu3 }
  0xae   :  { %v1925_v15 = vmax.f32 %v1281_v13, %v1403_v0  ;;  %v1033_v16 = vpop.f32.mrf.mxu0  ;;  %v1158_v17 = vpop.f32.mrf.mxu1 }
  0xaf   :  { %2152 = vst [vmem:[%s3749_s3 + $0x8] sm:$0xff] %v2145_v12  ;;  %v2307_v18 = vld [vmem:[#allocation3 + $0x1a8] ss:$2 sm:$0xff]  ;;  %v2321_v19 = vld [vmem:[#allocation3 + $0x1a9] ss:$2 sm:$0xff]  ;;  %v1728_v20 = vmax.f32 %v1033_v16, %v1156_v3 }
  0xb0   :  { %v2332_v21 = vmax.f32 %v2307_v18, %v2321_v19  ;;  %1933 = vst [vmem:[#allocation3 + $0x1b8] sm:$0xff] %v1925_v15  ;;  %v3017_v16 = vld [vmem:[%s3747_s0 + $0x68] sm:$0xff] }
  0xb1   :  { %1736 = vst [vmem:[#allocation3 + $0x28] sm:$0xff] %v1728_v20 }
  0xb2   :  { %v2339_v22 = vadd.f32 %v3317_v6, %v2332_v21 }
  0xb4   :  { %v2346_v23 = vmax.f32 %v2339_v22, 0.0  ;;  %v3067_v22 = vld [vmem:[%s3747_s0 + $0x1f8] sm:$0xff] }
  0xb5   :  { %v1283_v24 = vpop.f32.mrf.mxu2  ;;  %v1408_v27 = vpop.f32.mrf.mxu3 }
  0xb6   :  { %2353 = vst [vmem:[%s3749_s3 + $0xd4] sm:$0xff] %v2346_v23  ;;  %v1926_v28 = vmax.f32 %v1283_v24, %v1406_v14  ;;  %v1036_v29 = vpop.f32.mrf.mxu0  ;;  %v1161_v30 = vpop.f32.mrf.mxu1  ;;  %v3092_v23 = vld [vmem:[%s3747_s0 + $0x2c0] sm:$0xff] }
  0xb7   :  { %v1729_v33 = vmax.f32 %v1036_v29, %v1158_v17  ;;  %v3042_v17 = vld [vmem:[%s3747_s0 + $0x130] sm:$0xff] }
  0xb8   :  { %v2104_v34 = vld [vmem:[#allocation3 + $0x20] ss:$2 sm:$0xff]  ;;  %v2118_v35 = vld [vmem:[#allocation3 + $0x21] ss:$2 sm:$0xff]  ;;  %1934 = vst [vmem:[#allocation3 + $0x1c0] sm:$0xff] %v1926_v28 }
  0xb9   :  { %v2129_v37 = vmax.f32 %v2104_v34, %v2118_v35  ;;  %1737 = vst [vmem:[#allocation3 + $0x30] sm:$0xff] %v1729_v33  ;;  %2917 = vmatmul.msk.bf16.gmra.mxu0 %vm717_vm0, %v3015_v25  ;;  %2942 = vmatmul.msk.bf16.gmra.mxu1 %vm717_vm0, %v3040_v26 }
  0xba   :  { %2967 = vmatmul.msk.bf16.gmra.mxu2 %vm717_vm0, %v3065_v31  ;;  %2992 = vmatmul.msk.bf16.gmra.mxu3 %vm717_vm0, %v3090_v32 }
  0xbb   :  { %v2139_v38 = vadd.f32 %v3317_v6, %v2129_v37 }
  0xbd   :  { %v2146_v39 = vmax.f32 %v2139_v38, 0.0  ;;  %v1286_v41 = vpop.f32.mrf.mxu2  ;;  %v1411_v42 = vpop.f32.mrf.mxu3 }
  0xbe   :  { %v1951_v43 = vmax.f32 %v1286_v41, %v1408_v27  ;;  %v1038_v44 = vpop.f32.mrf.mxu0  ;;  %v1163_v45 = vpop.f32.mrf.mxu1 }
  0xbf   :  { %2153 = vst [vmem:[%s3749_s3 + $0x10] sm:$0xff] %v2146_v39  ;;  %v2309_v46 = vld [vmem:[#allocation3 + $0x1b8] ss:$2 sm:$0xff]  ;;  %v2323_v47 = vld [vmem:[#allocation3 + $0x1b9] ss:$2 sm:$0xff]  ;;  %v1730_v48 = vmax.f32 %v1038_v44, %v1161_v30  ;;  %v3018_v44 = vld [vmem:[%s3747_s0 + $0x70] sm:$0xff] }
  0xc0   :  { %v2333_v49 = vmax.f32 %v2309_v46, %v2323_v47  ;;  %1959 = vst [vmem:[#allocation3 + $0x1c8] sm:$0xff] %v1951_v43 }
  0xc1   :  { %1738 = vst [vmem:[#allocation3 + $0x38] sm:$0xff] %v1730_v48 }
  0xc2   :  { %v2340_v50 = vadd.f32 %v3317_v6, %v2333_v49 }
  0xc4   :  { %v2347_v51 = vmax.f32 %v2340_v50, 0.0  ;;  %v3068_v50 = vld [vmem:[%s3747_s0 + $0x200] sm:$0xff] }
  0xc5   :  { %v1288_v52 = vpop.f32.mrf.mxu2  ;;  %v1413_v55 = vpop.f32.mrf.mxu3 }
  0xc6   :  { %2354 = vst [vmem:[%s3749_s3 + $0xdc] sm:$0xff] %v2347_v51  ;;  %v1952_v56 = vmax.f32 %v1288_v52, %v1411_v42  ;;  %v1041_v57 = vpop.f32.mrf.mxu0  ;;  %v1166_v58 = vpop.f32.mrf.mxu1  ;;  %v3093_v51 = vld [vmem:[%s3747_s0 + $0x2c8] sm:$0xff] }
  0xc7   :  { %v1755_v61 = vmax.f32 %v1041_v57, %v1163_v45  ;;  %v3043_v45 = vld [vmem:[%s3747_s0 + $0x138] sm:$0xff] }
  0xc8   :  { %v2106_v62 = vld [vmem:[#allocation3 + $0x30] ss:$2 sm:$0xff]  ;;  %v2120_v63 = vld [vmem:[#allocation3 + $0x31] ss:$2 sm:$0xff]  ;;  %1960 = vst [vmem:[#allocation3 + $0x1d0] sm:$0xff] %v1952_v56 }
  0xc9   :  { %v2130_v0 = vmax.f32 %v2106_v62, %v2120_v63  ;;  %1763 = vst [vmem:[#allocation3 + $0x40] sm:$0xff] %v1755_v61  ;;  %2918 = vmatmul.msk.bf16.gmra.mxu0 %vm717_vm0, %v3016_v53  ;;  %2943 = vmatmul.msk.bf16.gmra.mxu1 %vm717_vm0, %v3041_v54 }
  0xca   :  { %2968 = vmatmul.msk.bf16.gmra.mxu2 %vm717_vm0, %v3066_v59  ;;  %2993 = vmatmul.msk.bf16.gmra.mxu3 %vm717_vm0, %v3091_v60 }
  0xcb   :  { %v2140_v1 = vadd.f32 %v3317_v6, %v2130_v0 }
  0xcd   :  { %v2147_v2 = vmax.f32 %v2140_v1, 0.0  ;;  %v1291_v3 = vpop.f32.mrf.mxu2  ;;  %v1416_v4 = vpop.f32.mrf.mxu3 }
  0xce   :  { %v1953_v5 = vmax.f32 %v1291_v3, %v1413_v55  ;;  %v1043_v7 = vpop.f32.mrf.mxu0  ;;  %v1168_v8 = vpop.f32.mrf.mxu1 }
  0xcf   :  { %2154 = vst [vmem:[%s3749_s3 + $0x18] sm:$0xff] %v2147_v2  ;;  %v2311_v9 = vld [vmem:[#allocation3 + $0x1c8] ss:$2 sm:$0xff]  ;;  %v2325_v10 = vld [vmem:[#allocation3 + $0x1c9] ss:$2 sm:$0xff]  ;;  %v1756_v11 = vmax.f32 %v1043_v7, %v1166_v58  ;;  %v3019_v7 = vld [vmem:[%s3747_s0 + $0x78] sm:$0xff] }
  0xd0   :  { %v2334_v12 = vmax.f32 %v2311_v9, %v2325_v10  ;;  %1961 = vst [vmem:[#allocation3 + $0x1d8] sm:$0xff] %v1953_v5 }
  0xd1   :  { %1764 = vst [vmem:[#allocation3 + $0x48] sm:$0xff] %v1756_v11 }
  0xd2   :  { %v2341_v13 = vadd.f32 %v3317_v6, %v2334_v12 }
  0xd4   :  { %v2348_v14 = vmax.f32 %v2341_v13, 0.0  ;;  %v3069_v13 = vld [vmem:[%s3747_s0 + $0x208] sm:$0xff] }
  0xd5   :  { %v1293_v15 = vpop.f32.mrf.mxu2  ;;  %v1418_v18 = vpop.f32.mrf.mxu3 }
  0xd6   :  { %2355 = vst [vmem:[%s3749_s3 + $0xe4] sm:$0xff] %v2348_v14  ;;  %v1954_v19 = vmax.f32 %v1293_v15, %v1416_v4  ;;  %v1046_v20 = vpop.f32.mrf.mxu0  ;;  %v1171_v21 = vpop.f32.mrf.mxu1  ;;  %v3094_v14 = vld [vmem:[%s3747_s0 + $0x2d0] sm:$0xff] }
  0xd7   :  { %v1757_v24 = vmax.f32 %v1046_v20, %v1168_v8  ;;  %v3044_v8 = vld [vmem:[%s3747_s0 + $0x140] sm:$0xff] }
  0xd8   :  { %v2108_v25 = vld [vmem:[#allocation3 + $0x40] ss:$2 sm:$0xff]  ;;  %v2122_v26 = vld [vmem:[#allocation3 + $0x41] ss:$2 sm:$0xff]  ;;  %1962 = vst [vmem:[#allocation3 + $0x1e0] sm:$0xff] %v1954_v19 }
  0xd9   :  { %v2131_v27 = vmax.f32 %v2108_v25, %v2122_v26  ;;  %1765 = vst [vmem:[#allocation3 + $0x50] sm:$0xff] %v1757_v24  ;;  %2919 = vmatmul.msk.bf16.gmra.mxu0 %vm717_vm0, %v3017_v16  ;;  %2944 = vmatmul.msk.bf16.gmra.mxu1 %vm717_vm0, %v3042_v17 }
  0xda   :  { %2969 = vmatmul.msk.bf16.gmra.mxu2 %vm717_vm0, %v3067_v22  ;;  %2994 = vmatmul.msk.bf16.gmra.mxu3 %vm717_vm0, %v3092_v23 }
  0xdb   :  { %v2141_v28 = vadd.f32 %v3317_v6, %v2131_v27 }
  0xdd   :  { %v2148_v29 = vmax.f32 %v2141_v28, 0.0  ;;  %v1296_v30 = vpop.f32.mrf.mxu2  ;;  %v1421_v31 = vpop.f32.mrf.mxu3 }
  0xde   :  { %v1955_v32 = vmax.f32 %v1296_v30, %v1418_v18  ;;  %v1048_v33 = vpop.f32.mrf.mxu0  ;;  %v1173_v34 = vpop.f32.mrf.mxu1 }
  0xdf   :  { %2155 = vst [vmem:[%s3749_s3 + $0x20] sm:$0xff] %v2148_v29  ;;  %v2313_v35 = vld [vmem:[#allocation3 + $0x1d8] ss:$2 sm:$0xff]  ;;  %v2327_v37 = vld [vmem:[#allocation3 + $0x1d9] ss:$2 sm:$0xff]  ;;  %v1758_v38 = vmax.f32 %v1048_v33, %v1171_v21 }
  0xe0   :  { %v2335_v39 = vmax.f32 %v2313_v35, %v2327_v37  ;;  %1963 = vst [vmem:[#allocation3 + $0x1e8] sm:$0xff] %v1955_v32  ;;  %v3020_v33 = vld [vmem:[%s3747_s0 + $0x80] sm:$0xff] }
  0xe1   :  { %1766 = vst [vmem:[#allocation3 + $0x58] sm:$0xff] %v1758_v38 }
  0xe2   :  { %v2342_v41 = vadd.f32 %v3317_v6, %v2335_v39 }
  0xe4   :  { %v2349_v42 = vmax.f32 %v2342_v41, 0.0  ;;  %v3070_v41 = vld [vmem:[%s3747_s0 + $0x210] sm:$0xff] }
  0xe5   :  { %v1298_v43 = vpop.f32.mrf.mxu2  ;;  %v1423_v46 = vpop.f32.mrf.mxu3 }
  0xe6   :  { %2356 = vst [vmem:[%s3749_s3 + $0xec] sm:$0xff] %v2349_v42  ;;  %v1956_v47 = vmax.f32 %v1298_v43, %v1421_v31  ;;  %v1051_v48 = vpop.f32.mrf.mxu0  ;;  %v1176_v49 = vpop.f32.mrf.mxu1  ;;  %v3095_v42 = vld [vmem:[%s3747_s0 + $0x2d8] sm:$0xff] }
  0xe7   :  { %v1759_v52 = vmax.f32 %v1051_v48, %v1173_v34  ;;  %v3045_v34 = vld [vmem:[%s3747_s0 + $0x148] sm:$0xff] }
  0xe8   :  { %v2110_v53 = vld [vmem:[#allocation3 + $0x50] ss:$2 sm:$0xff]  ;;  %v2124_v54 = vld [vmem:[#allocation3 + $0x51] ss:$2 sm:$0xff]  ;;  %1964 = vst [vmem:[#allocation3 + $0x1f0] sm:$0xff] %v1956_v47 }
  0xe9   :  { %v2132_v55 = vmax.f32 %v2110_v53, %v2124_v54  ;;  %1767 = vst [vmem:[#allocation3 + $0x60] sm:$0xff] %v1759_v52  ;;  %2920 = vmatmul.msk.bf16.gmra.mxu0 %vm717_vm0, %v3018_v44  ;;  %2945 = vmatmul.msk.bf16.gmra.mxu1 %vm717_vm0, %v3043_v45 }
  0xea   :  { %2970 = vmatmul.msk.bf16.gmra.mxu2 %vm717_vm0, %v3068_v50  ;;  %2995 = vmatmul.msk.bf16.gmra.mxu3 %vm717_vm0, %v3093_v51 }
  0xeb   :  { %v2142_v56 = vadd.f32 %v3317_v6, %v2132_v55 }
  0xed   :  { %v2149_v57 = vmax.f32 %v2142_v56, 0.0  ;;  %v1301_v58 = vpop.f32.mrf.mxu2  ;;  %v1426_v59 = vpop.f32.mrf.mxu3 }
  0xee   :  { %v1957_v60 = vmax.f32 %v1301_v58, %v1423_v46  ;;  %v1053_v61 = vpop.f32.mrf.mxu0  ;;  %v1178_v62 = vpop.f32.mrf.mxu1 }
  0xef   :  { %2156 = vst [vmem:[%s3749_s3 + $0x28] sm:$0xff] %v2149_v57  ;;  %v2315_v63 = vld [vmem:[#allocation3 + $0x1e8] ss:$2 sm:$0xff]  ;;  %v2329_v0 = vld [vmem:[#allocation3 + $0x1e9] ss:$2 sm:$0xff]  ;;  %v1760_v1 = vmax.f32 %v1053_v61, %v1176_v49 }
  0xf0   :  { %v2336_v2 = vmax.f32 %v2315_v63, %v2329_v0  ;;  %1965 = vst [vmem:[#allocation3 + $0x1f8] sm:$0xff] %v1957_v60  ;;  %v3021_v61 = vld [vmem:[%s3747_s0 + $0x88] sm:$0xff] }
  0xf1   :  { %1768 = vst [vmem:[#allocation3 + $0x68] sm:$0xff] %v1760_v1 }
  0xf2   :  { %v2343_v3 = vadd.f32 %v3317_v6, %v2336_v2 }
  0xf4   :  { %v2350_v4 = vmax.f32 %v2343_v3, 0.0  ;;  %v3071_v3 = vld [vmem:[%s3747_s0 + $0x218] sm:$0xff] }
  0xf5   :  { %v1303_v5 = vpop.f32.mrf.mxu2  ;;  %v1428_v9 = vpop.f32.mrf.mxu3 }
  0xf6   :  { %2357 = vst [vmem:[%s3749_s3 + $0xf4] sm:$0xff] %v2350_v4  ;;  %v1958_v10 = vmax.f32 %v1303_v5, %v1426_v59  ;;  %v1056_v11 = vpop.f32.mrf.mxu0  ;;  %v1181_v12 = vpop.f32.mrf.mxu1  ;;  %v3096_v4 = vld [vmem:[%s3747_s0 + $0x2e0] sm:$0xff] }
  0xf7   :  { %v1761_v15 = vmax.f32 %v1056_v11, %v1178_v62  ;;  %v3046_v62 = vld [vmem:[%s3747_s0 + $0x150] sm:$0xff] }
  0xf8   :  { %v2112_v16 = vld [vmem:[#allocation3 + $0x60] ss:$2 sm:$0xff]  ;;  %v2126_v17 = vld [vmem:[#allocation3 + $0x61] ss:$2 sm:$0xff]  ;;  %1966 = vst [vmem:[#allocation3 + $0x200] sm:$0xff] %v1958_v10 }
  0xf9   :  { %v2133_v18 = vmax.f32 %v2112_v16, %v2126_v17  ;;  %1769 = vst [vmem:[#allocation3 + $0x70] sm:$0xff] %v1761_v15  ;;  %2921 = vmatmul.msk.bf16.gmra.mxu0 %vm717_vm0, %v3019_v7  ;;  %2946 = vmatmul.msk.bf16.gmra.mxu1 %vm717_vm0, %v3044_v8 }
  0xfa   :  { %2971 = vmatmul.msk.bf16.gmra.mxu2 %vm717_vm0, %v3069_v13  ;;  %2996 = vmatmul.msk.bf16.gmra.mxu3 %vm717_vm0, %v3094_v14 }
  0xfb   :  { %v2143_v19 = vadd.f32 %v3317_v6, %v2133_v18 }
  0xfd   :  { %v2150_v20 = vmax.f32 %v2143_v19, 0.0  ;;  %v1306_v21 = vpop.f32.mrf.mxu2  ;;  %v1431_v22 = vpop.f32.mrf.mxu3 }
  0xfe   :  { %v1983_v23 = vmax.f32 %v1306_v21, %v1428_v9  ;;  %v1058_v24 = vpop.f32.mrf.mxu0  ;;  %v1183_v25 = vpop.f32.mrf.mxu1 }
  0xff   :  { %2157 = vst [vmem:[%s3749_s3 + $0x30] sm:$0xff] %v2150_v20  ;;  %v2359_v26 = vld [vmem:[#allocation3 + $0x1f8] ss:$2 sm:$0xff]  ;;  %v2373_v27 = vld [vmem:[#allocation3 + $0x1f9] ss:$2 sm:$0xff]  ;;  %v1762_v28 = vmax.f32 %v1058_v24, %v1181_v12  ;;  %v3022_v24 = vld [vmem:[%s3747_s0 + $0x90] sm:$0xff] }
 0x100   :  { %v2386_v29 = vmax.f32 %v2359_v26, %v2373_v27  ;;  %1991 = vst [vmem:[#allocation3 + $0x208] sm:$0xff] %v1983_v23 }
 0x101   :  { %1770 = vst [vmem:[#allocation3 + $0x78] sm:$0xff] %v1762_v28 }
 0x102   :  { %v2393_v30 = vadd.f32 %v3317_v6, %v2386_v29 }
 0x104   :  { %v2400_v31 = vmax.f32 %v2393_v30, 0.0  ;;  %v3072_v30 = vld [vmem:[%s3747_s0 + $0x220] sm:$0xff] }
 0x105   :  { %v1308_v32 = vpop.f32.mrf.mxu2  ;;  %v1433_v35 = vpop.f32.mrf.mxu3 }
 0x106   :  { %2407 = vst [vmem:[%s3749_s3 + $0xfc] sm:$0xff] %v2400_v31  ;;  %v1984_v37 = vmax.f32 %v1308_v32, %v1431_v22  ;;  %v1061_v38 = vpop.f32.mrf.mxu0  ;;  %v1186_v39 = vpop.f32.mrf.mxu1  ;;  %v3097_v31 = vld [vmem:[%s3747_s0 + $0x2e8] sm:$0xff] }
 0x107   :  { %v1787_v43 = vmax.f32 %v1061_v38, %v1183_v25  ;;  %v3047_v25 = vld [vmem:[%s3747_s0 + $0x158] sm:$0xff] }
 0x108   :  { %v2159_v44 = vld [vmem:[#allocation3 + $0x70] ss:$2 sm:$0xff]  ;;  %v2173_v45 = vld [vmem:[#allocation3 + $0x71] ss:$2 sm:$0xff]  ;;  %1992 = vst [vmem:[#allocation3 + $0x210] sm:$0xff] %v1984_v37 }
 0x109   :  { %v2186_v46 = vmax.f32 %v2159_v44, %v2173_v45  ;;  %1795 = vst [vmem:[#allocation3 + $0x80] sm:$0xff] %v1787_v43  ;;  %2922 = vmatmul.msk.bf16.gmra.mxu0 %vm717_vm0, %v3020_v33  ;;  %2947 = vmatmul.msk.bf16.gmra.mxu1 %vm717_vm0, %v3045_v34 }
 0x10a   :  { %2972 = vmatmul.msk.bf16.gmra.mxu2 %vm717_vm0, %v3070_v41  ;;  %2997 = vmatmul.msk.bf16.gmra.mxu3 %vm717_vm0, %v3095_v42 }
 0x10b   :  { %v2193_v47 = vadd.f32 %v3317_v6, %v2186_v46 }
 0x10d   :  { %v2200_v48 = vmax.f32 %v2193_v47, 0.0  ;;  %v1311_v49 = vpop.f32.mrf.mxu2  ;;  %v1436_v50 = vpop.f32.mrf.mxu3 }
 0x10e   :  { %v1985_v51 = vmax.f32 %v1311_v49, %v1433_v35  ;;  %v1063_v52 = vpop.f32.mrf.mxu0  ;;  %v1188_v53 = vpop.f32.mrf.mxu1 }
 0x10f   :  { %2207 = vst [vmem:[%s3749_s3 + $0x38] sm:$0xff] %v2200_v48  ;;  %v2361_v54 = vld [vmem:[#allocation3 + $0x208] ss:$2 sm:$0xff]  ;;  %v2375_v55 = vld [vmem:[#allocation3 + $0x209] ss:$2 sm:$0xff]  ;;  %v1788_v56 = vmax.f32 %v1063_v52, %v1186_v39  ;;  %v3023_v52 = vld [vmem:[%s3747_s0 + $0x98] sm:$0xff] }
 0x110   :  { %v2387_v57 = vmax.f32 %v2361_v54, %v2375_v55  ;;  %1993 = vst [vmem:[#allocation3 + $0x218] sm:$0xff] %v1985_v51 }
 0x111   :  { %1796 = vst [vmem:[#allocation3 + $0x88] sm:$0xff] %v1788_v56 }
 0x112   :  { %v2394_v58 = vadd.f32 %v3317_v6, %v2387_v57 }
 0x114   :  { %v2401_v59 = vmax.f32 %v2394_v58, 0.0  ;;  %v3073_v58 = vld [vmem:[%s3747_s0 + $0x228] sm:$0xff] }
 0x115   :  { %v1313_v60 = vpop.f32.mrf.mxu2  ;;  %v1438_v63 = vpop.f32.mrf.mxu3 }
 0x116   :  { %2408 = vst [vmem:[%s3749_s3 + $0x104] sm:$0xff] %v2401_v59  ;;  %v1986_v0 = vmax.f32 %v1313_v60, %v1436_v50  ;;  %v1066_v1 = vpop.f32.mrf.mxu0  ;;  %v1191_v2 = vpop.f32.mrf.mxu1  ;;  %v3098_v59 = vld [vmem:[%s3747_s0 + $0x2f0] sm:$0xff] }
 0x117   :  { %v1789_v5 = vmax.f32 %v1066_v1, %v1188_v53  ;;  %v3048_v53 = vld [vmem:[%s3747_s0 + $0x160] sm:$0xff] }
 0x118   :  { %v2161_v7 = vld [vmem:[#allocation3 + $0x80] ss:$2 sm:$0xff]  ;;  %v2175_v8 = vld [vmem:[#allocation3 + $0x81] ss:$2 sm:$0xff]  ;;  %1994 = vst [vmem:[#allocation3 + $0x220] sm:$0xff] %v1986_v0 }
 0x119   :  { %v2187_v9 = vmax.f32 %v2161_v7, %v2175_v8  ;;  %1797 = vst [vmem:[#allocation3 + $0x90] sm:$0xff] %v1789_v5  ;;  %2923 = vmatmul.msk.bf16.gmra.mxu0 %vm717_vm0, %v3021_v61  ;;  %2948 = vmatmul.msk.bf16.gmra.mxu1 %vm717_vm0, %v3046_v62 }
 0x11a   :  { %2973 = vmatmul.msk.bf16.gmra.mxu2 %vm717_vm0, %v3071_v3  ;;  %2998 = vmatmul.msk.bf16.gmra.mxu3 %vm717_vm0, %v3096_v4 }
 0x11b   :  { %v2194_v10 = vadd.f32 %v3317_v6, %v2187_v9 }
 0x11d   :  { %v2201_v11 = vmax.f32 %v2194_v10, 0.0  ;;  %v1316_v12 = vpop.f32.mrf.mxu2  ;;  %v1441_v13 = vpop.f32.mrf.mxu3 }
 0x11e   :  { %v1987_v14 = vmax.f32 %v1316_v12, %v1438_v63  ;;  %v1068_v15 = vpop.f32.mrf.mxu0  ;;  %v1193_v16 = vpop.f32.mrf.mxu1 }
 0x11f   :  { %2208 = vst [vmem:[%s3749_s3 + $0x40] sm:$0xff] %v2201_v11  ;;  %v2363_v17 = vld [vmem:[#allocation3 + $0x218] ss:$2 sm:$0xff]  ;;  %v2377_v18 = vld [vmem:[#allocation3 + $0x219] ss:$2 sm:$0xff]  ;;  %v1790_v19 = vmax.f32 %v1068_v15, %v1191_v2 }
 0x120   :  { %v2388_v20 = vmax.f32 %v2363_v17, %v2377_v18  ;;  %1995 = vst [vmem:[#allocation3 + $0x228] sm:$0xff] %v1987_v14  ;;  %v3024_v15 = vld [vmem:[%s3747_s0 + $0xa0] sm:$0xff] }
 0x121   :  { %1798 = vst [vmem:[#allocation3 + $0x98] sm:$0xff] %v1790_v19 }
 0x122   :  { %v2395_v21 = vadd.f32 %v3317_v6, %v2388_v20 }
 0x124   :  { %v2402_v22 = vmax.f32 %v2395_v21, 0.0  ;;  %v3074_v21 = vld [vmem:[%s3747_s0 + $0x230] sm:$0xff] }
 0x125   :  { %v1318_v23 = vpop.f32.mrf.mxu2  ;;  %v1443_v26 = vpop.f32.mrf.mxu3 }
 0x126   :  { %2409 = vst [vmem:[%s3749_s3 + $0x10c] sm:$0xff] %v2402_v22  ;;  %v1988_v27 = vmax.f32 %v1318_v23, %v1441_v13  ;;  %v1071_v28 = vpop.f32.mrf.mxu0  ;;  %v1196_v29 = vpop.f32.mrf.mxu1  ;;  %v3099_v22 = vld [vmem:[%s3747_s0 + $0x2f8] sm:$0xff] }
 0x127   :  { %v1791_v32 = vmax.f32 %v1071_v28, %v1193_v16  ;;  %v3049_v16 = vld [vmem:[%s3747_s0 + $0x168] sm:$0xff] }
 0x128   :  { %v2163_v33 = vld [vmem:[#allocation3 + $0x90] ss:$2 sm:$0xff]  ;;  %v2177_v34 = vld [vmem:[#allocation3 + $0x91] ss:$2 sm:$0xff]  ;;  %1996 = vst [vmem:[#allocation3 + $0x230] sm:$0xff] %v1988_v27 }
 0x129   :  { %v2188_v35 = vmax.f32 %v2163_v33, %v2177_v34  ;;  %1799 = vst [vmem:[#allocation3 + $0xa0] sm:$0xff] %v1791_v32  ;;  %2924 = vmatmul.msk.bf16.gmra.mxu0 %vm717_vm0, %v3022_v24  ;;  %2949 = vmatmul.msk.bf16.gmra.mxu1 %vm717_vm0, %v3047_v25 }
 0x12a   :  { %2974 = vmatmul.msk.bf16.gmra.mxu2 %vm717_vm0, %v3072_v30  ;;  %2999 = vmatmul.msk.bf16.gmra.mxu3 %vm717_vm0, %v3097_v31 }
 0x12b   :  { %v2195_v37 = vadd.f32 %v3317_v6, %v2188_v35 }
 0x12d   :  { %v2202_v38 = vmax.f32 %v2195_v37, 0.0  ;;  %v1321_v39 = vpop.f32.mrf.mxu2  ;;  %v1446_v41 = vpop.f32.mrf.mxu3 }
 0x12e   :  { %v1989_v42 = vmax.f32 %v1321_v39, %v1443_v26  ;;  %v1073_v43 = vpop.f32.mrf.mxu0  ;;  %v1198_v44 = vpop.f32.mrf.mxu1 }
 0x12f   :  { %2209 = vst [vmem:[%s3749_s3 + $0x48] sm:$0xff] %v2202_v38  ;;  %v2365_v45 = vld [vmem:[#allocation3 + $0x228] ss:$2 sm:$0xff]  ;;  %v2379_v46 = vld [vmem:[#allocation3 + $0x229] ss:$2 sm:$0xff]  ;;  %v1792_v47 = vmax.f32 %v1073_v43, %v1196_v29 }
 0x130   :  { %v2389_v48 = vmax.f32 %v2365_v45, %v2379_v46  ;;  %1997 = vst [vmem:[#allocation3 + $0x238] sm:$0xff] %v1989_v42  ;;  %v3025_v43 = vld [vmem:[%s3747_s0 + $0xa8] sm:$0xff] }
 0x131   :  { %1800 = vst [vmem:[#allocation3 + $0xa8] sm:$0xff] %v1792_v47 }
 0x132   :  { %v2396_v49 = vadd.f32 %v3317_v6, %v2389_v48 }
 0x134   :  { %v2403_v50 = vmax.f32 %v2396_v49, 0.0  ;;  %v3075_v49 = vld [vmem:[%s3747_s0 + $0x238] sm:$0xff] }
 0x135   :  { %v1323_v51 = vpop.f32.mrf.mxu2  ;;  %v1448_v54 = vpop.f32.mrf.mxu3 }
 0x136   :  { %2410 = vst [vmem:[%s3749_s3 + $0x114] sm:$0xff] %v2403_v50  ;;  %v1990_v55 = vmax.f32 %v1323_v51, %v1446_v41  ;;  %v1076_v56 = vpop.f32.mrf.mxu0  ;;  %v1201_v57 = vpop.f32.mrf.mxu1  ;;  %v3100_v50 = vld [vmem:[%s3747_s0 + $0x300] sm:$0xff] }
 0x137   :  { %v1793_v60 = vmax.f32 %v1076_v56, %v1198_v44  ;;  %v3050_v44 = vld [vmem:[%s3747_s0 + $0x170] sm:$0xff] }
 0x138   :  { %v2165_v61 = vld [vmem:[#allocation3 + $0xa0] ss:$2 sm:$0xff]  ;;  %v2179_v62 = vld [vmem:[#allocation3 + $0xa1] ss:$2 sm:$0xff]  ;;  %1998 = vst [vmem:[#allocation3 + $0x240] sm:$0xff] %v1990_v55 }
 0x139   :  { %v2189_v63 = vmax.f32 %v2165_v61, %v2179_v62  ;;  %1801 = vst [vmem:[#allocation3 + $0xb0] sm:$0xff] %v1793_v60  ;;  %2925 = vmatmul.msk.bf16.gmra.mxu0 %vm717_vm0, %v3023_v52  ;;  %2950 = vmatmul.msk.bf16.gmra.mxu1 %vm717_vm0, %v3048_v53 }
 0x13a   :  { %2975 = vmatmul.msk.bf16.gmra.mxu2 %vm717_vm0, %v3073_v58  ;;  %3000 = vmatmul.msk.bf16.gmra.mxu3 %vm717_vm0, %v3098_v59 }
 0x13b   :  { %v2196_v0 = vadd.f32 %v3317_v6, %v2189_v63 }
 0x13d   :  { %v2203_v1 = vmax.f32 %v2196_v0, 0.0  ;;  %v1326_v2 = vpop.f32.mrf.mxu2  ;;  %v1451_v3 = vpop.f32.mrf.mxu3 }
 0x13e   :  { %v2015_v4 = vmax.f32 %v1326_v2, %v1448_v54  ;;  %v1078_v5 = vpop.f32.mrf.mxu0  ;;  %v1203_v7 = vpop.f32.mrf.mxu1 }
 0x13f   :  { %2210 = vst [vmem:[%s3749_s3 + $0x50] sm:$0xff] %v2203_v1  ;;  %v2367_v8 = vld [vmem:[#allocation3 + $0x238] ss:$2 sm:$0xff]  ;;  %v2381_v9 = vld [vmem:[#allocation3 + $0x239] ss:$2 sm:$0xff]  ;;  %v1794_v10 = vmax.f32 %v1078_v5, %v1201_v57  ;;  %v3026_v5 = vld [vmem:[%s3747_s0 + $0xb0] sm:$0xff] }
 0x140   :  { %v2390_v11 = vmax.f32 %v2367_v8, %v2381_v9  ;;  %2023 = vst [vmem:[#allocation3 + $0x248] sm:$0xff] %v2015_v4 }
 0x141   :  { %1802 = vst [vmem:[#allocation3 + $0xb8] sm:$0xff] %v1794_v10 }
 0x142   :  { %v2397_v12 = vadd.f32 %v3317_v6, %v2390_v11 }
 0x144   :  { %v2404_v13 = vmax.f32 %v2397_v12, 0.0  ;;  %v3076_v12 = vld [vmem:[%s3747_s0 + $0x240] sm:$0xff] }
 0x145   :  { %v1328_v14 = vpop.f32.mrf.mxu2  ;;  %v1453_v17 = vpop.f32.mrf.mxu3 }
 0x146   :  { %2411 = vst [vmem:[%s3749_s3 + $0x11c] sm:$0xff] %v2404_v13  ;;  %v2016_v18 = vmax.f32 %v1328_v14, %v1451_v3  ;;  %v1081_v19 = vpop.f32.mrf.mxu0  ;;  %v1206_v20 = vpop.f32.mrf.mxu1  ;;  %v3101_v13 = vld [vmem:[%s3747_s0 + $0x308] sm:$0xff] }
 0x147   :  { %v1819_v23 = vmax.f32 %v1081_v19, %v1203_v7  ;;  %v3051_v7 = vld [vmem:[%s3747_s0 + $0x178] sm:$0xff] }
 0x148   :  { %v2167_v24 = vld [vmem:[#allocation3 + $0xb0] ss:$2 sm:$0xff]  ;;  %v2181_v25 = vld [vmem:[#allocation3 + $0xb1] ss:$2 sm:$0xff]  ;;  %2024 = vst [vmem:[#allocation3 + $0x250] sm:$0xff] %v2016_v18 }
 0x149   :  { %v2190_v26 = vmax.f32 %v2167_v24, %v2181_v25  ;;  %1827 = vst [vmem:[#allocation3 + $0xc0] sm:$0xff] %v1819_v23  ;;  %2926 = vmatmul.msk.bf16.gmra.mxu0 %vm717_vm0, %v3024_v15  ;;  %2951 = vmatmul.msk.bf16.gmra.mxu1 %vm717_vm0, %v3049_v16 }
 0x14a   :  { %2976 = vmatmul.msk.bf16.gmra.mxu2 %vm717_vm0, %v3074_v21  ;;  %3001 = vmatmul.msk.bf16.gmra.mxu3 %vm717_vm0, %v3099_v22 }
 0x14b   :  { %v2197_v27 = vadd.f32 %v3317_v6, %v2190_v26 }
 0x14d   :  { %v2204_v28 = vmax.f32 %v2197_v27, 0.0  ;;  %v1331_v29 = vpop.f32.mrf.mxu2  ;;  %v1456_v30 = vpop.f32.mrf.mxu3 }
 0x14e   :  { %v2017_v31 = vmax.f32 %v1331_v29, %v1453_v17  ;;  %v1083_v32 = vpop.f32.mrf.mxu0  ;;  %v1208_v33 = vpop.f32.mrf.mxu1 }
 0x14f   :  { %2211 = vst [vmem:[%s3749_s3 + $0x58] sm:$0xff] %v2204_v28  ;;  %v2369_v34 = vld [vmem:[#allocation3 + $0x248] ss:$2 sm:$0xff]  ;;  %v2383_v35 = vld [vmem:[#allocation3 + $0x249] ss:$2 sm:$0xff]  ;;  %v1820_v37 = vmax.f32 %v1083_v32, %v1206_v20  ;;  %v3027_v32 = vld [vmem:[%s3747_s0 + $0xb8] sm:$0xff] }
 0x150   :  { %v2391_v38 = vmax.f32 %v2369_v34, %v2383_v35  ;;  %2025 = vst [vmem:[#allocation3 + $0x258] sm:$0xff] %v2017_v31 }
 0x151   :  { %1828 = vst [vmem:[#allocation3 + $0xc8] sm:$0xff] %v1820_v37 }
 0x152   :  { %v2398_v39 = vadd.f32 %v3317_v6, %v2391_v38 }
 0x154   :  { %v2405_v41 = vmax.f32 %v2398_v39, 0.0  ;;  %v3077_v39 = vld [vmem:[%s3747_s0 + $0x248] sm:$0xff] }
 0x155   :  { %v1333_v42 = vpop.f32.mrf.mxu2  ;;  %v1458_v45 = vpop.f32.mrf.mxu3 }
 0x156   :  { %2412 = vst [vmem:[%s3749_s3 + $0x124] sm:$0xff] %v2405_v41  ;;  %v2018_v46 = vmax.f32 %v1333_v42, %v1456_v30  ;;  %v1086_v47 = vpop.f32.mrf.mxu0  ;;  %v1211_v48 = vpop.f32.mrf.mxu1 }
 0x157   :  { %v1821_v51 = vmax.f32 %v1086_v47, %v1208_v33  ;;  %v3052_v33 = vld [vmem:[%s3747_s0 + $0x180] sm:$0xff] }
 0x158   :  { %v2169_v52 = vld [vmem:[#allocation3 + $0xc0] ss:$2 sm:$0xff]  ;;  %v2183_v53 = vld [vmem:[#allocation3 + $0xc1] ss:$2 sm:$0xff]  ;;  %2026 = vst [vmem:[#allocation3 + $0x260] sm:$0xff] %v2018_v46 }
 0x159   :  { %v2191_v54 = vmax.f32 %v2169_v52, %v2183_v53  ;;  %1829 = vst [vmem:[#allocation3 + $0xd0] sm:$0xff] %v1821_v51  ;;  %2927 = vmatmul.msk.bf16.gmra.mxu0 %vm717_vm0, %v3025_v43  ;;  %2952 = vmatmul.msk.bf16.gmra.mxu1 %vm717_vm0, %v3050_v44 }
 0x15a   :  { %2977 = vmatmul.msk.bf16.gmra.mxu2 %vm717_vm0, %v3075_v49  ;;  %3002 = vmatmul.msk.bf16.gmra.mxu3 %vm717_vm0, %v3100_v50 }
 0x15b   :  { %v2198_v55 = vadd.f32 %v3317_v6, %v2191_v54 }
 0x15d   :  { %v2205_v56 = vmax.f32 %v2198_v55, 0.0  ;;  %v1336_v57 = vpop.f32.mrf.mxu2  ;;  %v1461_v58 = vpop.f32.mrf.mxu3 }
 0x15e   :  { %v2019_v59 = vmax.f32 %v1336_v57, %v1458_v45  ;;  %v1088_v60 = vpop.f32.mrf.mxu0  ;;  %v1213_v61 = vpop.f32.mrf.mxu1 }
 0x15f   :  { %2212 = vst [vmem:[%s3749_s3 + $0x60] sm:$0xff] %v2205_v56  ;;  %v2371_v62 = vld [vmem:[#allocation3 + $0x258] ss:$2 sm:$0xff]  ;;  %v2385_v63 = vld [vmem:[#allocation3 + $0x259] ss:$2 sm:$0xff]  ;;  %v1822_v0 = vmax.f32 %v1088_v60, %v1211_v48  ;;  %v3053_v60 = vld [vmem:[%s3747_s0 + $0x188] sm:$0xff] }
 0x160   :  { %v2392_v1 = vmax.f32 %v2371_v62, %v2385_v63  ;;  %2027 = vst [vmem:[#allocation3 + $0x268] sm:$0xff] %v2019_v59  ;;  %v3028_v59 = vld [vmem:[%s3747_s0 + $0xc0] sm:$0xff] }
 0x161   :  { %1830 = vst [vmem:[#allocation3 + $0xd8] sm:$0xff] %v1822_v0 }
 0x162   :  { %v2399_v2 = vadd.f32 %v3317_v6, %v2392_v1 }
 0x164   :  { %v2406_v3 = vmax.f32 %v2399_v2, 0.0 }
 0x165   :  { %v1338_v4 = vpop.f32.mrf.mxu2  ;;  %v1463_v8 = vpop.f32.mrf.mxu3 }
 0x166   :  { %2413 = vst [vmem:[%s3749_s3 + $0x12c] sm:$0xff] %v2406_v3  ;;  %v2020_v9 = vmax.f32 %v1338_v4, %v1461_v58  ;;  %v1091_v10 = vpop.f32.mrf.mxu0  ;;  %v1216_v11 = vpop.f32.mrf.mxu1 }
 0x167   :  { %v1823_v14 = vmax.f32 %v1091_v10, %v1213_v61 }
 0x168   :  { %v2171_v15 = vld [vmem:[#allocation3 + $0xd0] ss:$2 sm:$0xff]  ;;  %v2185_v16 = vld [vmem:[#allocation3 + $0xd1] ss:$2 sm:$0xff]  ;;  %2028 = vst [vmem:[#allocation3 + $0x270] sm:$0xff] %v2020_v9 }
 0x169   :  { %v2192_v17 = vmax.f32 %v2171_v15, %v2185_v16  ;;  %1831 = vst [vmem:[#allocation3 + $0xe0] sm:$0xff] %v1823_v14  ;;  %2928 = vmatmul.msk.bf16.gmra.mxu0 %vm717_vm0, %v3026_v5  ;;  %2953 = vmatmul.msk.bf16.gmra.mxu1 %vm717_vm0, %v3051_v7  ;;  %v3654_v5 = vld [vmem:[%s3748_s2] ss:$0 sm:$0xff] }
 0x16a   :  { %2978 = vmatmul.msk.bf16.gmra.mxu2 %vm717_vm0, %v3076_v12  ;;  %3003 = vmatmul.msk.bf16.gmra.mxu3 %vm717_vm0, %v3101_v13 }
 0x16b   :  { %v2199_v18 = vadd.f32 %v3317_v6, %v2192_v17 }
 0x16d   :  { %v2206_v19 = vmax.f32 %v2199_v18, 0.0  ;;  %v1341_v20 = vpop.f32.mrf.mxu2  ;;  %v1466_v21 = vpop.f32.mrf.mxu3 }
 0x16e   :  { %v2021_v22 = vmax.f32 %v1341_v20, %v1463_v8  ;;  %v1093_v23 = vpop.f32.mrf.mxu0  ;;  %v1218_v24 = vpop.f32.mrf.mxu1 }
 0x16f   :  { %2213 = vst [vmem:[%s3749_s3 + $0x68] sm:$0xff] %v2206_v19  ;;  %v2415_v25 = vld [vmem:[#allocation3 + $0x268] ss:$2 sm:$0xff]  ;;  %v2429_v26 = vld [vmem:[#allocation3 + $0x269] ss:$2 sm:$0xff]  ;;  %v1824_v27 = vmax.f32 %v1093_v23, %v1216_v11 }
 0x170   :  { %v2442_v28 = vmax.f32 %v2415_v25, %v2429_v26  ;;  %2029 = vst [vmem:[#allocation3 + $0x278] sm:$0xff] %v2021_v22 }
 0x171   :  { %1832 = vst [vmem:[#allocation3 + $0xe8] sm:$0xff] %v1824_v27 }
 0x172   :  { %v2449_v29 = vadd.f32 %v3317_v6, %v2442_v28 }
 0x174   :  { %v2456_v30 = vmax.f32 %v2449_v29, 0.0 }
 0x175   :  { %v1343_v31 = vpop.f32.mrf.mxu2  ;;  %v1468_v34 = vpop.f32.mrf.mxu3 }
 0x176   :  { %2463 = vst [vmem:[%s3749_s3 + $0x134] sm:$0xff] %v2456_v30  ;;  %v2022_v35 = vmax.f32 %v1343_v31, %v1466_v21  ;;  %v1096_v37 = vpop.f32.mrf.mxu0  ;;  %v1221_v38 = vpop.f32.mrf.mxu1 }
 0x177   :  { %v1825_v41 = vmax.f32 %v1096_v37, %v1218_v24 }
 0x178   :  { %v2215_v42 = vld [vmem:[#allocation3 + $0xe0] ss:$2 sm:$0xff]  ;;  %v2229_v43 = vld [vmem:[#allocation3 + $0xe1] ss:$2 sm:$0xff]  ;;  %2030 = vst [vmem:[#allocation3 + $0x280] sm:$0xff] %v2022_v35 }
 0x179   :  { %v2242_v44 = vmax.f32 %v2215_v42, %v2229_v43  ;;  %1833 = vst [vmem:[#allocation3 + $0xf0] sm:$0xff] %v1825_v41  ;;  %2929 = vmatmul.msk.bf16.gmra.mxu0 %vm717_vm0, %v3027_v32  ;;  %2954 = vmatmul.msk.bf16.gmra.mxu1 %vm717_vm0, %v3052_v33 }
 0x17a   :  { %2979 = vmatmul.msk.bf16.gmra.mxu2 %vm717_vm0, %v3077_v39 }
 0x17b   :  { %v2249_v45 = vadd.f32 %v3317_v6, %v2242_v44 }
 0x17d   :  { %v2256_v46 = vmax.f32 %v2249_v45, 0.0  ;;  %v1346_v47 = vpop.f32.mrf.mxu2  ;;  %v1471_v48 = vpop.f32.mrf.mxu3 }
 0x17e   :  { %v2047_v49 = vmax.f32 %v1346_v47, %v1468_v34  ;;  %v1098_v50 = vpop.f32.mrf.mxu0  ;;  %v1223_v51 = vpop.f32.mrf.mxu1 }
 0x17f   :  { %2263 = vst [vmem:[%s3749_s3 + $0x70] sm:$0xff] %v2256_v46  ;;  %v2417_v52 = vld [vmem:[#allocation3 + $0x278] ss:$2 sm:$0xff]  ;;  %v2431_v53 = vld [vmem:[#allocation3 + $0x279] ss:$2 sm:$0xff]  ;;  %v1826_v54 = vmax.f32 %v1098_v50, %v1221_v38 }
 0x180   :  { %v2443_v55 = vmax.f32 %v2417_v52, %v2431_v53  ;;  %2055 = vst [vmem:[#allocation3 + $0x288] sm:$0xff] %v2047_v49 }
 0x181   :  { %1834 = vst [vmem:[#allocation3 + $0xf8] sm:$0xff] %v1826_v54 }
 0x182   :  { %v2450_v56 = vadd.f32 %v3317_v6, %v2443_v55  ;;  %v3078_v6 = vld [vmem:[%s3747_s0 + $0x250] sm:$0xff] }
 0x184   :  { %v2457_v57 = vmax.f32 %v2450_v56, 0.0 }
 0x185   :  { %v1348_v58 = vpop.f32.mrf.mxu2  ;;  %v1473_v61 = vpop.f32.mrf.mxu3 }
 0x186   :  { %2464 = vst [vmem:[%s3749_s3 + $0x13c] sm:$0xff] %v2457_v57  ;;  %v2048_v62 = vmax.f32 %v1348_v58, %v1471_v48  ;;  %v1101_v63 = vpop.f32.mrf.mxu0  ;;  %v1226_v0 = vpop.f32.mrf.mxu1 }
 0x187   :  { %v1851_v1 = vmax.f32 %v1101_v63, %v1223_v51 }
 0x188   :  { %v2217_v2 = vld [vmem:[#allocation3 + $0xf0] ss:$2 sm:$0xff]  ;;  %v2231_v3 = vld [vmem:[#allocation3 + $0xf1] ss:$2 sm:$0xff]  ;;  %2056 = vst [vmem:[#allocation3 + $0x290] sm:$0xff] %v2048_v62 }
 0x189   :  { %v2243_v4 = vmax.f32 %v2217_v2, %v2231_v3  ;;  %1859 = vst [vmem:[#allocation3 + $0x100] sm:$0xff] %v1851_v1  ;;  %2930 = vmatmul.msk.bf16.gmra.mxu0 %vm717_vm0, %v3028_v59  ;;  %2955 = vmatmul.msk.bf16.gmra.mxu1 %vm717_vm0, %v3053_v60 }
 0x18a   :  { %2980 = vmatmul.msk.bf16.gmra.mxu2 %vm717_vm0, %v3078_v6 }
 0x18b   :  { %v2250_v7 = vadd.f32 %v3654_v5, %v2243_v4 }
 0x18d   :  { %v2257_v8 = vmax.f32 %v2250_v7, 0.0  ;;  %v1351_v9 = vpop.f32.mrf.mxu2  ;;  %v1476_v10 = vpop.f32.mrf.mxu3 }
 0x18e   :  { %v2049_v11 = vmax.f32 %v1351_v9, %v1473_v61  ;;  %v1103_v12 = vpop.f32.mrf.mxu0  ;;  %v1228_v13 = vpop.f32.mrf.mxu1 }
 0x18f   :  { %2264 = vst [vmem:[%s3749_s3 + $0x78] sm:$0xff] %v2257_v8  ;;  %v2419_v14 = vld [vmem:[#allocation3 + $0x288] ss:$2 sm:$0xff]  ;;  %v2433_v15 = vld [vmem:[#allocation3 + $0x289] ss:$2 sm:$0xff]  ;;  %v1852_v16 = vmax.f32 %v1103_v12, %v1226_v0 }
 0x190   :  { %v2444_v17 = vmax.f32 %v2419_v14, %v2433_v15  ;;  %2057 = vst [vmem:[#allocation3 + $0x298] sm:$0xff] %v2049_v11 }
 0x191   :  { %1860 = vst [vmem:[#allocation3 + $0x108] sm:$0xff] %v1852_v16 }
 0x192   :  { %v2451_v18 = vadd.f32 %v3654_v5, %v2444_v17 }
 0x194   :  { %v2458_v19 = vmax.f32 %v2451_v18, 0.0 }
 0x195   :  { %v1353_v20 = vpop.f32.mrf.mxu2  ;;  %v1478_v21 = vpop.f32.mrf.mxu3 }
 0x196   :  { %2465 = vst [vmem:[%s3749_s3 + $0x144] sm:$0xff] %v2458_v19  ;;  %v2050_v22 = vmax.f32 %v1353_v20, %v1476_v10  ;;  %v1106_v23 = vpop.f32.mrf.mxu0  ;;  %v1231_v24 = vpop.f32.mrf.mxu1 }
 0x197   :  { %v1853_v25 = vmax.f32 %v1106_v23, %v1228_v13 }
 0x198   :  { %v2219_v26 = vld [vmem:[#allocation3 + $0x100] ss:$2 sm:$0xff]  ;;  %v2233_v27 = vld [vmem:[#allocation3 + $0x101] ss:$2 sm:$0xff]  ;;  %2058 = vst [vmem:[#allocation3 + $0x2a0] sm:$0xff] %v2050_v22 }
 0x199   :  { %v2244_v28 = vmax.f32 %v2219_v26, %v2233_v27  ;;  %1861 = vst [vmem:[#allocation3 + $0x110] sm:$0xff] %v1853_v25 }
 0x19b   :  { %v2251_v29 = vadd.f32 %v3654_v5, %v2244_v28 }
 0x19d   :  { %v2258_v30 = vmax.f32 %v2251_v29, 0.0  ;;  %v1356_v31 = vpop.f32.mrf.mxu2  ;;  %v1481_v32 = vpop.f32.mrf.mxu3 }
 0x19e   :  { %v2051_v33 = vmax.f32 %v1356_v31, %v1478_v21  ;;  %v1108_v34 = vpop.f32.mrf.mxu0  ;;  %v1233_v35 = vpop.f32.mrf.mxu1 }
 0x19f   :  { %2265 = vst [vmem:[%s3749_s3 + $0x80] sm:$0xff] %v2258_v30  ;;  %v2421_v37 = vld [vmem:[#allocation3 + $0x298] ss:$2 sm:$0xff]  ;;  %v2435_v38 = vld [vmem:[#allocation3 + $0x299] ss:$2 sm:$0xff]  ;;  %v1854_v39 = vmax.f32 %v1108_v34, %v1231_v24 }
 0x1a0   :  { %v2445_v41 = vmax.f32 %v2421_v37, %v2435_v38  ;;  %2059 = vst [vmem:[#allocation3 + $0x2a8] sm:$0xff] %v2051_v33 }
 0x1a1   :  { %1862 = vst [vmem:[#allocation3 + $0x118] sm:$0xff] %v1854_v39 }
 0x1a2   :  { %v2452_v42 = vadd.f32 %v3654_v5, %v2445_v41 }
 0x1a4   :  { %v2459_v43 = vmax.f32 %v2452_v42, 0.0 }
 0x1a5   :  { %v1358_v44 = vpop.f32.mrf.mxu2  ;;  %v1483_v45 = vpop.f32.mrf.mxu3 }
 0x1a6   :  { %2466 = vst [vmem:[%s3749_s3 + $0x14c] sm:$0xff] %v2459_v43  ;;  %v2052_v46 = vmax.f32 %v1358_v44, %v1481_v32  ;;  %v1111_v47 = vpop.f32.mrf.mxu0  ;;  %v1236_v48 = vpop.f32.mrf.mxu1 }
 0x1a7   :  { %v1855_v49 = vmax.f32 %v1111_v47, %v1233_v35 }
 0x1a8   :  { %v2221_v50 = vld [vmem:[#allocation3 + $0x110] ss:$2 sm:$0xff]  ;;  %v2235_v51 = vld [vmem:[#allocation3 + $0x111] ss:$2 sm:$0xff]  ;;  %2060 = vst [vmem:[#allocation3 + $0x2b0] sm:$0xff] %v2052_v46 }
 0x1a9   :  { %v2245_v52 = vmax.f32 %v2221_v50, %v2235_v51  ;;  %1863 = vst [vmem:[#allocation3 + $0x120] sm:$0xff] %v1855_v49 }
 0x1ab   :  { %v2252_v53 = vadd.f32 %v3654_v5, %v2245_v52 }
 0x1ad   :  { %v2259_v54 = vmax.f32 %v2252_v53, 0.0  ;;  %v1361_v55 = vpop.f32.mrf.mxu2  ;;  %v1486_v56 = vpop.f32.mrf.mxu3 }
 0x1ae   :  { %v2053_v57 = vmax.f32 %v1361_v55, %v1483_v45  ;;  %v1113_v58 = vpop.f32.mrf.mxu0  ;;  %v1238_v59 = vpop.f32.mrf.mxu1 }
 0x1af   :  { %2266 = vst [vmem:[%s3749_s3 + $0x88] sm:$0xff] %v2259_v54  ;;  %v2423_v60 = vld [vmem:[#allocation3 + $0x2a8] ss:$2 sm:$0xff]  ;;  %v2437_v61 = vld [vmem:[#allocation3 + $0x2a9] ss:$2 sm:$0xff]  ;;  %v1856_v62 = vmax.f32 %v1113_v58, %v1236_v48 }
 0x1b0   :  { %v2446_v63 = vmax.f32 %v2423_v60, %v2437_v61  ;;  %2061 = vst [vmem:[#allocation3 + $0x2b8] sm:$0xff] %v2053_v57 }
 0x1b1   :  { %1864 = vst [vmem:[#allocation3 + $0x128] sm:$0xff] %v1856_v62 }
 0x1b2   :  { %v2453_v0 = vadd.f32 %v3654_v5, %v2446_v63 }
 0x1b4   :  { %v2460_v6 = vmax.f32 %v2453_v0, 0.0 }
 0x1b5   :  { %v1363_v1 = vpop.f32.mrf.mxu2  ;;  %v1488_v2 = vpop.f32.mrf.mxu3 }
 0x1b6   :  { %2467 = vst [vmem:[%s3749_s3 + $0x154] sm:$0xff] %v2460_v6  ;;  %v2054_v3 = vmax.f32 %v1363_v1, %v1486_v56  ;;  %v1116_v4 = vpop.f32.mrf.mxu0  ;;  %v1241_v7 = vpop.f32.mrf.mxu1 }
 0x1b7   :  { %v1857_v8 = vmax.f32 %v1116_v4, %v1238_v59 }
 0x1b8   :  { %v2223_v9 = vld [vmem:[#allocation3 + $0x120] ss:$2 sm:$0xff]  ;;  %v2237_v10 = vld [vmem:[#allocation3 + $0x121] ss:$2 sm:$0xff]  ;;  %2062 = vst [vmem:[#allocation3 + $0x2c0] sm:$0xff] %v2054_v3 }
 0x1b9   :  { %v2246_v11 = vmax.f32 %v2223_v9, %v2237_v10  ;;  %1865 = vst [vmem:[#allocation3 + $0x130] sm:$0xff] %v1857_v8 }
 0x1bb   :  { %v2253_v12 = vadd.f32 %v3654_v5, %v2246_v11 }
 0x1bd   :  { %v2260_v13 = vmax.f32 %v2253_v12, 0.0  ;;  %v1366_v14 = vpop.f32.mrf.mxu2  ;;  %v1491_v15 = vpop.f32.mrf.mxu3 }
 0x1be   :  { %v2079_v16 = vmax.f32 %v1366_v14, %v1488_v2  ;;  %v1118_v17 = vpop.f32.mrf.mxu0  ;;  %v1243_v18 = vpop.f32.mrf.mxu1 }
 0x1bf   :  { %2267 = vst [vmem:[%s3749_s3 + $0x90] sm:$0xff] %v2260_v13  ;;  %v2425_v19 = vld [vmem:[#allocation3 + $0x2b8] ss:$2 sm:$0xff]  ;;  %v2439_v20 = vld [vmem:[#allocation3 + $0x2b9] ss:$2 sm:$0xff]  ;;  %v1858_v21 = vmax.f32 %v1118_v17, %v1241_v7 }
 0x1c0   :  { %v2447_v22 = vmax.f32 %v2425_v19, %v2439_v20  ;;  %2087 = vst [vmem:[#allocation3 + $0x2c8] sm:$0xff] %v2079_v16 }
 0x1c1   :  { %1866 = vst [vmem:[#allocation3 + $0x138] sm:$0xff] %v1858_v21 }
 0x1c2   :  { %v2454_v23 = vadd.f32 %v3654_v5, %v2447_v22 }
 0x1c4   :  { %v2461_v24 = vmax.f32 %v2454_v23, 0.0 }
 0x1c5   :  { %v1368_v25 = vpop.f32.mrf.mxu2  ;;  %v1493_v26 = vpop.f32.mrf.mxu3 }
 0x1c6   :  { %2468 = vst [vmem:[%s3749_s3 + $0x15c] sm:$0xff] %v2461_v24  ;;  %v2080_v27 = vmax.f32 %v1368_v25, %v1491_v15  ;;  %v1121_v28 = vpop.f32.mrf.mxu0  ;;  %v1246_v29 = vpop.f32.mrf.mxu1 }
 0x1c7   :  { %v1883_v30 = vmax.f32 %v1121_v28, %v1243_v18 }
 0x1c8   :  { %v2225_v31 = vld [vmem:[#allocation3 + $0x130] ss:$2 sm:$0xff]  ;;  %v2239_v32 = vld [vmem:[#allocation3 + $0x131] ss:$2 sm:$0xff]  ;;  %2088 = vst [vmem:[#allocation3 + $0x2d0] sm:$0xff] %v2080_v27 }
 0x1c9   :  { %v2247_v33 = vmax.f32 %v2225_v31, %v2239_v32  ;;  %1891 = vst [vmem:[#allocation3 + $0x140] sm:$0xff] %v1883_v30 }
 0x1cb   :  { %v2254_v34 = vadd.f32 %v3654_v5, %v2247_v33 }
 0x1cd   :  { %v2261_v35 = vmax.f32 %v2254_v34, 0.0  ;;  %v1371_v37 = vpop.f32.mrf.mxu2  ;;  %v1496_v38 = vpop.f32.mrf.mxu3 }
 0x1ce   :  { %v2081_v39 = vmax.f32 %v1371_v37, %v1493_v26  ;;  %v1123_v41 = vpop.f32.mrf.mxu0  ;;  %v1248_v42 = vpop.f32.mrf.mxu1 }
 0x1cf   :  { %2268 = vst [vmem:[%s3749_s3 + $0x98] sm:$0xff] %v2261_v35  ;;  %v2427_v43 = vld [vmem:[#allocation3 + $0x2c8] ss:$2 sm:$0xff]  ;;  %v2441_v44 = vld [vmem:[#allocation3 + $0x2c9] ss:$2 sm:$0xff]  ;;  %v1884_v45 = vmax.f32 %v1123_v41, %v1246_v29 }
 0x1d0   :  { %v2448_v46 = vmax.f32 %v2427_v43, %v2441_v44  ;;  %2089 = vst [vmem:[#allocation3 + $0x2d8] sm:$0xff] %v2081_v39 }
 0x1d1   :  { %1892 = vst [vmem:[#allocation3 + $0x148] sm:$0xff] %v1884_v45 }
 0x1d2   :  { %v2455_v47 = vadd.f32 %v3654_v5, %v2448_v46 }
 0x1d4   :  { %v2462_v48 = vmax.f32 %v2455_v47, 0.0 }
 0x1d5   :  { %v1373_v49 = vpop.f32.mrf.mxu2  ;;  %v1498_v50 = vpop.f32.mrf.mxu3 }
 0x1d6   :  { %2469 = vst [vmem:[%s3749_s3 + $0x164] sm:$0xff] %v2462_v48  ;;  %v2082_v51 = vmax.f32 %v1373_v49, %v1496_v38  ;;  %v1126_v52 = vpop.f32.mrf.mxu0  ;;  %v1251_v53 = vpop.f32.mrf.mxu1 }
 0x1d7   :  { %v1885_v54 = vmax.f32 %v1126_v52, %v1248_v42 }
 0x1d8   :  { %v2227_v55 = vld [vmem:[#allocation3 + $0x140] ss:$2 sm:$0xff]  ;;  %v2241_v56 = vld [vmem:[#allocation3 + $0x141] ss:$2 sm:$0xff]  ;;  %2090 = vst [vmem:[#allocation3 + $0x2e0] sm:$0xff] %v2082_v51 }
 0x1d9   :  { %v2248_v57 = vmax.f32 %v2227_v55, %v2241_v56  ;;  %1893 = vst [vmem:[#allocation3 + $0x150] sm:$0xff] %v1885_v54 }
 0x1db   :  { %v2255_v58 = vadd.f32 %v3654_v5, %v2248_v57 }
 0x1dd   :  { %v2262_v59 = vmax.f32 %v2255_v58, 0.0  ;;  %v1376_v60 = vpop.f32.mrf.mxu2  ;;  %v1501_v61 = vpop.f32.mrf.mxu3 }
 0x1de   :  { %v2083_v62 = vmax.f32 %v1376_v60, %v1498_v50  ;;  %v1128_v63 = vpop.f32.mrf.mxu0  ;;  %v1253_v0 = vpop.f32.mrf.mxu1 }
 0x1df   :  { %2269 = vst [vmem:[%s3749_s3 + $0xa0] sm:$0xff] %v2262_v59  ;;  %v2471_v6 = vld [vmem:[#allocation3 + $0x2d8] ss:$2 sm:$0xff]  ;;  %v2479_v1 = vld [vmem:[#allocation3 + $0x2d9] ss:$2 sm:$0xff]  ;;  %v1886_v2 = vmax.f32 %v1128_v63, %v1251_v53 }
 0x1e0   :  { %v2486_v3 = vmax.f32 %v2471_v6, %v2479_v1  ;;  %2091 = vst [vmem:[#allocation3 + $0x2e8] sm:$0xff] %v2083_v62 }
 0x1e1   :  { %1894 = vst [vmem:[#allocation3 + $0x158] sm:$0xff] %v1886_v2 }
 0x1e2   :  { %v2490_v4 = vadd.f32 %v3654_v5, %v2486_v3 }
 0x1e4   :  { %v2494_v7 = vmax.f32 %v2490_v4, 0.0 }
 0x1e5   :  { %v1378_v8 = vpop.f32.mrf.mxu2  ;;  %v1503_v13 = vpop.f32.mrf.mxu3 }
 0x1e6   :  { %2498 = vst [vmem:[%s3749_s3 + $0x16c] sm:$0xff] %v2494_v7  ;;  %v2084_v9 = vmax.f32 %v1378_v8, %v1501_v61  ;;  %v1131_v10 = vpop.f32.mrf.mxu0  ;;  %v1256_v11 = vpop.f32.mrf.mxu1 }
 0x1e7   :  { %v1887_v12 = vmax.f32 %v1131_v10, %v1253_v0 }
 0x1e8   :  { %v2271_v14 = vld [vmem:[#allocation3 + $0x150] ss:$2 sm:$0xff]  ;;  %v2279_v15 = vld [vmem:[#allocation3 + $0x151] ss:$2 sm:$0xff]  ;;  %2092 = vst [vmem:[#allocation3 + $0x2f0] sm:$0xff] %v2084_v9 }
 0x1e9   :  { %v2286_v16 = vmax.f32 %v2271_v14, %v2279_v15  ;;  %1895 = vst [vmem:[#allocation3 + $0x160] sm:$0xff] %v1887_v12 }
 0x1eb   :  { %v2290_v17 = vadd.f32 %v3654_v5, %v2286_v16 }
 0x1ed   :  { %v2294_v18 = vmax.f32 %v2290_v17, 0.0  ;;  %v1381_v19 = vpop.f32.mrf.mxu2  ;;  %v1506_v27 = vpop.f32.mrf.mxu3 }
 0x1ee   :  { %v2085_v20 = vmax.f32 %v1381_v19, %v1503_v13  ;;  %v1133_v21 = vpop.f32.mrf.mxu0  ;;  %v1258_v22 = vpop.f32.mrf.mxu1 }
 0x1ef   :  { %2298 = vst [vmem:[%s3749_s3 + $0xa8] sm:$0xff] %v2294_v18  ;;  %v2473_v23 = vld [vmem:[#allocation3 + $0x2e8] ss:$2 sm:$0xff]  ;;  %v2481_v24 = vld [vmem:[#allocation3 + $0x2e9] ss:$2 sm:$0xff]  ;;  %v1888_v25 = vmax.f32 %v1133_v21, %v1256_v11 }
 0x1f0   :  { %v2487_v26 = vmax.f32 %v2473_v23, %v2481_v24  ;;  %2093 = vst [vmem:[#allocation3 + $0x2f8] sm:$0xff] %v2085_v20 }
 0x1f1   :  { %1896 = vst [vmem:[#allocation3 + $0x168] sm:$0xff] %v1888_v25 }
 0x1f2   :  { %v2491_v28 = vadd.f32 %v3654_v5, %v2487_v26 }
 0x1f4   :  { %v2495_v29 = vmax.f32 %v2491_v28, 0.0 }
 0x1f5   :  { %v1383_v30 = vpop.f32.mrf.mxu2  ;;  %v1508_v41 = vpop.f32.mrf.mxu3 }
 0x1f6   :  { %2499 = vst [vmem:[%s3749_s3 + $0x174] sm:$0xff] %v2495_v29  ;;  %v2086_v31 = vmax.f32 %v1383_v30, %v1506_v27  ;;  %v1136_v32 = vpop.f32.mrf.mxu0  ;;  %v1261_v33 = vpop.f32.mrf.mxu1 }
 0x1f7   :  { %v1889_v34 = vmax.f32 %v1136_v32, %v1258_v22 }
 0x1f8   :  { %v2273_v35 = vld [vmem:[#allocation3 + $0x160] ss:$2 sm:$0xff]  ;;  %v2281_v37 = vld [vmem:[#allocation3 + $0x161] ss:$2 sm:$0xff]  ;;  %2094 = vst [vmem:[#allocation3 + $0x300] sm:$0xff] %v2086_v31 }
 0x1f9   :  { %v2287_v38 = vmax.f32 %v2273_v35, %v2281_v37  ;;  %1897 = vst [vmem:[#allocation3 + $0x170] sm:$0xff] %v1889_v34 }
 0x1fb   :  { %v2291_v39 = vadd.f32 %v3654_v5, %v2287_v38 }
 0x1fd   :  { %v2295_v42 = vmax.f32 %v2291_v39, 0.0  ;;  %v1386_v43 = vpop.f32.mrf.mxu2 }
 0x1fe   :  { %v2097_v44 = vmax.f32 %v1386_v43, %v1508_v41  ;;  %v1138_v45 = vpop.f32.mrf.mxu0  ;;  %v1263_v46 = vpop.f32.mrf.mxu1 }
 0x1ff   :  { %2299 = vst [vmem:[%s3749_s3 + $0xb0] sm:$0xff] %v2295_v42  ;;  %v2475_v47 = vld [vmem:[#allocation3 + $0x2f8] ss:$2 sm:$0xff]  ;;  %v2483_v48 = vld [vmem:[#allocation3 + $0x2f9] ss:$2 sm:$0xff]  ;;  %v1890_v49 = vmax.f32 %v1138_v45, %v1261_v33 }
 0x200   :  { %v2488_v50 = vmax.f32 %v2475_v47, %v2483_v48  ;;  %2098 = vst [vmem:[#allocation3 + $0x308] sm:$0xff] %v2097_v44 }
 0x201   :  { %1898 = vst [vmem:[#allocation3 + $0x178] sm:$0xff] %v1890_v49 }
 0x202   :  { %v2492_v51 = vadd.f32 %v3654_v5, %v2488_v50 }
 0x204   :  { %v2496_v52 = vmax.f32 %v2492_v51, 0.0 }
 0x205   :  { %v1388_v53 = vpop.f32.mrf.mxu2 }
 0x206   :  { %2500 = vst [vmem:[%s3749_s3 + $0x17c] sm:$0xff] %v2496_v52  ;;  %v1141_v54 = vpop.f32.mrf.mxu0  ;;  %v1266_v55 = vpop.f32.mrf.mxu1 }
 0x207   :  { %v2477_v56 = vld [vmem:[#allocation3 + $0x308] ss:$2 sm:$0xf]  ;;  %v2485_v57 = vld [vmem:[#allocation3 + $0x309] ss:$2 sm:$0xf]  ;;  %v1901_v58 = vmax.f32 %v1141_v54, %v1263_v46  ;;  %v1919_v59 = vmax.f32 %v1266_v55, %v1388_v53 }
 0x208   :  { %v2489_v60 = vmax.f32 %v2477_v56, %v2485_v57  ;;  %v2275_v61 = vld [vmem:[#allocation3 + $0x170] ss:$2 sm:$0xff]  ;;  %v2283_v62 = vld [vmem:[#allocation3 + $0x171] ss:$2 sm:$0xff] }
 0x209   :  { %v2288_v63 = vmax.f32 %v2275_v61, %v2283_v62  ;;  %1902 = vst [vmem:[#allocation3 + $0x180] sm:$0xff] %v1901_v58 }
 0x20a   :  { %v2493_v0 = vadd.f32 %v3654_v5, %v2489_v60  ;;  %1927 = vst [vmem:[#allocation3 + $0x188] sm:$0xff] %v1919_v59 }
 0x20b   :  { %v2292_v6 = vadd.f32 %v3654_v5, %v2288_v63 }
 0x20c   :  { %v2497_v1 = vmax.f32 %v2493_v0, 0.0 }
 0x20d   :  { %v2296_v2 = vmax.f32 %v2292_v6, 0.0  ;;  %v1391_v3 = vpop.f32.mrf.mxu2 }
 0x20e   :  { %2501 = vst [vmem:[%s3749_s3 + $0x184] sm:$0xf] %v2497_v1  ;;  %v1143_v4 = vpop.f32.mrf.mxu0  ;;  %v1268_v7 = vpop.f32.mrf.mxu1 }
 0x20f   :  { %2300 = vst [vmem:[%s3749_s3 + $0xb8] sm:$0xff] %v2296_v2  ;;  %v1723_v8 = vmax.f32 %v3272_v36, %v1143_v4  ;;  %v1920_v9 = vmax.f32 %v1268_v7, %v1391_v3 }
 0x210   :  { %v2277_v10 = vld [vmem:[#allocation3 + $0x180] ss:$2 sm:$0xf]  ;;  %v2285_v11 = vld [vmem:[#allocation3 + $0x181] ss:$2 sm:$0xf] }
 0x211   :  { %v2289_v12 = vmax.f32 %v2277_v10, %v2285_v11  ;;  %1731 = vst [vmem:[#allocation3] sm:$0xff] %v1723_v8 }
 0x212   :  { %1928 = vst [vmem:[#allocation3 + $0x190] sm:$0xff] %v1920_v9 }
 0x213   :  { %v2293_v13 = vadd.f32 %v3654_v5, %v2289_v12 }
 0x215   :  { %v2297_v14 = vmax.f32 %v2293_v13, 0.0  ;;  %v1393_v15 = vpop.f32.mrf.mxu2 }
 0x216   :  { %v1921_v16 = vmax.f32 %v3284_v40, %v1393_v15 }
 0x217   :  { %2301 = vst [vmem:[%s3749_s3 + $0xc0] sm:$0xf] %v2297_v14 }
 0x218   :  { %v2100_v17 = vld [vmem:[#allocation3] ss:$2 sm:$0xff]  ;;  %v2114_v18 = vld [vmem:[#allocation3 + $0x1] ss:$2 sm:$0xff]  ;;  %1929 = vst [vmem:[#allocation3 + $0x198] sm:$0xff] %v1921_v16 }
 0x219   :  { %v2127_v36 = vmax.f32 %v2100_v17, %v2114_v18  ;;  %v2303_v19 = vld [vmem:[#allocation3 + $0x188] ss:$2 sm:$0xff]  ;;  %v2317_v20 = vld [vmem:[#allocation3 + $0x189] ss:$2 sm:$0xff] }
 0x21a   :  { %v2330_v21 = vmax.f32 %v2303_v19, %v2317_v20 }
 0x21b   :  { %v2137_v22 = vadd.f32 %v3654_v5, %v2127_v36 }
 0x21c   :  { %v2337_v23 = vadd.f32 %v3654_v5, %v2330_v21 }
 0x21d   :  { %v2144_v24 = vmax.f32 %v2137_v22, 0.0 }
 0x21e   :  { %v2344_v25 = vmax.f32 %v2337_v23, 0.0 }
 0x21f   :  { %2151 = vst [vmem:[%s3749_s3] sm:$0xff] %v2144_v24  ;;  %v2305_v40 = vld [vmem:[#allocation3 + $0x198] ss:$2 sm:$0xff]  ;;  %v2319_v26 = vld [vmem:[#allocation3 + $0x199] ss:$2 sm:$0xff] }
 0x220   :  { %2351 = vst [vmem:[%s3749_s3 + $0xc4] sm:$0xff] %v2344_v25  ;;  %v2331_v27 = vmax.f32 %v2305_v40, %v2319_v26 }
 0x222   :  { %v2338_v28 = vadd.f32 %v3654_v5, %v2331_v27 }
 0x224   :  { %v2345_v29 = vmax.f32 %v2338_v28, 0.0 }
 0x226   :  { %2352 = vst [vmem:[%s3749_s3 + $0xcc] sm:$0xff] %v2345_v29 }

// kernel: lenet5_forward.4
= control target key start
LH: loop header
LB: loop body
LE: loop exit
PB: predicated region body
PF: predicated region fallthrough
CT: control target
= control target key end

     0   :  { %s1092_s1 = inlined_call_operand.vmem [shape: bf16[256,128], index: 1, kind: input, shape index: {}]   ;;  %s1093_s0 = inlined_call_operand.vmem [shape: bf16[200,256], index: 0, kind: input, shape index: {}]   ;;  %s1094_s2 = inlined_call_operand.vmem [shape: f32[1,128], index: 2, kind: input, shape index: {}]   ;;  %s1095_s3 = inlined_call_operand.vmem [shape: f32[64,128], index: 3, kind: output, shape index: {}]  }
   0x1   :  { %v785_v0 = vld [vmem:[%s1092_s1 + $0x38] sm:$0xff]  ;;  %v784_v2 = vld [vmem:[%s1092_s1 + $0x30] sm:$0xff]  ;;  %v783_v4 = vld [vmem:[%s1092_s1 + $0x28] sm:$0xff] }
   0x2   :  { %v793_v1 = vld [vmem:[%s1092_s1 + $0x78] sm:$0xff]  ;;  %294 = vmatpush.bf16.msra.mxu0 %v785_v0  ;;  %794 = vmatpush.bf16.msra.mxu2 %v785_v0  ;;  %v792_v3 = vld [vmem:[%s1092_s1 + $0x70] sm:$0xff]  ;;  %v791_v5 = vld [vmem:[%s1092_s1 + $0x68] sm:$0xff] }
   0x3   :  { %367 = vmatpush.bf16.msra.mxu1 %v793_v1  ;;  %802 = vmatpush.bf16.msra.mxu3 %v793_v1  ;;  %v782_v6 = vld [vmem:[%s1092_s1 + $0x20] sm:$0xff]  ;;  %v781_v8 = vld [vmem:[%s1092_s1 + $0x18] sm:$0xff]  ;;  %v780_v10 = vld [vmem:[%s1092_s1 + $0x10] sm:$0xff] }
   0x4   :  { %v790_v7 = vld [vmem:[%s1092_s1 + $0x60] sm:$0xff]  ;;  %v789_v9 = vld [vmem:[%s1092_s1 + $0x58] sm:$0xff]  ;;  %v788_v11 = vld [vmem:[%s1092_s1 + $0x50] sm:$0xff] }
   0x5   :  { %v779_v12 = vld [vmem:[%s1092_s1 + $0x8] sm:$0xff]  ;;  %v778_v14 = vld [vmem:[%s1092_s1] sm:$0xff]  ;;  %v768_v22 = vld [vmem:[%s1093_s0 + $0x74] sm:$0xf] }
   0x6   :  { %295 = vmatpush.bf16.msra.mxu0 %v784_v2  ;;  %795 = vmatpush.bf16.msra.mxu2 %v784_v2  ;;  %v787_v13 = vld [vmem:[%s1092_s1 + $0x48] sm:$0xff]  ;;  %v786_v15 = vld [vmem:[%s1092_s1 + $0x40] sm:$0xff]  ;;  %v654_v23 = vld [vmem:[%s1093_s0 + $0x78] sm:$0xf0] }
   0x7   :  { %368 = vmatpush.bf16.msra.mxu1 %v792_v3  ;;  %803 = vmatpush.bf16.msra.mxu3 %v792_v3  ;;  %v596_v16 = vld [vmem:[%s1093_s0] sm:$0xf]  ;;  %v755_v17 = vld [vmem:[%s1093_s0 + $0x4] sm:$0xf0]  ;;  %v754_v20 = vld [vmem:[%s1093_s0 + $0x4] sm:$0xf]  ;;  %v657_v27 = vor.u32 %v768_v22, %v654_v23 }
   0x8   :  { %v644_v18 = vld [vmem:[%s1093_s0 + $0x60] sm:$0xf]  ;;  %v767_v19 = vld [vmem:[%s1093_s0 + $0x64] sm:$0xf0]  ;;  %v598_v21 = vld [vmem:[%s1093_s0 + $0x8] sm:$0xf0]  ;;  %v597_v24 = vor.u32 %v755_v17, %v596_v16 }
   0x9   :  { %v645_v25 = vor.u32 %v767_v19, %v644_v18  ;;  %v601_v26 = vor.u32 %v754_v20, %v598_v21  ;;  %v604_v28 = vld [vmem:[%s1093_s0 + $0x10] sm:$0xf]  ;;  %v757_v29 = vld [vmem:[%s1093_s0 + $0x14] sm:$0xf0]  ;;  %v756_v32 = vld [vmem:[%s1093_s0 + $0x14] sm:$0xf] }
   0xa   :  { %296 = vmatpush.bf16.msra.mxu0 %v783_v4  ;;  %796 = vmatpush.bf16.msra.mxu2 %v783_v4  ;;  %v652_v30 = vld [vmem:[%s1093_s0 + $0x70] sm:$0xf]  ;;  %v769_v31 = vld [vmem:[%s1093_s0 + $0x74] sm:$0xf0]  ;;  %v606_v33 = vld [vmem:[%s1093_s0 + $0x18] sm:$0xf0]  ;;  %v605_v36 = vor.u32 %v757_v29, %v604_v28 }
   0xb   :  { %369 = vmatpush.bf16.msra.mxu1 %v791_v5  ;;  %804 = vmatpush.bf16.msra.mxu3 %v791_v5  ;;  %v770_v34 = vld [vmem:[%s1093_s0 + $0x84] sm:$0xf]  ;;  %v662_v35 = vld [vmem:[%s1093_s0 + $0x88] sm:$0xf0]  ;;  %v653_v37 = vor.u32 %v769_v31, %v652_v30  ;;  %v609_v38 = vor.u32 %v756_v32, %v606_v33  ;;  %v612_v40 = vld [vmem:[%s1093_s0 + $0x20] sm:$0xf] }
   0xc   :  { %v665_v39 = vor.u32 %v770_v34, %v662_v35  ;;  %v759_v41 = vld [vmem:[%s1093_s0 + $0x24] sm:$0xf0]  ;;  %v660_v42 = vld [vmem:[%s1093_s0 + $0x80] sm:$0xf]  ;;  %v758_v44 = vld [vmem:[%s1093_s0 + $0x24] sm:$0xf] }
   0xd   :  { %v771_v43 = vld [vmem:[%s1093_s0 + $0x84] sm:$0xf0]  ;;  %v614_v45 = vld [vmem:[%s1093_s0 + $0x28] sm:$0xf0]  ;;  %v772_v46 = vld [vmem:[%s1093_s0 + $0x94] sm:$0xf]  ;;  %v613_v48 = vor.u32 %v759_v41, %v612_v40 }
   0xe   :  { %297 = vmatpush.bf16.msra.mxu0 %v782_v6  ;;  %797 = vmatpush.bf16.msra.mxu2 %v782_v6  ;;  %v670_v47 = vld [vmem:[%s1093_s0 + $0x98] sm:$0xf0]  ;;  %v661_v49 = vor.u32 %v771_v43, %v660_v42  ;;  %v617_v50 = vor.u32 %v758_v44, %v614_v45  ;;  %v620_v52 = vld [vmem:[%s1093_s0 + $0x30] sm:$0xf]  ;;  %v761_v53 = vld [vmem:[%s1093_s0 + $0x34] sm:$0xf0] }
   0xf   :  { %370 = vmatpush.bf16.msra.mxu1 %v790_v7  ;;  %805 = vmatpush.bf16.msra.mxu3 %v790_v7  ;;  %v673_v51 = vor.u32 %v772_v46, %v670_v47  ;;  %v668_v54 = vld [vmem:[%s1093_s0 + $0x90] sm:$0xf]  ;;  %v773_v55 = vld [vmem:[%s1093_s0 + $0x94] sm:$0xf0]  ;;  %v760_v56 = vld [vmem:[%s1093_s0 + $0x34] sm:$0xf]  ;;  %v621_v60 = vor.u32 %v761_v53, %v620_v52 }
  0x10   :  { %v622_v57 = vld [vmem:[%s1093_s0 + $0x38] sm:$0xf0]  ;;  %v774_v58 = vld [vmem:[%s1093_s0 + $0xa4] sm:$0xf]  ;;  %v678_v59 = vld [vmem:[%s1093_s0 + $0xa8] sm:$0xf0]  ;;  %v669_v61 = vor.u32 %v773_v55, %v668_v54 }
  0x11   :  { %v625_v62 = vor.u32 %v760_v56, %v622_v57  ;;  %v681_v63 = vor.u32 %v774_v58, %v678_v59  ;;  %v628_v0 = vld [vmem:[%s1093_s0 + $0x40] sm:$0xf]  ;;  %v763_v1 = vld [vmem:[%s1093_s0 + $0x44] sm:$0xf0]  ;;  %v762_v4 = vld [vmem:[%s1093_s0 + $0x44] sm:$0xf] }
  0x12   :  { %298 = vmatpush.bf16.msra.mxu0 %v781_v8  ;;  %798 = vmatpush.bf16.msra.mxu2 %v781_v8  ;;  %v676_v2 = vld [vmem:[%s1093_s0 + $0xa0] sm:$0xf]  ;;  %v775_v3 = vld [vmem:[%s1093_s0 + $0xa4] sm:$0xf0]  ;;  %v630_v5 = vld [vmem:[%s1093_s0 + $0x48] sm:$0xf0]  ;;  %v629_v8 = vor.u32 %v763_v1, %v628_v0 }
  0x13   :  { %371 = vmatpush.bf16.msra.mxu1 %v789_v9  ;;  %806 = vmatpush.bf16.msra.mxu3 %v789_v9  ;;  %v776_v6 = vld [vmem:[%s1093_s0 + $0xb4] sm:$0xf]  ;;  %v686_v7 = vld [vmem:[%s1093_s0 + $0xb8] sm:$0xf0]  ;;  %v677_v9 = vor.u32 %v775_v3, %v676_v2  ;;  %v777_v16 = vld [vmem:[%s1093_s0 + $0xb4] sm:$0xf0] }
  0x14   :  { %v764_v18 = vld [vmem:[%s1093_s0 + $0x54] sm:$0xf]  ;;  %v638_v19 = vld [vmem:[%s1093_s0 + $0x58] sm:$0xf0] }
  0x15   :  { %v641_v22 = vor.u32 %v764_v18, %v638_v19 }
  0x16   :  { %299 = vmatpush.bf16.msra.mxu0 %v780_v10  ;;  %799 = vmatpush.bf16.msra.mxu2 %v780_v10  ;;  %v633_v10 = vor.u32 %v762_v4, %v630_v5 }
  0x17   :  { %372 = vmatpush.bf16.msra.mxu1 %v788_v11  ;;  %807 = vmatpush.bf16.msra.mxu3 %v788_v11  ;;  %v689_v11 = vor.u32 %v776_v6, %v686_v7 }
  0x1a   :  { %300 = vmatpush.bf16.msra.mxu0 %v779_v12  ;;  %800 = vmatpush.bf16.msra.mxu2 %v779_v12  ;;  %v38_v12 = vld [vmem:[%s1093_s0 + $0xc0] sm:$0xff] }
  0x1b   :  { %373 = vmatpush.bf16.msra.mxu1 %v787_v13  ;;  %808 = vmatpush.bf16.msra.mxu3 %v787_v13  ;;  %v636_v13 = vld [vmem:[%s1093_s0 + $0x50] sm:$0xf]  ;;  %v145_v17 = vunpack.c.h.b16 %v38_v12 }
  0x1d   :  { %v171_v23 = vpack.c.b16 %v145_v17, %v145_v17 }
  0x1e   :  { %301 = vmatpush.bf16.msra.mxu0 %v778_v14  ;;  %801 = vmatpush.bf16.msra.mxu2 %v778_v14  ;;  %v765_v14 = vld [vmem:[%s1093_s0 + $0x54] sm:$0xf0] }
  0x1f   :  { %374 = vmatpush.bf16.msra.mxu1 %v786_v15  ;;  %809 = vmatpush.bf16.msra.mxu3 %v786_v15  ;;  %v684_v15 = vld [vmem:[%s1093_s0 + $0xb0] sm:$0xf]  ;;  %v637_v20 = vor.u32 %v765_v14, %v636_v13 }
  0x20   :  { %v685_v21 = vor.u32 %v777_v16, %v684_v15 }
  0x21   :  { %302 = vmatmul.bf16.vlgmr.msra.gmra.mxu0 %v597_v24  ;;  %332 = vmatmul.bf16.vlgmr.msra.gmra.mxu2 %v645_v25  ;;  %v144_v24 = vunpack.c.l.b16 %v38_v12  ;;  %v766_v25 = vld [vmem:[%s1093_s0 + $0x64] sm:$0xf] }
  0x22   :  { %375 = vmatmul.bf16.vlgmr.msra.gmra.mxu1 %v601_v26  ;;  %410 = vmatmul.bf16.vlgmr.msra.gmra.mxu3 %v657_v27  ;;  %v646_v26 = vld [vmem:[%s1093_s0 + $0x68] sm:$0xf0] }
  0x23   :  { %v170_v27 = vpack.c.b16 %v144_v24, %v144_v24  ;;  %v649_v28 = vor.u32 %v766_v25, %v646_v26 }
  0x31   :  { %307 = vmatmul.bf16.gmra.mxu0 %v605_v36  ;;  %337 = vmatmul.bf16.gmra.mxu2 %v653_v37 }
  0x32   :  { %380 = vmatmul.bf16.gmra.mxu1 %v609_v38  ;;  %415 = vmatmul.bf16.gmra.mxu3 %v665_v39 }
  0x41   :  { %312 = vmatmul.bf16.gmra.mxu0 %v613_v48  ;;  %342 = vmatmul.bf16.gmra.mxu2 %v661_v49 }
  0x42   :  { %385 = vmatmul.bf16.gmra.mxu1 %v617_v50  ;;  %420 = vmatmul.bf16.gmra.mxu3 %v673_v51 }
  0x51   :  { %317 = vmatmul.bf16.gmra.mxu0 %v621_v60  ;;  %347 = vmatmul.bf16.gmra.mxu2 %v669_v61 }
  0x52   :  { %390 = vmatmul.bf16.gmra.mxu1 %v625_v62  ;;  %425 = vmatmul.bf16.gmra.mxu3 %v681_v63 }
  0x61   :  { %322 = vmatmul.bf16.gmra.mxu0 %v629_v8  ;;  %352 = vmatmul.bf16.gmra.mxu2 %v677_v9  ;;  %v812_v8 = vmov 0.0  }
  0x62   :  { %395 = vmatmul.bf16.gmra.mxu1 %v633_v10  ;;  %430 = vmatmul.bf16.gmra.mxu3 %v689_v11  ;;  %556 = vst [vmem:[%s1095_s3 + $0x19] sm:$0x7f] %v812_v8 }
  0x63   :  { %589 = vst [vmem:[%s1095_s3 + $0x39] sm:$0x7f] %v812_v8 }
  0x71   :  { %327 = vmatmul.bf16.gmra.mxu0 %v637_v20  ;;  %357 = vmatmul.bf16.gmra.mxu2 %v685_v21 }
  0x72   :  { %400 = vmatmul.bf16.gmra.mxu1 %v641_v22  ;;  %435 = vmatmul.bf16.gmra.mxu3 %v171_v23 }
  0x81   :  { %362 = vmatmul.bf16.gmra.mxu2 %v170_v27 }
  0x82   :  { %405 = vmatmul.bf16.gmra.mxu1 %v649_v28 }
  0x9e   :  { %v303_v29 = vpop.f32.mrf.mxu0 }
  0x9f   :  { %v376_v30 = vpop.f32.mrf.mxu1 }
  0xa0   :  { %v377_v31 = vadd.f32 %v376_v30, %v303_v29 }
  0xa4   :  { %v1028_v32 = vpop.f32.mrf.mxu2 }
  0xa5   :  { %v411_v33 = vpop.f32.mrf.mxu3 }
  0xa6   :  { %v305_v34 = vpop.f32.mrf.mxu0 }
  0xa7   :  { %v378_v35 = vpop.f32.mrf.mxu1 }
  0xa8   :  { %v1030_v36 = vadd.f32 %v378_v35, %v305_v34 }
  0xac   :  { %v1032_v37 = vpop.f32.mrf.mxu2 }
  0xad   :  { %v413_v38 = vpop.f32.mrf.mxu3 }
  0xae   :  { %v308_v39 = vpop.f32.mrf.mxu0 }
  0xaf   :  { %v381_v40 = vpop.f32.mrf.mxu1 }
  0xb0   :  { %v1034_v41 = vadd.f32 %v381_v40, %v308_v39 }
  0xb4   :  { %v338_v42 = vpop.f32.mrf.mxu2 }
  0xb5   :  { %v412_v43 = vadd.f32 %v411_v33, %v338_v42  ;;  %v416_v44 = vpop.f32.mrf.mxu3  ;;  %v1052_v33 = vld [vmem:[%s1094_s2] ss:$0 sm:$0xff] }
  0xb6   :  { %v310_v45 = vpop.f32.mrf.mxu0 }
  0xb7   :  { %454 = vst [vmem:[#allocation2 + $0x70] sm:$0xff] %v412_v43  ;;  %v383_v46 = vpop.f32.mrf.mxu1 }
  0xb8   :  { %v1036_v47 = vadd.f32 %v383_v46, %v310_v45 }
  0xbc   :  { %v340_v48 = vpop.f32.mrf.mxu2 }
  0xbd   :  { %v414_v49 = vadd.f32 %v413_v38, %v340_v48  ;;  %v418_v50 = vpop.f32.mrf.mxu3 }
  0xbe   :  { %v313_v51 = vpop.f32.mrf.mxu0 }
  0xbf   :  { %455 = vst [vmem:[#allocation2 + $0x78] sm:$0xff] %v414_v49  ;;  %v386_v52 = vpop.f32.mrf.mxu1 }
  0xc0   :  { %v1038_v53 = vadd.f32 %v386_v52, %v313_v51 }
  0xc4   :  { %v343_v54 = vpop.f32.mrf.mxu2 }
  0xc5   :  { %v417_v55 = vadd.f32 %v416_v44, %v343_v54  ;;  %v421_v56 = vpop.f32.mrf.mxu3 }
  0xc6   :  { %v315_v57 = vpop.f32.mrf.mxu0  ;;  %v495_v43 = vld [vmem:[#allocation2 + $0x74] sm:$0xff] }
  0xc7   :  { %456 = vst [vmem:[#allocation2 + $0x80] sm:$0xff] %v417_v55  ;;  %v388_v58 = vpop.f32.mrf.mxu1 }
  0xc8   :  { %v1040_v59 = vadd.f32 %v388_v58, %v315_v57 }
  0xcc   :  { %v345_v60 = vpop.f32.mrf.mxu2 }
  0xcd   :  { %v419_v61 = vadd.f32 %v418_v50, %v345_v60  ;;  %v423_v62 = vpop.f32.mrf.mxu3 }
  0xce   :  { %v318_v63 = vpop.f32.mrf.mxu0  ;;  %v496_v57 = vld [vmem:[#allocation2 + $0x7c] sm:$0xff] }
  0xcf   :  { %457 = vst [vmem:[#allocation2 + $0x88] sm:$0xff] %v419_v61  ;;  %v391_v0 = vpop.f32.mrf.mxu1 }
  0xd0   :  { %v392_v1 = vadd.f32 %v391_v0, %v318_v63 }
  0xd2   :  { %446 = vst [vmem:[#allocation2 + $0x30] sm:$0xff] %v392_v1 }
  0xd4   :  { %v348_v2 = vpop.f32.mrf.mxu2 }
  0xd5   :  { %v422_v3 = vadd.f32 %v421_v56, %v348_v2  ;;  %v426_v4 = vpop.f32.mrf.mxu3 }
  0xd6   :  { %v320_v5 = vpop.f32.mrf.mxu0 }
  0xd7   :  { %458 = vst [vmem:[#allocation2 + $0x90] sm:$0xff] %v422_v3  ;;  %v393_v6 = vpop.f32.mrf.mxu1 }
  0xd8   :  { %v394_v7 = vadd.f32 %v393_v6, %v320_v5  ;;  %v497_v5 = vld [vmem:[#allocation2 + $0x84] sm:$0xff] }
  0xda   :  { %447 = vst [vmem:[#allocation2 + $0x38] sm:$0xff] %v394_v7 }
  0xdc   :  { %v350_v9 = vpop.f32.mrf.mxu2 }
  0xdd   :  { %v424_v10 = vadd.f32 %v423_v62, %v350_v9  ;;  %v428_v11 = vpop.f32.mrf.mxu3 }
  0xde   :  { %v323_v12 = vpop.f32.mrf.mxu0 }
  0xdf   :  { %459 = vst [vmem:[#allocation2 + $0x98] sm:$0xff] %v424_v10  ;;  %v396_v13 = vpop.f32.mrf.mxu1 }
  0xe0   :  { %v397_v14 = vadd.f32 %v396_v13, %v323_v12  ;;  %v471_v13 = vld [vmem:[#allocation2 + $0x30] sm:$0x3] }
  0xe1   :  { %v472_v15 = vld [vmem:[#allocation2 + $0x32] sm:$0xff] }
  0xe2   :  { %v479_v16 = vmax.f32 %v377_v31, %v472_v15  ;;  %448 = vst [vmem:[#allocation2 + $0x40] sm:$0xff] %v397_v14 }
  0xe4   :  { %486 = vst [vmem:[#allocation3] sm:$0xff] %v479_v16  ;;  %v353_v17 = vpop.f32.mrf.mxu2 }
  0xe5   :  { %v427_v18 = vadd.f32 %v426_v4, %v353_v17  ;;  %v431_v19 = vpop.f32.mrf.mxu3 }
  0xe6   :  { %v325_v20 = vpop.f32.mrf.mxu0 }
  0xe7   :  { %460 = vst [vmem:[#allocation2 + $0xa0] sm:$0xff] %v427_v18  ;;  %v398_v21 = vpop.f32.mrf.mxu1 }
  0xe8   :  { %v399_v22 = vadd.f32 %v398_v21, %v325_v20  ;;  %v498_v20 = vld [vmem:[#allocation2 + $0x8c] sm:$0xff] }
  0xe9   :  { %v473_v23 = vld [vmem:[#allocation2 + $0x3a] sm:$0xff] }
  0xea   :  { %v480_v24 = vmax.f32 %v1030_v36, %v473_v23  ;;  %449 = vst [vmem:[#allocation2 + $0x48] sm:$0xff] %v399_v22 }
  0xec   :  { %487 = vst [vmem:[#allocation3 + $0x8] sm:$0xff] %v480_v24  ;;  %v355_v25 = vpop.f32.mrf.mxu2 }
  0xed   :  { %v429_v26 = vadd.f32 %v428_v11, %v355_v25  ;;  %v433_v27 = vpop.f32.mrf.mxu3 }
  0xee   :  { %v328_v28 = vpop.f32.mrf.mxu0 }
  0xef   :  { %461 = vst [vmem:[#allocation2 + $0xa8] sm:$0xff] %v429_v26  ;;  %v401_v29 = vpop.f32.mrf.mxu1  ;;  %v500_v26 = vld [vmem:[#allocation2 + $0x96] sm:$0xff] }
  0xf0   :  { %v402_v30 = vadd.f32 %v401_v29, %v328_v28 }
  0xf1   :  { %v474_v31 = vld [vmem:[#allocation2 + $0x42] sm:$0xff] }
  0xf2   :  { %v481_v34 = vmax.f32 %v1034_v41, %v474_v31  ;;  %450 = vst [vmem:[#allocation2 + $0x50] sm:$0xff] %v402_v30 }
  0xf3   :  { %v522_v35 = vld [vmem:[#allocation3] ss:$2 sm:$0xff]  ;;  %v530_v36 = vld [vmem:[#allocation3 + $0x1] ss:$2 sm:$0xff] }
  0xf4   :  { %v537_v38 = vmax.f32 %v522_v35, %v530_v36  ;;  %488 = vst [vmem:[#allocation3 + $0x10] sm:$0xff] %v481_v34  ;;  %v358_v39 = vpop.f32.mrf.mxu2 }
  0xf5   :  { %v432_v40 = vadd.f32 %v431_v19, %v358_v39  ;;  %v436_v42 = vpop.f32.mrf.mxu3 }
  0xf6   :  { %v544_v44 = vadd.f32 %v1052_v33, %v537_v38  ;;  %v502_v45 = vld [vmem:[#allocation2 + $0xa6] sm:$0xff]  ;;  %v330_v46 = vpop.f32.mrf.mxu0 }
  0xf7   :  { %v509_v48 = vmax.f32 %v495_v43, %v502_v45  ;;  %462 = vst [vmem:[#allocation2 + $0xb0] sm:$0xff] %v432_v40  ;;  %v403_v49 = vpop.f32.mrf.mxu1 }
  0xf8   :  { %v548_v50 = vmax.f32 %v544_v44, 0.0  ;;  %v404_v51 = vadd.f32 %v403_v49, %v330_v46 }
  0xf9   :  { %516 = vst [vmem:[#allocation3 + $0x42] sm:$0xff] %v509_v48  ;;  %v475_v41 = vld [vmem:[#allocation2 + $0x4a] sm:$0xff] }
  0xfa   :  { %552 = vst [vmem:[%s1095_s3] sm:$0xff] %v548_v50  ;;  %v482_v52 = vmax.f32 %v1036_v47, %v475_v41 }
  0xfb   :  { %451 = vst [vmem:[#allocation2 + $0x58] sm:$0xff] %v404_v51 }
  0xfc   :  { %489 = vst [vmem:[#allocation3 + $0x18] sm:$0xff] %v482_v52  ;;  %v360_v54 = vpop.f32.mrf.mxu2 }
  0xfd   :  { %v434_v55 = vadd.f32 %v433_v27, %v360_v54  ;;  %v438_v56 = vpop.f32.mrf.mxu3 }
  0xfe   :  { %v503_v58 = vld [vmem:[#allocation2 + $0xae] sm:$0xff] }
  0xff   :  { %v510_v60 = vmax.f32 %v496_v57, %v503_v58  ;;  %463 = vst [vmem:[#allocation2 + $0xb8] sm:$0xff] %v434_v55  ;;  %v406_v61 = vpop.f32.mrf.mxu1 }
 0x100   :  { %v407_v62 = vadd.f32 %v406_v61, %v1028_v32 }
 0x101   :  { %517 = vst [vmem:[#allocation3 + $0x4a] sm:$0xff] %v510_v60 }
 0x102   :  { %v476_v63 = vld [vmem:[#allocation2 + $0x52] sm:$0xff]  ;;  %452 = vst [vmem:[#allocation2 + $0x60] sm:$0xff] %v407_v62 }
 0x103   :  { %v524_v0 = vld [vmem:[#allocation3 + $0x10] ss:$2 sm:$0xff]  ;;  %v532_v1 = vld [vmem:[#allocation3 + $0x11] ss:$2 sm:$0xff]  ;;  %v483_v2 = vmax.f32 %v1038_v53, %v476_v63 }
 0x104   :  { %v538_v47 = vmax.f32 %v524_v0, %v532_v1  ;;  %v363_v3 = vpop.f32.mrf.mxu2 }
 0x105   :  { %490 = vst [vmem:[#allocation3 + $0x20] sm:$0xff] %v483_v2  ;;  %v437_v4 = vadd.f32 %v436_v42, %v363_v3 }
 0x106   :  { %v545_v6 = vadd.f32 %v1052_v33, %v538_v47  ;;  %v504_v7 = vld [vmem:[#allocation2 + $0xb6] sm:$0xff] }
 0x107   :  { %v511_v8 = vmax.f32 %v497_v5, %v504_v7  ;;  %464 = vst [vmem:[#allocation2 + $0xc0] sm:$0xff] %v437_v4  ;;  %v408_v9 = vpop.f32.mrf.mxu1 }
 0x108   :  { %v549_v10 = vmax.f32 %v545_v6, 0.0  ;;  %v560_v32 = vld [vmem:[#allocation3 + $0x42] ss:$2 sm:$0xff]  ;;  %v568_v11 = vld [vmem:[#allocation3 + $0x43] ss:$2 sm:$0xff]  ;;  %v409_v12 = vadd.f32 %v408_v9, %v1032_v37 }
 0x109   :  { %v574_v14 = vmax.f32 %v560_v32, %v568_v11  ;;  %518 = vst [vmem:[#allocation3 + $0x52] sm:$0xff] %v511_v8  ;;  %v477_v53 = vld [vmem:[#allocation2 + $0x5a] sm:$0xff]  ;;  %v478_v15 = vld [vmem:[#allocation2 + $0x62] sm:$0x3]  ;;  %v499_v37 = vld [vmem:[#allocation2 + $0x94] sm:$0x3] }
 0x10a   :  { %553 = vst [vmem:[%s1095_s3 + $0x8] sm:$0xff] %v549_v10  ;;  %v484_v16 = vmax.f32 %v1040_v59, %v477_v53  ;;  %v485_v17 = vmax.f32 %v471_v13, %v478_v15  ;;  %v501_v59 = vld [vmem:[#allocation2 + $0x9e] sm:$0xff] }
 0x10b   :  { %v578_v18 = vadd.f32 %v1052_v33, %v574_v14  ;;  %453 = vst [vmem:[#allocation2 + $0x68] sm:$0xff] %v409_v12 }
 0x10c   :  { %491 = vst [vmem:[#allocation3 + $0x28] sm:$0xff] %v484_v16  ;;  %v365_v19 = vpop.f32.mrf.mxu2 }
 0x10d   :  { %v582_v21 = vmax.f32 %v578_v18, 0.0  ;;  %492 = vst [vmem:[#allocation3 + $0x30] sm:$0x3] %v485_v17 }
 0x10e   :  { %v505_v22 = vld [vmem:[#allocation2 + $0xbe] sm:$0xff]  ;;  %v506_v23 = vld [vmem:[#allocation2 + $0xc6] sm:$0x3] }
 0x10f   :  { %586 = vst [vmem:[%s1095_s3 + $0x28] sm:$0xff] %v582_v21  ;;  %v512_v24 = vmax.f32 %v498_v20, %v505_v22  ;;  %v513_v25 = vmax.f32 %v499_v37, %v506_v23 }
 0x111   :  { %519 = vst [vmem:[#allocation3 + $0x5a] sm:$0xff] %v512_v24 }
 0x112   :  { %520 = vst [vmem:[#allocation3 + $0x62] sm:$0x3] %v513_v25  ;;  %v493_v27 = vld [vmem:[#allocation2 + $0x64] sm:$0xff]  ;;  %v494_v28 = vld [vmem:[#allocation2 + $0x6c] sm:$0xff] }
 0x113   :  { %v526_v29 = vld [vmem:[#allocation3 + $0x20] ss:$2 sm:$0xff]  ;;  %v534_v30 = vld [vmem:[#allocation3 + $0x21] ss:$2 sm:$0xff]  ;;  %v507_v31 = vmax.f32 %v493_v27, %v500_v26  ;;  %v508_v34 = vmax.f32 %v494_v28, %v501_v59 }
 0x114   :  { %v528_v35 = vld [vmem:[#allocation3 + $0x30] ss:$2 sm:$0x1]  ;;  %v536_v36 = vld [vmem:[#allocation3 + $0x31] ss:$2 sm:$0x1]  ;;  %v539_v38 = vmax.f32 %v526_v29, %v534_v30 }
 0x115   :  { %v540_v39 = vmax.f32 %v528_v35, %v536_v36  ;;  %514 = vst [vmem:[#allocation3 + $0x32] sm:$0xff] %v507_v31 }
 0x116   :  { %v546_v40 = vadd.f32 %v1052_v33, %v539_v38  ;;  %515 = vst [vmem:[#allocation3 + $0x3a] sm:$0xff] %v508_v34 }
 0x117   :  { %v547_v42 = vadd.f32 %v1052_v33, %v540_v39 }
 0x118   :  { %v550_v43 = vmax.f32 %v546_v40, 0.0  ;;  %v562_v44 = vld [vmem:[#allocation3 + $0x52] ss:$2 sm:$0xff]  ;;  %v570_v45 = vld [vmem:[#allocation3 + $0x53] ss:$2 sm:$0xff] }
 0x119   :  { %v551_v46 = vmax.f32 %v547_v42, 0.0  ;;  %v564_v48 = vld [vmem:[#allocation3 + $0x62] ss:$2 sm:$0x1]  ;;  %v575_v49 = vmax.f32 %v562_v44, %v570_v45 }
 0x11a   :  { %554 = vst [vmem:[%s1095_s3 + $0x10] sm:$0xff] %v550_v43  ;;  %v572_v50 = vld [vmem:[#allocation3 + $0x63] ss:$2 sm:$0x1] }
 0x11b   :  { %555 = vst [vmem:[%s1095_s3 + $0x18] sm:$0x1] %v551_v46  ;;  %v576_v51 = vmax.f32 %v564_v48, %v572_v50  ;;  %v579_v41 = vadd.f32 %v1052_v33, %v575_v49 }
 0x11d   :  { %v580_v52 = vadd.f32 %v1052_v33, %v576_v51  ;;  %v583_v54 = vmax.f32 %v579_v41, 0.0  ;;  %v558_v55 = vld [vmem:[#allocation3 + $0x32] ss:$2 sm:$0xff]  ;;  %v566_v56 = vld [vmem:[#allocation3 + $0x33] ss:$2 sm:$0xff] }
 0x11e   :  { %v573_v57 = vmax.f32 %v558_v55, %v566_v56 }
 0x11f   :  { %v584_v58 = vmax.f32 %v580_v52, 0.0  ;;  %587 = vst [vmem:[%s1095_s3 + $0x30] sm:$0xff] %v583_v54 }
 0x120   :  { %v577_v60 = vadd.f32 %v1052_v33, %v573_v57 }
 0x121   :  { %588 = vst [vmem:[%s1095_s3 + $0x38] sm:$0x1] %v584_v58 }
 0x122   :  { %v581_v61 = vmax.f32 %v577_v60, 0.0 }
 0x124   :  { %585 = vst [vmem:[%s1095_s3 + $0x20] sm:$0xff] %v581_v61 }

// kernel: lenet5_forward.5
= control target key start
LH: loop header
LB: loop body
LE: loop exit
PB: predicated region body
PF: predicated region fallthrough
CT: control target
= control target key end

     0   :  { %s1003_s0 = inlined_call_operand.vmem [shape: bf16[2,512], index: 0, kind: input, shape index: {}]   ;;  %s1004_s1 = inlined_call_operand.vmem [shape: bf16[512,128], index: 1, kind: input, shape index: {}]   ;;  %s1005_s2 = inlined_call_operand.vmem [shape: f32[1,128], index: 2, kind: input, shape index: {}]   ;;  %s1006_s3 = inlined_call_operand.vmem [shape: bf16[128,128], index: 3, kind: input, shape index: {}]   ;;  %s1007_s4 = inlined_call_operand.vmem [shape: f32[1,128], index: 4, kind: input, shape index: {}]   ;;  %s1008_s5 = inlined_call_operand.vmem [shape: bf16[128,128], index: 5, kind: input, shape index: {}]   ;;  %s1009_s6 = inlined_call_operand.vmem [shape: f32[1,128], index: 6, kind: input, shape index: {}]   ;;  %s1010_s7 = inlined_call_operand.hbm [shape: f32[2,128], index: 7, kind: output, shape index: {}]  }
   0x1   :  { %v732_v0 = vld [vmem:[%s1004_s1 + $0x38] sm:$0xff]  ;;  %v731_v4 = vld [vmem:[%s1004_s1 + $0x30] sm:$0xff]  ;;  %v730_v8 = vld [vmem:[%s1004_s1 + $0x28] sm:$0xff] }
   0x2   :  { %v740_v1 = vld [vmem:[%s1004_s1 + $0x78] sm:$0xff]  ;;  %298 = vmatpush.bf16.msra.mxu0 %v732_v0  ;;  %v739_v5 = vld [vmem:[%s1004_s1 + $0x70] sm:$0xff]  ;;  %v738_v9 = vld [vmem:[%s1004_s1 + $0x68] sm:$0xff] }
   0x3   :  { %v748_v2 = vld [vmem:[%s1004_s1 + $0xb8] sm:$0xff]  ;;  %311 = vmatpush.bf16.msra.mxu1 %v740_v1  ;;  %v747_v6 = vld [vmem:[%s1004_s1 + $0xb0] sm:$0xff]  ;;  %v746_v10 = vld [vmem:[%s1004_s1 + $0xa8] sm:$0xff] }
   0x4   :  { %v756_v3 = vld [vmem:[%s1004_s1 + $0xf8] sm:$0xff]  ;;  %324 = vmatpush.bf16.msra.mxu2 %v748_v2  ;;  %v755_v7 = vld [vmem:[%s1004_s1 + $0xf0] sm:$0xff]  ;;  %v754_v11 = vld [vmem:[%s1004_s1 + $0xe8] sm:$0xff] }
   0x5   :  { %337 = vmatpush.bf16.msra.mxu3 %v756_v3  ;;  %v729_v12 = vld [vmem:[%s1004_s1 + $0x20] sm:$0xff] }
   0x6   :  { %299 = vmatpush.bf16.msra.mxu0 %v731_v4  ;;  %v737_v13 = vld [vmem:[%s1004_s1 + $0x60] sm:$0xff] }
   0x7   :  { %312 = vmatpush.bf16.msra.mxu1 %v739_v5  ;;  %v27_v14 = vld [vmem:[%s1003_s0] sm:$0xf] }
   0x8   :  { %325 = vmatpush.bf16.msra.mxu2 %v747_v6  ;;  %v745_v15 = vld [vmem:[%s1004_s1 + $0xa0] sm:$0xff]  ;;  %97 = vst [vmem:[#allocation1] ss:$9 sm:$0xff] %v27_v14 }
   0x9   :  { %338 = vmatpush.bf16.msra.mxu3 %v755_v7  ;;  %v753_v16 = vld [vmem:[%s1004_s1 + $0xe0] sm:$0xff] }
   0xa   :  { %300 = vmatpush.bf16.msra.mxu0 %v730_v8 }
   0xb   :  { %313 = vmatpush.bf16.msra.mxu1 %v738_v9 }
   0xc   :  { %326 = vmatpush.bf16.msra.mxu2 %v746_v10 }
   0xd   :  { %339 = vmatpush.bf16.msra.mxu3 %v754_v11 }
   0xe   :  { %12 = vsyncpa [#allocation3], 0  ;;  %301 = vmatpush.bf16.msra.mxu0 %v729_v12  ;;  %v728_v17 = vld [vmem:[%s1004_s1 + $0x18] sm:$0xff]  ;;  %v727_v21 = vld [vmem:[%s1004_s1 + $0x10] sm:$0xff]  ;;  %s803_s29 = smov [#allocation2]  }
   0xf   :  { %314 = vmatpush.bf16.msra.mxu1 %v737_v13  ;;  %v736_v18 = vld [vmem:[%s1004_s1 + $0x58] sm:$0xff]  ;;  %v735_v22 = vld [vmem:[%s1004_s1 + $0x50] sm:$0xff]  ;;  %v726_v25 = vld [vmem:[%s1004_s1 + $0x8] sm:$0xff]  ;;  %s522_s30 = sshll.u32 %s803_s29, 4  ;;  %s523_s30 = int_to_ptr.vmem [resolvable:$true] %s522_s30 }
  0x10   :  { %327 = vmatpush.bf16.msra.mxu2 %v745_v15  ;;  %v744_v19 = vld [vmem:[%s1004_s1 + $0x98] sm:$0xff]  ;;  %v743_v23 = vld [vmem:[%s1004_s1 + $0x90] sm:$0xff]  ;;  %v734_v26 = vld [vmem:[%s1004_s1 + $0x48] sm:$0xff] }
  0x11   :  { %340 = vmatpush.bf16.msra.mxu3 %v753_v16  ;;  %v752_v20 = vld [vmem:[%s1004_s1 + $0xd8] sm:$0xff]  ;;  %v751_v24 = vld [vmem:[%s1004_s1 + $0xd0] sm:$0xff]  ;;  %v742_v27 = vld [vmem:[%s1004_s1 + $0x88] sm:$0xff] }
  0x12   :  { %302 = vmatpush.bf16.msra.mxu0 %v728_v17  ;;  %v750_v28 = vld [vmem:[%s1004_s1 + $0xc8] sm:$0xff]  ;;  %v725_v29 = vld [vmem:[%s1004_s1] sm:$0xff]  ;;  %v764_v33 = vld [vmem:[%s1006_s3 + $0x38] sm:$0xff] }
  0x13   :  { %315 = vmatpush.bf16.msra.mxu1 %v736_v18  ;;  %v733_v30 = vld [vmem:[%s1004_s1 + $0x40] sm:$0xff]  ;;  %v99_v35 = vld [vmem:[#allocation1 + $0x9] sm:$0xff]  ;;  %v100_v36 = vld [vmem:[#allocation1 + $0x12] sm:$0xff] }
  0x14   :  { %328 = vmatpush.bf16.msra.mxu2 %v744_v19  ;;  %v741_v31 = vld [vmem:[%s1004_s1 + $0x80] sm:$0xff]  ;;  %v763_v38 = vld [vmem:[%s1006_s3 + $0x30] sm:$0xff]  ;;  %v762_v39 = vld [vmem:[%s1006_s3 + $0x28] sm:$0xff] }
  0x15   :  { %341 = vmatpush.bf16.msra.mxu3 %v752_v20  ;;  %v749_v32 = vld [vmem:[%s1004_s1 + $0xc0] sm:$0xff]  ;;  %v760_v41 = vld [vmem:[%s1006_s3 + $0x18] sm:$0xff]  ;;  %v759_v42 = vld [vmem:[%s1006_s3 + $0x10] sm:$0xff] }
  0x16   :  { %303 = vmatpush.bf16.msra.mxu0 %v727_v21  ;;  %v98_v34 = vld [vmem:[#allocation1] sm:$0xff]  ;;  %v758_v43 = vld [vmem:[%s1006_s3 + $0x8] sm:$0xff]  ;;  %v772_v45 = vld [vmem:[%s1008_s5 + $0x38] sm:$0xff] }
  0x17   :  { %316 = vmatpush.bf16.msra.mxu1 %v735_v22  ;;  %v101_v37 = vld [vmem:[#allocation1 + $0x1b] sm:$0xff]  ;;  %v771_v46 = vld [vmem:[%s1008_s5 + $0x30] sm:$0xff]  ;;  %v770_v47 = vld [vmem:[%s1008_s5 + $0x28] sm:$0xff] }
  0x18   :  { %329 = vmatpush.bf16.msra.mxu2 %v743_v23  ;;  %v761_v40 = vld [vmem:[%s1006_s3 + $0x20] sm:$0xff]  ;;  %v768_v50 = vld [vmem:[%s1008_s5 + $0x18] sm:$0xff]  ;;  %v767_v54 = vld [vmem:[%s1008_s5 + $0x10] sm:$0xff] }
  0x19   :  { %342 = vmatpush.bf16.msra.mxu3 %v751_v24  ;;  %v757_v44 = vld [vmem:[%s1006_s3] sm:$0xff]  ;;  %v766_v2 = vld [vmem:[%s1008_s5 + $0x8] sm:$0xff] }
  0x1a   :  { %304 = vmatpush.bf16.msra.mxu0 %v726_v25  ;;  %v769_v48 = vld [vmem:[%s1008_s5 + $0x20] sm:$0xff] }
  0x1b   :  { %317 = vmatpush.bf16.msra.mxu1 %v734_v26  ;;  %v774_v49 = vld [vmem:[%s1005_s2] ss:$0 sm:$0xff] }
  0x1c   :  { %330 = vmatpush.bf16.msra.mxu2 %v742_v27  ;;  %v765_v3 = vld [vmem:[%s1008_s5] sm:$0xff]  ;;  %s524_s5 = sshll.u32 %s1010_s7, 4  ;;  %s525_s5 = int_to_ptr.hbm [resolvable:$true] %s524_s5 }
  0x1d   :  { %343 = vmatpush.bf16.msra.mxu3 %v750_v28  ;;  %v775_v4 = vld [vmem:[%s1007_s4] ss:$0 sm:$0xff] }
  0x1e   :  { %305 = vmatpush.bf16.msra.mxu0 %v725_v29  ;;  %v776_v10 = vld [vmem:[%s1009_s6] ss:$0 sm:$0xff] }
  0x1f   :  { %318 = vmatpush.bf16.msra.mxu1 %v733_v30 }
  0x20   :  { %331 = vmatpush.bf16.msra.mxu2 %v741_v31 }
  0x21   :  { %344 = vmatpush.bf16.msra.mxu3 %v749_v32  ;;  %306 = vmatmul.bf16.vlgmr.msra.gmra.mxu0 %v98_v34 }
  0x22   :  { %420 = vmatpush.bf16.msrb.mxu0 %v764_v33  ;;  %319 = vmatmul.bf16.vlgmr.msra.gmra.mxu1 %v99_v35 }
  0x23   :  { %332 = vmatmul.bf16.vlgmr.msra.gmra.mxu2 %v100_v36  ;;  %503 = vmatpush.bf16.msrb.mxu1 %v772_v45 }
  0x24   :  { %345 = vmatmul.bf16.vlgmr.msra.gmra.mxu3 %v101_v37 }
  0x26   :  { %421 = vmatpush.bf16.msrb.mxu0 %v763_v38 }
  0x27   :  { %504 = vmatpush.bf16.msrb.mxu1 %v771_v46 }
  0x2a   :  { %422 = vmatpush.bf16.msrb.mxu0 %v762_v39 }
  0x2b   :  { %505 = vmatpush.bf16.msrb.mxu1 %v770_v47 }
  0x2e   :  { %423 = vmatpush.bf16.msrb.mxu0 %v761_v40 }
  0x2f   :  { %506 = vmatpush.bf16.msrb.mxu1 %v769_v48 }
  0x32   :  { %424 = vmatpush.bf16.msrb.mxu0 %v760_v41 }
  0x33   :  { %507 = vmatpush.bf16.msrb.mxu1 %v768_v50 }
  0x36   :  { %425 = vmatpush.bf16.msrb.mxu0 %v759_v42 }
  0x37   :  { %508 = vmatpush.bf16.msrb.mxu1 %v767_v54 }
  0x3a   :  { %426 = vmatpush.bf16.msrb.mxu0 %v758_v43 }
  0x3b   :  { %509 = vmatpush.bf16.msrb.mxu1 %v766_v2 }
  0x3e   :  { %427 = vmatpush.bf16.msrb.mxu0 %v757_v44 }
  0x3f   :  { %510 = vmatpush.bf16.msrb.mxu1 %v765_v3 }
  0x9e   :  { %v307_v51 = vpop.f32.mrf.mxu0 }
  0x9f   :  { %v320_v52 = vpop.f32.mrf.mxu1  ;;  %v308_v53 = vadd.f32 %v774_v49, %v307_v51 }
  0xa1   :  { %v321_v55 = vadd.f32 %v320_v52, %v308_v53 }
  0xa6   :  { %v333_v56 = vpop.f32.mrf.mxu2  ;;  %v309_v59 = vpop.f32.mrf.mxu0 }
  0xa7   :  { %v346_v57 = vpop.f32.mrf.mxu3  ;;  %v334_v58 = vadd.f32 %v333_v56, %v321_v55  ;;  %v322_v60 = vpop.f32.mrf.mxu1 }
  0xa9   :  { %v347_v61 = vadd.f32 %v346_v57, %v334_v58 }
  0xab   :  { %v350_v62 = vmax.f32 %v347_v61, 0.0 }
  0xad   :  { %v351_v63 = vpack.c.bf16 %v350_v62, %v350_v62 }
  0xae   :  { %v335_v0 = vpop.f32.mrf.mxu2 }
  0xaf   :  { %v348_v1 = vpop.f32.mrf.mxu3  ;;  %428 = vmatmul.bf16.vlgmr.msrb.gmra.mxu0 %v351_v63 }
 0x12c   :  { %v429_v5 = vpop.f32.mrf.mxu0 }
 0x12d   :  { %v430_v6 = vadd.f32 %v775_v4, %v429_v5 }
 0x12f   :  { %v433_v7 = vmax.f32 %v430_v6, 0.0 }
 0x131   :  { %v434_v8 = vpack.c.bf16 %v433_v7, %v433_v7 }
 0x133   :  { %511 = vmatmul.bf16.vlgmr.msrb.gmra.mxu1 %v434_v8 }
 0x134   :  { %v431_v9 = vpop.f32.mrf.mxu0 }
 0x1b0   :  { %v512_v11 = vpop.f32.mrf.mxu1 }
 0x1b1   :  { %v513_v12 = vadd.f32 %v776_v10, %v512_v11 }
 0x1b3   :  { %516 = vst [vmem:[#allocation2] sm:$0x3] %v513_v12 }
 0x1b4   :  { %527 = dma.vmem_to_hbm [thread:$0]  %s523_s30, 32, %s525_s5, [#allocation3]  }
 0x1b8   :  { %v514_v13 = vpop.f32.mrf.mxu1 }
 0x1b9   :  { %801 = dma.done.wait [#allocation3], 32  }
 0x1ba   :  { %802 = vsyncadd [#allocation3], 4294967264 }
 0x1bb   :  { %532 = vsyncpa [#allocation3], 1 }

</bundles_post_ra>
